<compile_context>
chip_gen: v5e
topology: v5e:2x2
jax: 0.10.0
libtpu: 0.0.40
codegen_flags: <defaults>
</compile_context>

<pallas_src>
import jax
import jax.numpy as jnp
from jax.experimental import pallas as pl
from jax.experimental.pallas import tpu as pltpu


CPAD = 16  # channel width all conv activations are padded to (lane-friendly)


def init_params(key, input_channels=7, hidden=32, num_classes=2, flat_steps=10):
    """Deterministic synthetic parameters in kernel-friendly layouts.

    Mapping to the PyTorch module:
      conv_w[l, k*16+cin, cout] == torch conv_l.weight[cout, cin, k]  (cin >= Cin rows are 0)
      conv_b[l, 0, cout]        == torch conv_l.bias[cout]
      wih_*[cin, 4H] == torch weight_ih_l0*.T   (gate order i,f,g,o)
      whh_*[H,  4H]  == torch weight_hh_l0*.T
      b_*            == torch (bias_ih + bias_hh)
      w1/w2/w3       == torch linear.weight.T ; b* == linear.bias
    """
    keys = iter(jax.random.split(key, 20))

    def rnd(shape, scale=0.1):
        return scale * jax.random.normal(next(keys), shape, jnp.float32)

    H = hidden
    cw = rnd((6, 3 * CPAD, CPAD))
    # Conv layer 0 only has `input_channels` real input channels; zero the rest so
    # the packed (48,16) weight is exactly the 7-channel torch conv.
    valid = ((jnp.arange(3 * CPAD) % CPAD) < input_channels).astype(jnp.float32)
    cw = cw.at[0].set(cw[0] * valid[:, None])

    return {
        "conv_w": cw,                          # (6, 48, 16)
        "conv_b": rnd((6, 1, CPAD)),           # (6, 1, 16)
        "wih_f": rnd((CPAD, 4 * H)), "whh_f": rnd((H, 4 * H)), "b_f": rnd((1, 4 * H)),
        "wih_b": rnd((CPAD, 4 * H)), "whh_b": rnd((H, 4 * H)), "b_b": rnd((1, 4 * H)),
        "w1": rnd((flat_steps * 2 * H, 128)), "b1": rnd((1, 128)),
        "w2": rnd((128, 64)), "b2": rnd((1, 64)),
        "w3": rnd((64, num_classes)), "b3": rnd((1, num_classes)),
    }


def forward(x, params):
    B, L1, Cin = x.shape
    L2 = L1 // 2 + 1
    L3 = L2 // 2 + 1
    T = L3 // 2 + 1
    P1, P2, P3 = L1 + 2, L2 + 2, L3 + 2          # per-batch padded slot lengths
    H = params["whh_f"].shape[0]
    n1 = params["w1"].shape[1]
    n2 = params["w2"].shape[1]
    nc = params["w3"].shape[1]
    assert params["w1"].shape[0] == T * 2 * H, "Flatten width mismatch"

    f32, bf16 = jnp.float32, jnp.bfloat16

    # Input embedding: per-batch zero gap rows emulate Conv1d zero padding and the
    # MaxPool1d pad; channels zero-padded 7 -> 16 (matching zeroed weight rows).
    xp = jnp.zeros((B * P1 + 2, CPAD), f32)
    for b in range(B):
        xp = xp.at[1 + b * P1 + 1: 1 + b * P1 + 1 + L1, :Cin].set(x[b])

    # Weight packing / bf16 MXU-operand casts (accumulation stays f32 in-kernel).
    cw = params["conv_w"].astype(bf16)
    cb = params["conv_b"]
    wih_f = params["wih_f"].astype(bf16)
    wih_b = params["wih_b"].astype(bf16)
    whh = jnp.concatenate([params["whh_f"], params["whh_b"]], axis=0)   # (2H,4H) f32
    b_f, b_b = params["b_f"], params["b_b"]
    w1 = params["w1"].astype(bf16)
    w2 = params["w2"].astype(bf16)
    b1, b2, w3, b3 = params["b1"], params["b2"], params["w3"], params["b3"]

    def kernel(x_ref, cw_ref, cb_ref, wif_ref, wib_ref, bif_ref, bib_ref, whh_ref,
               w1_ref, b1_ref, w2_ref, b2_ref, w3_ref, b3_ref, o_ref,
               buf1, buf2, buf3, xf_ref, xb_ref):

        def conv_relu(src, nrows, w, bias):
            # Conv1d(k=3,s=1,p=1)+ReLU on the gap-padded layout: the 3 taps are the
            # same window shifted by 0/1/2 rows (gap rows = exact zero padding and
            # batch isolation).  Single fused K=48 MXU matmul, f32 accumulate.
            prev = src[pl.ds(0, nrows), :]
            cur = src[pl.ds(1, nrows), :]
            nxt = src[pl.ds(2, nrows), :]
            hh = jnp.concatenate([prev, cur, nxt], axis=-1).astype(jnp.bfloat16)
            y = jnp.dot(hh, w, preferred_element_type=jnp.float32) + bias
            return jnp.maximum(y, 0.0)

        def repad(dst, h, P, L):
            # Write a conv result back into the padded layout: bulk store, then
            # re-zero the 2 gap rows per batch (their conv output is garbage).
            dst[pl.ds(1, B * P), :] = h
            zrow = jnp.zeros((1, CPAD), jnp.float32)
            for b in range(B):
                dst[pl.ds(1 + b * P, 1), :] = zrow
                dst[pl.ds(1 + b * P + L + 1, 1), :] = zrow

        def pool_batch(src, P, L, b):
            # MaxPool1d(k=2,s=2,p=1): out[t] = max(pad[2t], pad[2t+1]) where the
            # padded sequence is exactly rows [gap, x_0..x_{L-1}, gap] of src.
            # 0-pad == -inf-pad because pool inputs are post-ReLU (>= 0).
            Lout = L // 2 + 1
            s1 = src[pl.ds(1 + b * P, Lout, stride=2), :]
            s2 = src[pl.ds(1 + b * P + 1, Lout, stride=2), :]
            return jnp.maximum(s1, s2)

        def pool_into(src, dst, P, L, Pn):
            Lout = L // 2 + 1
            for b in range(B):
                dst[pl.ds(1 + b * Pn + 1, Lout), :] = pool_batch(src, P, L, b)

        # Zero the staging buffers once: gap rows stay authoritative zeros.
        buf1[...] = jnp.zeros_like(buf1)
        buf2[...] = jnp.zeros_like(buf2)
        buf3[...] = jnp.zeros_like(buf3)

        # ---------------- conv stack ----------------
        h = conv_relu(x_ref, B * P1, cw_ref[0], cb_ref[0])
        repad(buf1, h, P1, L1)
        h = conv_relu(buf1, B * P1, cw_ref[1], cb_ref[1])
        repad(buf1, h, P1, L1)
        pool_into(buf1, buf2, P1, L1, P2)

        h = conv_relu(buf2, B * P2, cw_ref[2], cb_ref[2])
        repad(buf2, h, P2, L2)
        h = conv_relu(buf2, B * P2, cw_ref[3], cb_ref[3])
        repad(buf2, h, P2, L2)
        pool_into(buf2, buf3, P2, L2, P3)

        h = conv_relu(buf3, B * P3, cw_ref[4], cb_ref[4])
        repad(buf3, h, P3, L3)
        h = conv_relu(buf3, B * P3, cw_ref[5], cb_ref[5])
        repad(buf3, h, P3, L3)

        # ------ BiLSTM input projections (3rd maxpool fused in), batch-major ------
        wif = wif_ref[...]
        wib = wib_ref[...]
        for b in range(B):
            pooled = pool_batch(buf3, P3, L3, b).astype(jnp.bfloat16)       # (T,16)
            xf_ref[pl.ds(b * T, T), :] = (
                jnp.dot(pooled, wif, preferred_element_type=jnp.float32) + bif_ref[...])
            xb_ref[pl.ds(b * T, T), :] = (
                jnp.dot(pooled, wib, preferred_element_type=jnp.float32) + bib_ref[...])

        # ------ BiLSTM recurrence (PyTorch gate order i,f,g,o), fused W1 ------
        whh_cat = whh_ref[...]                                   # (2H, 4H) f32
        is_fwd = jax.lax.broadcasted_iota(jnp.int32, (2 * B, 1), 0) < B
        hcat = jnp.zeros((2 * B, 2 * H), jnp.float32)            # rows: [h_fwd|0] / [0|h_bwd]
        c = jnp.zeros((2 * B, H), jnp.float32)
        z1 = jnp.zeros((B, n1), jnp.float32)
        for s in range(T):
            tb = T - 1 - s                           # timestep handled by the bwd dir
            gf = xf_ref[pl.ds(s, B, stride=T), :]    # fwd inputs at time s, all batches
            gb = xb_ref[pl.ds(tb, B, stride=T), :]   # bwd inputs at time tb, all batches
            g = jnp.concatenate([gf, gb], axis=0)    # (2B, 4H)
            if s > 0:                                # h0 == 0: skip first recurrent matmul
                g = g + jnp.dot(hcat, whh_cat, preferred_element_type=jnp.float32)
            ig = jax.nn.sigmoid(g[:, 0:H])
            fg = jax.nn.sigmoid(g[:, H:2 * H])
            gg = jnp.tanh(g[:, 2 * H:3 * H])
            og = jax.nn.sigmoid(g[:, 3 * H:4 * H])
            c = fg * c + ig * gg
            hn = og * jnp.tanh(c)
            hcat = jnp.concatenate([jnp.where(is_fwd, hn, 0.0),
                                    jnp.where(is_fwd, 0.0, hn)], axis=1)
            # Flatten + Linear(640,128) folded in: fwd hits the W1 rows of time s,
            # bwd those of time tb; the zero halves of hcat mask the unused block.
            w1blk = jnp.concatenate([w1_ref[pl.ds(s * 2 * H, H), :],
                                     w1_ref[pl.ds(tb * 2 * H + H, H), :]], axis=0)
            zc = jnp.dot(hcat.astype(jnp.bfloat16), w1blk,
                         preferred_element_type=jnp.float32)     # (2B, 128)
            z1 = z1 + zc[0:B, :] + zc[B:2 * B, :]

        # ---------------- classifier head ----------------
        z1 = jnp.maximum(z1 + b1_ref[...], 0.0)
        z2 = jnp.maximum(
            jnp.dot(z1.astype(jnp.bfloat16), w2_ref[...],
                    preferred_element_type=jnp.float32) + b2_ref[...], 0.0)
        out = jnp.dot(z2, w3_ref[...], preferred_element_type=jnp.float32) + b3_ref[...]
        o_ref[...] = out.astype(o_ref.dtype)

    args = (xp, cw, cb, wih_f, wih_b, b_f, b_b, whh, w1, b1, w2, b2, w3, b3)

    # Advisory cost estimate for the XLA scheduler.
    flops = 0
    for nr in (B * P1, B * P1, B * P2, B * P2, B * P3, B * P3):
        flops += 2 * nr * (3 * CPAD) * CPAD                      # fused 3-tap convs
    flops += 2 * 2 * (B * T) * CPAD * 4 * H                      # lstm input projections
    flops += 2 * (T - 1) * (2 * B) * (2 * H) * (4 * H)           # recurrent matmuls
    flops += 2 * T * (2 * B) * (2 * H) * n1                      # fused W1 accumulation
    flops += 2 * B * n1 * n2 + 2 * B * n2 * nc                   # MLP head
    transcendentals = 5 * H * 2 * B * T
    bytes_accessed = sum(int(a.size) * a.dtype.itemsize for a in args) + B * nc * 4
    cost = pl.CostEstimate(flops=int(flops), transcendentals=int(transcendentals),
                           bytes_accessed=int(bytes_accessed))

    vmem = pl.BlockSpec(memory_space=pltpu.MemorySpace.VMEM)
    return pl.pallas_call(
        kernel,
        out_shape=jax.ShapeDtypeStruct((B, nc), jnp.float32),
        in_specs=[vmem] * len(args),
        out_specs=vmem,
        scratch_shapes=[
            pltpu.VMEM((B * P1 + 2, CPAD), jnp.float32),   # stage-1 padded activations
            pltpu.VMEM((B * P2 + 2, CPAD), jnp.float32),   # stage-2 padded activations
            pltpu.VMEM((B * P3 + 2, CPAD), jnp.float32),   # stage-3 padded activations
            pltpu.VMEM((B * T, 4 * H), jnp.float32),       # fwd gate input projections
            pltpu.VMEM((B * T, 4 * H), jnp.float32),       # bwd gate input projections
        ],
        cost_estimate=cost,
    )(*args)


if __name__ == "__main__":
    key = jax.random.PRNGKey(0)
    pkey, xkey = jax.random.split(key)
    params = init_params(pkey)
    x = jax.random.normal(xkey, (2, 72, 7), jnp.float32)   # (B, L, C_in)

    out = jax.jit(forward)(x, params)
    out = jax.block_until_ready(out)
    assert out.shape == (2, 2) and out.dtype == jnp.float32
    assert bool(jnp.all(jnp.isfinite(out)))
    print("KERNEL_OK")
</pallas_src>

<mosaic_0001>
module attributes {stable_mosaic.version = 11 : i64} {
  func.func @kernel(%arg0: memref<150x16xf32, #tpu.memory_space<vmem>>, %arg1: memref<6x48x16xbf16, #tpu.memory_space<vmem>>, %arg2: memref<6x1x16xf32, #tpu.memory_space<vmem>>, %arg3: memref<16x128xbf16, #tpu.memory_space<vmem>>, %arg4: memref<16x128xbf16, #tpu.memory_space<vmem>>, %arg5: memref<1x128xf32, #tpu.memory_space<vmem>>, %arg6: memref<1x128xf32, #tpu.memory_space<vmem>>, %arg7: memref<64x128xf32, #tpu.memory_space<vmem>>, %arg8: memref<640x128xbf16, #tpu.memory_space<vmem>>, %arg9: memref<1x128xf32, #tpu.memory_space<vmem>>, %arg10: memref<128x64xbf16, #tpu.memory_space<vmem>>, %arg11: memref<1x64xf32, #tpu.memory_space<vmem>>, %arg12: memref<64x2xf32, #tpu.memory_space<vmem>>, %arg13: memref<1x2xf32, #tpu.memory_space<vmem>>, %arg14: memref<2x2xf32, #tpu.memory_space<vmem>>, %arg15: memref<150x16xf32, #tpu.memory_space<vmem>>, %arg16: memref<80x16xf32, #tpu.memory_space<vmem>>, %arg17: memref<44x16xf32, #tpu.memory_space<vmem>>, %arg18: memref<20x128xf32, #tpu.memory_space<vmem>>, %arg19: memref<20x128xf32, #tpu.memory_space<vmem>>) attributes {dimension_semantics = [], scalar_prefetch = 0 : i64, scratch_operands = 5 : i64, tpu.core_type = #tpu.core_type<tc>} {
    %cst = arith.constant 0.000000e+00 : f32
    %0 = vector.broadcast %cst : f32 to vector<150x16xf32>
    %c0 = arith.constant 0 : index
    %c0_0 = arith.constant 0 : index
    %1 = vector.load %arg15[%c0, %c0_0] : memref<150x16xf32, #tpu.memory_space<vmem>>, vector<150x16xf32>
    tpu.vector_store %arg15[%c0, %c0_0], %0 {strides = array<i32>} : memref<150x16xf32, #tpu.memory_space<vmem>>, vector<150x16xf32>,
    %cst_1 = arith.constant 0.000000e+00 : f32
    %2 = vector.broadcast %cst_1 : f32 to vector<80x16xf32>
    %c0_2 = arith.constant 0 : index
    %c0_3 = arith.constant 0 : index
    %3 = vector.load %arg16[%c0_2, %c0_3] : memref<80x16xf32, #tpu.memory_space<vmem>>, vector<80x16xf32>
    tpu.vector_store %arg16[%c0_2, %c0_3], %2 {strides = array<i32>} : memref<80x16xf32, #tpu.memory_space<vmem>>, vector<80x16xf32>,
    %cst_4 = arith.constant 0.000000e+00 : f32
    %4 = vector.broadcast %cst_4 : f32 to vector<44x16xf32>
    %c0_5 = arith.constant 0 : index
    %c0_6 = arith.constant 0 : index
    %5 = vector.load %arg17[%c0_5, %c0_6] : memref<44x16xf32, #tpu.memory_space<vmem>>, vector<44x16xf32>
    tpu.vector_store %arg17[%c0_5, %c0_6], %4 {strides = array<i32>} : memref<44x16xf32, #tpu.memory_space<vmem>>, vector<44x16xf32>,
    %c0_7 = arith.constant 0 : index
    %c0_8 = arith.constant 0 : index
    %c0_9 = arith.constant 0 : index
    %6 = vector.load %arg1[%c0_7, %c0_8, %c0_9] : memref<6x48x16xbf16, #tpu.memory_space<vmem>>, vector<1x48x16xbf16>
    %7 = vector.shape_cast %6 : vector<1x48x16xbf16> to vector<48x16xbf16>
    %c0_10 = arith.constant 0 : index
    %c0_11 = arith.constant 0 : index
    %c0_12 = arith.constant 0 : index
    %8 = vector.load %arg2[%c0_10, %c0_11, %c0_12] : memref<6x1x16xf32, #tpu.memory_space<vmem>>, vector<1x1x16xf32>
    %9 = vector.shape_cast %8 : vector<1x1x16xf32> to vector<1x16xf32>
    %c0_13 = arith.constant 0 : index
    %c0_14 = arith.constant 0 : index
    %10 = vector.load %arg0[%c0_13, %c0_14] : memref<150x16xf32, #tpu.memory_space<vmem>>, vector<148x16xf32>
    %c1 = arith.constant 1 : index
    %c0_15 = arith.constant 0 : index
    %11 = vector.load %arg0[%c1, %c0_15] : memref<150x16xf32, #tpu.memory_space<vmem>>, vector<148x16xf32>
    %c2 = arith.constant 2 : index
    %c0_16 = arith.constant 0 : index
    %12 = vector.load %arg0[%c2, %c0_16] : memref<150x16xf32, #tpu.memory_space<vmem>>, vector<148x16xf32>
    %13 = tpu.concatenate %10, %11, %12 in 1 : vector<148x16xf32>, vector<148x16xf32>, vector<148x16xf32> -> vector<148x48xf32>
    %14 = arith.truncf %13 : vector<148x48xf32> to vector<148x48xbf16>
    %cst_17 = arith.constant dense<0.000000e+00> : vector<148x16xf32>
    %15 = tpu.matmul %14, %7, %cst_17 {dimension_numbers = #tpu.dot_dimension_numbers<[1], [0], [0], [1], [0, 0, 1, 1], [], []>} : vector<148x48xbf16>, vector<48x16xbf16>, vector<148x16xf32> -> vector<148x16xf32>
    %16 = vector.broadcast %9 : vector<1x16xf32> to vector<148x16xf32>
    %17 = arith.addf %15, %16 : vector<148x16xf32>
    %cst_18 = arith.constant 0.000000e+00 : f32
    %18 = vector.broadcast %cst_18 : f32 to vector<148x16xf32>
    %19 = arith.maximumf %17, %18 : vector<148x16xf32>
    %c1_19 = arith.constant 1 : index
    %c0_20 = arith.constant 0 : index
    %20 = vector.load %arg15[%c1_19, %c0_20] : memref<150x16xf32, #tpu.memory_space<vmem>>, vector<148x16xf32>
    tpu.vector_store %arg15[%c1_19, %c0_20], %19 {strides = array<i32>} : memref<150x16xf32, #tpu.memory_space<vmem>>, vector<148x16xf32>,
    %cst_21 = arith.constant 0.000000e+00 : f32
    %21 = vector.broadcast %cst_21 : f32 to vector<1x16xf32>
    %c1_22 = arith.constant 1 : index
    %c0_23 = arith.constant 0 : index
    %22 = vector.load %arg15[%c1_22, %c0_23] : memref<150x16xf32, #tpu.memory_space<vmem>>, vector<1x16xf32>
    tpu.vector_store %arg15[%c1_22, %c0_23], %21 {strides = array<i32>} : memref<150x16xf32, #tpu.memory_space<vmem>>, vector<1x16xf32>,
    %c74 = arith.constant 74 : index
    %c0_24 = arith.constant 0 : index
    %23 = vector.load %arg15[%c74, %c0_24] : memref<150x16xf32, #tpu.memory_space<vmem>>, vector<1x16xf32>
    tpu.vector_store %arg15[%c74, %c0_24], %21 {strides = array<i32>} : memref<150x16xf32, #tpu.memory_space<vmem>>, vector<1x16xf32>,
    %c75 = arith.constant 75 : index
    %c0_25 = arith.constant 0 : index
    %24 = vector.load %arg15[%c75, %c0_25] : memref<150x16xf32, #tpu.memory_space<vmem>>, vector<1x16xf32>
    tpu.vector_store %arg15[%c75, %c0_25], %21 {strides = array<i32>} : memref<150x16xf32, #tpu.memory_space<vmem>>, vector<1x16xf32>,
    %c148 = arith.constant 148 : index
    %c0_26 = arith.constant 0 : index
    %25 = vector.load %arg15[%c148, %c0_26] : memref<150x16xf32, #tpu.memory_space<vmem>>, vector<1x16xf32>
    tpu.vector_store %arg15[%c148, %c0_26], %21 {strides = array<i32>} : memref<150x16xf32, #tpu.memory_space<vmem>>, vector<1x16xf32>,
    %c1_27 = arith.constant 1 : index
    %c0_28 = arith.constant 0 : index
    %c0_29 = arith.constant 0 : index
    %26 = vector.load %arg1[%c1_27, %c0_28, %c0_29] : memref<6x48x16xbf16, #tpu.memory_space<vmem>>, vector<1x48x16xbf16>
    %27 = vector.shape_cast %26 : vector<1x48x16xbf16> to vector<48x16xbf16>
    %c1_30 = arith.constant 1 : index
    %c0_31 = arith.constant 0 : index
    %c0_32 = arith.constant 0 : index
    %28 = vector.load %arg2[%c1_30, %c0_31, %c0_32] : memref<6x1x16xf32, #tpu.memory_space<vmem>>, vector<1x1x16xf32>
    %29 = vector.shape_cast %28 : vector<1x1x16xf32> to vector<1x16xf32>
    %c0_33 = arith.constant 0 : index
    %c0_34 = arith.constant 0 : index
    %30 = vector.load %arg15[%c0_33, %c0_34] : memref<150x16xf32, #tpu.memory_space<vmem>>, vector<148x16xf32>
    %c1_35 = arith.constant 1 : index
    %c0_36 = arith.constant 0 : index
    %31 = vector.load %arg15[%c1_35, %c0_36] : memref<150x16xf32, #tpu.memory_space<vmem>>, vector<148x16xf32>
    %c2_37 = arith.constant 2 : index
    %c0_38 = arith.constant 0 : index
    %32 = vector.load %arg15[%c2_37, %c0_38] : memref<150x16xf32, #tpu.memory_space<vmem>>, vector<148x16xf32>
    %33 = tpu.concatenate %30, %31, %32 in 1 : vector<148x16xf32>, vector<148x16xf32>, vector<148x16xf32> -> vector<148x48xf32>
    %34 = arith.truncf %33 : vector<148x48xf32> to vector<148x48xbf16>
    %cst_39 = arith.constant dense<0.000000e+00> : vector<148x16xf32>
    %35 = tpu.matmul %34, %27, %cst_39 {dimension_numbers = #tpu.dot_dimension_numbers<[1], [0], [0], [1], [0, 0, 1, 1], [], []>} : vector<148x48xbf16>, vector<48x16xbf16>, vector<148x16xf32> -> vector<148x16xf32>
    %36 = vector.broadcast %29 : vector<1x16xf32> to vector<148x16xf32>
    %37 = arith.addf %35, %36 : vector<148x16xf32>
    %cst_40 = arith.constant 0.000000e+00 : f32
    %38 = vector.broadcast %cst_40 : f32 to vector<148x16xf32>
    %39 = arith.maximumf %37, %38 : vector<148x16xf32>
    %c1_41 = arith.constant 1 : index
    %c0_42 = arith.constant 0 : index
    %40 = vector.load %arg15[%c1_41, %c0_42] : memref<150x16xf32, #tpu.memory_space<vmem>>, vector<148x16xf32>
    tpu.vector_store %arg15[%c1_41, %c0_42], %39 {strides = array<i32>} : memref<150x16xf32, #tpu.memory_space<vmem>>, vector<148x16xf32>,
    %cst_43 = arith.constant 0.000000e+00 : f32
    %41 = vector.broadcast %cst_43 : f32 to vector<1x16xf32>
    %c1_44 = arith.constant 1 : index
    %c0_45 = arith.constant 0 : index
    %42 = vector.load %arg15[%c1_44, %c0_45] : memref<150x16xf32, #tpu.memory_space<vmem>>, vector<1x16xf32>
    tpu.vector_store %arg15[%c1_44, %c0_45], %41 {strides = array<i32>} : memref<150x16xf32, #tpu.memory_space<vmem>>, vector<1x16xf32>,
    %c74_46 = arith.constant 74 : index
    %c0_47 = arith.constant 0 : index
    %43 = vector.load %arg15[%c74_46, %c0_47] : memref<150x16xf32, #tpu.memory_space<vmem>>, vector<1x16xf32>
    tpu.vector_store %arg15[%c74_46, %c0_47], %41 {strides = array<i32>} : memref<150x16xf32, #tpu.memory_space<vmem>>, vector<1x16xf32>,
    %c75_48 = arith.constant 75 : index
    %c0_49 = arith.constant 0 : index
    %44 = vector.load %arg15[%c75_48, %c0_49] : memref<150x16xf32, #tpu.memory_space<vmem>>, vector<1x16xf32>
    tpu.vector_store %arg15[%c75_48, %c0_49], %41 {strides = array<i32>} : memref<150x16xf32, #tpu.memory_space<vmem>>, vector<1x16xf32>,
    %c148_50 = arith.constant 148 : index
    %c0_51 = arith.constant 0 : index
    %45 = vector.load %arg15[%c148_50, %c0_51] : memref<150x16xf32, #tpu.memory_space<vmem>>, vector<1x16xf32>
    tpu.vector_store %arg15[%c148_50, %c0_51], %41 {strides = array<i32>} : memref<150x16xf32, #tpu.memory_space<vmem>>, vector<1x16xf32>,
    %c1_52 = arith.constant 1 : index
    %c0_53 = arith.constant 0 : index
    %46 = tpu.strided_load %arg15[%c1_52, %c0_53] {strides = array<i32: 2, 1>} : memref<150x16xf32, #tpu.memory_space<vmem>>, vector<37x16xf32>
    %c2_54 = arith.constant 2 : index
    %c0_55 = arith.constant 0 : index
    %47 = tpu.strided_load %arg15[%c2_54, %c0_55] {strides = array<i32: 2, 1>} : memref<150x16xf32, #tpu.memory_space<vmem>>, vector<37x16xf32>
    %48 = arith.maximumf %46, %47 : vector<37x16xf32>
    %c2_56 = arith.constant 2 : index
    %c0_57 = arith.constant 0 : index
    %49 = vector.load %arg16[%c2_56, %c0_57] : memref<80x16xf32, #tpu.memory_space<vmem>>, vector<37x16xf32>
    tpu.vector_store %arg16[%c2_56, %c0_57], %48 {strides = array<i32>} : memref<80x16xf32, #tpu.memory_space<vmem>>, vector<37x16xf32>,
    %c75_58 = arith.constant 75 : index
    %c0_59 = arith.constant 0 : index
    %50 = tpu.strided_load %arg15[%c75_58, %c0_59] {strides = array<i32: 2, 1>} : memref<150x16xf32, #tpu.memory_space<vmem>>, vector<37x16xf32>
    %c76 = arith.constant 76 : index
    %c0_60 = arith.constant 0 : index
    %51 = tpu.strided_load %arg15[%c76, %c0_60] {strides = array<i32: 2, 1>} : memref<150x16xf32, #tpu.memory_space<vmem>>, vector<37x16xf32>
    %52 = arith.maximumf %50, %51 : vector<37x16xf32>
    %c41 = arith.constant 41 : index
    %c0_61 = arith.constant 0 : index
    %53 = vector.load %arg16[%c41, %c0_61] : memref<80x16xf32, #tpu.memory_space<vmem>>, vector<37x16xf32>
    tpu.vector_store %arg16[%c41, %c0_61], %52 {strides = array<i32>} : memref<80x16xf32, #tpu.memory_space<vmem>>, vector<37x16xf32>,
    %c2_62 = arith.constant 2 : index
    %c0_63 = arith.constant 0 : index
    %c0_64 = arith.constant 0 : index
    %54 = vector.load %arg1[%c2_62, %c0_63, %c0_64] : memref<6x48x16xbf16, #tpu.memory_space<vmem>>, vector<1x48x16xbf16>
    %55 = vector.shape_cast %54 : vector<1x48x16xbf16> to vector<48x16xbf16>
    %c2_65 = arith.constant 2 : index
    %c0_66 = arith.constant 0 : index
    %c0_67 = arith.constant 0 : index
    %56 = vector.load %arg2[%c2_65, %c0_66, %c0_67] : memref<6x1x16xf32, #tpu.memory_space<vmem>>, vector<1x1x16xf32>
    %57 = vector.shape_cast %56 : vector<1x1x16xf32> to vector<1x16xf32>
    %c0_68 = arith.constant 0 : index
    %c0_69 = arith.constant 0 : index
    %58 = vector.load %arg16[%c0_68, %c0_69] : memref<80x16xf32, #tpu.memory_space<vmem>>, vector<78x16xf32>
    %c1_70 = arith.constant 1 : index
    %c0_71 = arith.constant 0 : index
    %59 = vector.load %arg16[%c1_70, %c0_71] : memref<80x16xf32, #tpu.memory_space<vmem>>, vector<78x16xf32>
    %c2_72 = arith.constant 2 : index
    %c0_73 = arith.constant 0 : index
    %60 = vector.load %arg16[%c2_72, %c0_73] : memref<80x16xf32, #tpu.memory_space<vmem>>, vector<78x16xf32>
    %61 = tpu.concatenate %58, %59, %60 in 1 : vector<78x16xf32>, vector<78x16xf32>, vector<78x16xf32> -> vector<78x48xf32>
    %62 = arith.truncf %61 : vector<78x48xf32> to vector<78x48xbf16>
    %cst_74 = arith.constant dense<0.000000e+00> : vector<78x16xf32>
    %63 = tpu.matmul %62, %55, %cst_74 {dimension_numbers = #tpu.dot_dimension_numbers<[1], [0], [0], [1], [0, 0, 1, 1], [], []>} : vector<78x48xbf16>, vector<48x16xbf16>, vector<78x16xf32> -> vector<78x16xf32>
    %64 = vector.broadcast %57 : vector<1x16xf32> to vector<78x16xf32>
    %65 = arith.addf %63, %64 : vector<78x16xf32>
    %cst_75 = arith.constant 0.000000e+00 : f32
    %66 = vector.broadcast %cst_75 : f32 to vector<78x16xf32>
    %67 = arith.maximumf %65, %66 : vector<78x16xf32>
    %c1_76 = arith.constant 1 : index
    %c0_77 = arith.constant 0 : index
    %68 = vector.load %arg16[%c1_76, %c0_77] : memref<80x16xf32, #tpu.memory_space<vmem>>, vector<78x16xf32>
    tpu.vector_store %arg16[%c1_76, %c0_77], %67 {strides = array<i32>} : memref<80x16xf32, #tpu.memory_space<vmem>>, vector<78x16xf32>,
    %cst_78 = arith.constant 0.000000e+00 : f32
    %69 = vector.broadcast %cst_78 : f32 to vector<1x16xf32>
    %c1_79 = arith.constant 1 : index
    %c0_80 = arith.constant 0 : index
    %70 = vector.load %arg16[%c1_79, %c0_80] : memref<80x16xf32, #tpu.memory_space<vmem>>, vector<1x16xf32>
    tpu.vector_store %arg16[%c1_79, %c0_80], %69 {strides = array<i32>} : memref<80x16xf32, #tpu.memory_space<vmem>>, vector<1x16xf32>,
    %c39 = arith.constant 39 : index
    %c0_81 = arith.constant 0 : index
    %71 = vector.load %arg16[%c39, %c0_81] : memref<80x16xf32, #tpu.memory_space<vmem>>, vector<1x16xf32>
    tpu.vector_store %arg16[%c39, %c0_81], %69 {strides = array<i32>} : memref<80x16xf32, #tpu.memory_space<vmem>>, vector<1x16xf32>,
    %c40 = arith.constant 40 : index
    %c0_82 = arith.constant 0 : index
    %72 = vector.load %arg16[%c40, %c0_82] : memref<80x16xf32, #tpu.memory_space<vmem>>, vector<1x16xf32>
    tpu.vector_store %arg16[%c40, %c0_82], %69 {strides = array<i32>} : memref<80x16xf32, #tpu.memory_space<vmem>>, vector<1x16xf32>,
    %c78 = arith.constant 78 : index
    %c0_83 = arith.constant 0 : index
    %73 = vector.load %arg16[%c78, %c0_83] : memref<80x16xf32, #tpu.memory_space<vmem>>, vector<1x16xf32>
    tpu.vector_store %arg16[%c78, %c0_83], %69 {strides = array<i32>} : memref<80x16xf32, #tpu.memory_space<vmem>>, vector<1x16xf32>,
    %c3 = arith.constant 3 : index
    %c0_84 = arith.constant 0 : index
    %c0_85 = arith.constant 0 : index
    %74 = vector.load %arg1[%c3, %c0_84, %c0_85] : memref<6x48x16xbf16, #tpu.memory_space<vmem>>, vector<1x48x16xbf16>
    %75 = vector.shape_cast %74 : vector<1x48x16xbf16> to vector<48x16xbf16>
    %c3_86 = arith.constant 3 : index
    %c0_87 = arith.constant 0 : index
    %c0_88 = arith.constant 0 : index
    %76 = vector.load %arg2[%c3_86, %c0_87, %c0_88] : memref<6x1x16xf32, #tpu.memory_space<vmem>>, vector<1x1x16xf32>
    %77 = vector.shape_cast %76 : vector<1x1x16xf32> to vector<1x16xf32>
    %c0_89 = arith.constant 0 : index
    %c0_90 = arith.constant 0 : index
    %78 = vector.load %arg16[%c0_89, %c0_90] : memref<80x16xf32, #tpu.memory_space<vmem>>, vector<78x16xf32>
    %c1_91 = arith.constant 1 : index
    %c0_92 = arith.constant 0 : index
    %79 = vector.load %arg16[%c1_91, %c0_92] : memref<80x16xf32, #tpu.memory_space<vmem>>, vector<78x16xf32>
    %c2_93 = arith.constant 2 : index
    %c0_94 = arith.constant 0 : index
    %80 = vector.load %arg16[%c2_93, %c0_94] : memref<80x16xf32, #tpu.memory_space<vmem>>, vector<78x16xf32>
    %81 = tpu.concatenate %78, %79, %80 in 1 : vector<78x16xf32>, vector<78x16xf32>, vector<78x16xf32> -> vector<78x48xf32>
    %82 = arith.truncf %81 : vector<78x48xf32> to vector<78x48xbf16>
    %cst_95 = arith.constant dense<0.000000e+00> : vector<78x16xf32>
    %83 = tpu.matmul %82, %75, %cst_95 {dimension_numbers = #tpu.dot_dimension_numbers<[1], [0], [0], [1], [0, 0, 1, 1], [], []>} : vector<78x48xbf16>, vector<48x16xbf16>, vector<78x16xf32> -> vector<78x16xf32>
    %84 = vector.broadcast %77 : vector<1x16xf32> to vector<78x16xf32>
    %85 = arith.addf %83, %84 : vector<78x16xf32>
    %cst_96 = arith.constant 0.000000e+00 : f32
    %86 = vector.broadcast %cst_96 : f32 to vector<78x16xf32>
    %87 = arith.maximumf %85, %86 : vector<78x16xf32>
    %c1_97 = arith.constant 1 : index
    %c0_98 = arith.constant 0 : index
    %88 = vector.load %arg16[%c1_97, %c0_98] : memref<80x16xf32, #tpu.memory_space<vmem>>, vector<78x16xf32>
    tpu.vector_store %arg16[%c1_97, %c0_98], %87 {strides = array<i32>} : memref<80x16xf32, #tpu.memory_space<vmem>>, vector<78x16xf32>,
    %cst_99 = arith.constant 0.000000e+00 : f32
    %89 = vector.broadcast %cst_99 : f32 to vector<1x16xf32>
    %c1_100 = arith.constant 1 : index
    %c0_101 = arith.constant 0 : index
    %90 = vector.load %arg16[%c1_100, %c0_101] : memref<80x16xf32, #tpu.memory_space<vmem>>, vector<1x16xf32>
    tpu.vector_store %arg16[%c1_100, %c0_101], %89 {strides = array<i32>} : memref<80x16xf32, #tpu.memory_space<vmem>>, vector<1x16xf32>,
    %c39_102 = arith.constant 39 : index
    %c0_103 = arith.constant 0 : index
    %91 = vector.load %arg16[%c39_102, %c0_103] : memref<80x16xf32, #tpu.memory_space<vmem>>, vector<1x16xf32>
    tpu.vector_store %arg16[%c39_102, %c0_103], %89 {strides = array<i32>} : memref<80x16xf32, #tpu.memory_space<vmem>>, vector<1x16xf32>,
    %c40_104 = arith.constant 40 : index
    %c0_105 = arith.constant 0 : index
    %92 = vector.load %arg16[%c40_104, %c0_105] : memref<80x16xf32, #tpu.memory_space<vmem>>, vector<1x16xf32>
    tpu.vector_store %arg16[%c40_104, %c0_105], %89 {strides = array<i32>} : memref<80x16xf32, #tpu.memory_space<vmem>>, vector<1x16xf32>,
    %c78_106 = arith.constant 78 : index
    %c0_107 = arith.constant 0 : index
    %93 = vector.load %arg16[%c78_106, %c0_107] : memref<80x16xf32, #tpu.memory_space<vmem>>, vector<1x16xf32>
    tpu.vector_store %arg16[%c78_106, %c0_107], %89 {strides = array<i32>} : memref<80x16xf32, #tpu.memory_space<vmem>>, vector<1x16xf32>,
    %c1_108 = arith.constant 1 : index
    %c0_109 = arith.constant 0 : index
    %94 = tpu.strided_load %arg16[%c1_108, %c0_109] {strides = array<i32: 2, 1>} : memref<80x16xf32, #tpu.memory_space<vmem>>, vector<19x16xf32>
    %c2_110 = arith.constant 2 : index
    %c0_111 = arith.constant 0 : index
    %95 = tpu.strided_load %arg16[%c2_110, %c0_111] {strides = array<i32: 2, 1>} : memref<80x16xf32, #tpu.memory_space<vmem>>, vector<19x16xf32>
    %96 = arith.maximumf %94, %95 : vector<19x16xf32>
    %c2_112 = arith.constant 2 : index
    %c0_113 = arith.constant 0 : index
    %97 = vector.load %arg17[%c2_112, %c0_113] : memref<44x16xf32, #tpu.memory_space<vmem>>, vector<19x16xf32>
    tpu.vector_store %arg17[%c2_112, %c0_113], %96 {strides = array<i32>} : memref<44x16xf32, #tpu.memory_space<vmem>>, vector<19x16xf32>,
    %c40_114 = arith.constant 40 : index
    %c0_115 = arith.constant 0 : index
    %98 = tpu.strided_load %arg16[%c40_114, %c0_115] {strides = array<i32: 2, 1>} : memref<80x16xf32, #tpu.memory_space<vmem>>, vector<19x16xf32>
    %c41_116 = arith.constant 41 : index
    %c0_117 = arith.constant 0 : index
    %99 = tpu.strided_load %arg16[%c41_116, %c0_117] {strides = array<i32: 2, 1>} : memref<80x16xf32, #tpu.memory_space<vmem>>, vector<19x16xf32>
    %100 = arith.maximumf %98, %99 : vector<19x16xf32>
    %c23 = arith.constant 23 : index
    %c0_118 = arith.constant 0 : index
    %101 = vector.load %arg17[%c23, %c0_118] : memref<44x16xf32, #tpu.memory_space<vmem>>, vector<19x16xf32>
    tpu.vector_store %arg17[%c23, %c0_118], %100 {strides = array<i32>} : memref<44x16xf32, #tpu.memory_space<vmem>>, vector<19x16xf32>,
    %c4 = arith.constant 4 : index
    %c0_119 = arith.constant 0 : index
    %c0_120 = arith.constant 0 : index
    %102 = vector.load %arg1[%c4, %c0_119, %c0_120] : memref<6x48x16xbf16, #tpu.memory_space<vmem>>, vector<1x48x16xbf16>
    %103 = vector.shape_cast %102 : vector<1x48x16xbf16> to vector<48x16xbf16>
    %c4_121 = arith.constant 4 : index
    %c0_122 = arith.constant 0 : index
    %c0_123 = arith.constant 0 : index
    %104 = vector.load %arg2[%c4_121, %c0_122, %c0_123] : memref<6x1x16xf32, #tpu.memory_space<vmem>>, vector<1x1x16xf32>
    %105 = vector.shape_cast %104 : vector<1x1x16xf32> to vector<1x16xf32>
    %c0_124 = arith.constant 0 : index
    %c0_125 = arith.constant 0 : index
    %106 = vector.load %arg17[%c0_124, %c0_125] : memref<44x16xf32, #tpu.memory_space<vmem>>, vector<42x16xf32>
    %c1_126 = arith.constant 1 : index
    %c0_127 = arith.constant 0 : index
    %107 = vector.load %arg17[%c1_126, %c0_127] : memref<44x16xf32, #tpu.memory_space<vmem>>, vector<42x16xf32>
    %c2_128 = arith.constant 2 : index
    %c0_129 = arith.constant 0 : index
    %108 = vector.load %arg17[%c2_128, %c0_129] : memref<44x16xf32, #tpu.memory_space<vmem>>, vector<42x16xf32>
    %109 = tpu.concatenate %106, %107, %108 in 1 : vector<42x16xf32>, vector<42x16xf32>, vector<42x16xf32> -> vector<42x48xf32>
    %110 = arith.truncf %109 : vector<42x48xf32> to vector<42x48xbf16>
    %cst_130 = arith.constant dense<0.000000e+00> : vector<42x16xf32>
    %111 = tpu.matmul %110, %103, %cst_130 {dimension_numbers = #tpu.dot_dimension_numbers<[1], [0], [0], [1], [0, 0, 1, 1], [], []>} : vector<42x48xbf16>, vector<48x16xbf16>, vector<42x16xf32> -> vector<42x16xf32>
    %112 = vector.broadcast %105 : vector<1x16xf32> to vector<42x16xf32>
    %113 = arith.addf %111, %112 : vector<42x16xf32>
    %cst_131 = arith.constant 0.000000e+00 : f32
    %114 = vector.broadcast %cst_131 : f32 to vector<42x16xf32>
    %115 = arith.maximumf %113, %114 : vector<42x16xf32>
    %c1_132 = arith.constant 1 : index
    %c0_133 = arith.constant 0 : index
    %116 = vector.load %arg17[%c1_132, %c0_133] : memref<44x16xf32, #tpu.memory_space<vmem>>, vector<42x16xf32>
    tpu.vector_store %arg17[%c1_132, %c0_133], %115 {strides = array<i32>} : memref<44x16xf32, #tpu.memory_space<vmem>>, vector<42x16xf32>,
    %cst_134 = arith.constant 0.000000e+00 : f32
    %117 = vector.broadcast %cst_134 : f32 to vector<1x16xf32>
    %c1_135 = arith.constant 1 : index
    %c0_136 = arith.constant 0 : index
    %118 = vector.load %arg17[%c1_135, %c0_136] : memref<44x16xf32, #tpu.memory_space<vmem>>, vector<1x16xf32>
    tpu.vector_store %arg17[%c1_135, %c0_136], %117 {strides = array<i32>} : memref<44x16xf32, #tpu.memory_space<vmem>>, vector<1x16xf32>,
    %c21 = arith.constant 21 : index
    %c0_137 = arith.constant 0 : index
    %119 = vector.load %arg17[%c21, %c0_137] : memref<44x16xf32, #tpu.memory_space<vmem>>, vector<1x16xf32>
    tpu.vector_store %arg17[%c21, %c0_137], %117 {strides = array<i32>} : memref<44x16xf32, #tpu.memory_space<vmem>>, vector<1x16xf32>,
    %c22 = arith.constant 22 : index
    %c0_138 = arith.constant 0 : index
    %120 = vector.load %arg17[%c22, %c0_138] : memref<44x16xf32, #tpu.memory_space<vmem>>, vector<1x16xf32>
    tpu.vector_store %arg17[%c22, %c0_138], %117 {strides = array<i32>} : memref<44x16xf32, #tpu.memory_space<vmem>>, vector<1x16xf32>,
    %c42 = arith.constant 42 : index
    %c0_139 = arith.constant 0 : index
    %121 = vector.load %arg17[%c42, %c0_139] : memref<44x16xf32, #tpu.memory_space<vmem>>, vector<1x16xf32>
    tpu.vector_store %arg17[%c42, %c0_139], %117 {strides = array<i32>} : memref<44x16xf32, #tpu.memory_space<vmem>>, vector<1x16xf32>,
    %c5 = arith.constant 5 : index
    %c0_140 = arith.constant 0 : index
    %c0_141 = arith.constant 0 : index
    %122 = vector.load %arg1[%c5, %c0_140, %c0_141] : memref<6x48x16xbf16, #tpu.memory_space<vmem>>, vector<1x48x16xbf16>
    %123 = vector.shape_cast %122 : vector<1x48x16xbf16> to vector<48x16xbf16>
    %c5_142 = arith.constant 5 : index
    %c0_143 = arith.constant 0 : index
    %c0_144 = arith.constant 0 : index
    %124 = vector.load %arg2[%c5_142, %c0_143, %c0_144] : memref<6x1x16xf32, #tpu.memory_space<vmem>>, vector<1x1x16xf32>
    %125 = vector.shape_cast %124 : vector<1x1x16xf32> to vector<1x16xf32>
    %c0_145 = arith.constant 0 : index
    %c0_146 = arith.constant 0 : index
    %126 = vector.load %arg17[%c0_145, %c0_146] : memref<44x16xf32, #tpu.memory_space<vmem>>, vector<42x16xf32>
    %c1_147 = arith.constant 1 : index
    %c0_148 = arith.constant 0 : index
    %127 = vector.load %arg17[%c1_147, %c0_148] : memref<44x16xf32, #tpu.memory_space<vmem>>, vector<42x16xf32>
    %c2_149 = arith.constant 2 : index
    %c0_150 = arith.constant 0 : index
    %128 = vector.load %arg17[%c2_149, %c0_150] : memref<44x16xf32, #tpu.memory_space<vmem>>, vector<42x16xf32>
    %129 = tpu.concatenate %126, %127, %128 in 1 : vector<42x16xf32>, vector<42x16xf32>, vector<42x16xf32> -> vector<42x48xf32>
    %130 = arith.truncf %129 : vector<42x48xf32> to vector<42x48xbf16>
    %cst_151 = arith.constant dense<0.000000e+00> : vector<42x16xf32>
    %131 = tpu.matmul %130, %123, %cst_151 {dimension_numbers = #tpu.dot_dimension_numbers<[1], [0], [0], [1], [0, 0, 1, 1], [], []>} : vector<42x48xbf16>, vector<48x16xbf16>, vector<42x16xf32> -> vector<42x16xf32>
    %132 = vector.broadcast %125 : vector<1x16xf32> to vector<42x16xf32>
    %133 = arith.addf %131, %132 : vector<42x16xf32>
    %cst_152 = arith.constant 0.000000e+00 : f32
    %134 = vector.broadcast %cst_152 : f32 to vector<42x16xf32>
    %135 = arith.maximumf %133, %134 : vector<42x16xf32>
    %c1_153 = arith.constant 1 : index
    %c0_154 = arith.constant 0 : index
    %136 = vector.load %arg17[%c1_153, %c0_154] : memref<44x16xf32, #tpu.memory_space<vmem>>, vector<42x16xf32>
    tpu.vector_store %arg17[%c1_153, %c0_154], %135 {strides = array<i32>} : memref<44x16xf32, #tpu.memory_space<vmem>>, vector<42x16xf32>,
    %cst_155 = arith.constant 0.000000e+00 : f32
    %137 = vector.broadcast %cst_155 : f32 to vector<1x16xf32>
    %c1_156 = arith.constant 1 : index
    %c0_157 = arith.constant 0 : index
    %138 = vector.load %arg17[%c1_156, %c0_157] : memref<44x16xf32, #tpu.memory_space<vmem>>, vector<1x16xf32>
    tpu.vector_store %arg17[%c1_156, %c0_157], %137 {strides = array<i32>} : memref<44x16xf32, #tpu.memory_space<vmem>>, vector<1x16xf32>,
    %c21_158 = arith.constant 21 : index
    %c0_159 = arith.constant 0 : index
    %139 = vector.load %arg17[%c21_158, %c0_159] : memref<44x16xf32, #tpu.memory_space<vmem>>, vector<1x16xf32>
    tpu.vector_store %arg17[%c21_158, %c0_159], %137 {strides = array<i32>} : memref<44x16xf32, #tpu.memory_space<vmem>>, vector<1x16xf32>,
    %c22_160 = arith.constant 22 : index
    %c0_161 = arith.constant 0 : index
    %140 = vector.load %arg17[%c22_160, %c0_161] : memref<44x16xf32, #tpu.memory_space<vmem>>, vector<1x16xf32>
    tpu.vector_store %arg17[%c22_160, %c0_161], %137 {strides = array<i32>} : memref<44x16xf32, #tpu.memory_space<vmem>>, vector<1x16xf32>,
    %c42_162 = arith.constant 42 : index
    %c0_163 = arith.constant 0 : index
    %141 = vector.load %arg17[%c42_162, %c0_163] : memref<44x16xf32, #tpu.memory_space<vmem>>, vector<1x16xf32>
    tpu.vector_store %arg17[%c42_162, %c0_163], %137 {strides = array<i32>} : memref<44x16xf32, #tpu.memory_space<vmem>>, vector<1x16xf32>,
    %c0_164 = arith.constant 0 : index
    %c0_165 = arith.constant 0 : index
    %142 = vector.load %arg3[%c0_164, %c0_165] : memref<16x128xbf16, #tpu.memory_space<vmem>>, vector<16x128xbf16>
    %c0_166 = arith.constant 0 : index
    %c0_167 = arith.constant 0 : index
    %143 = vector.load %arg4[%c0_166, %c0_167] : memref<16x128xbf16, #tpu.memory_space<vmem>>, vector<16x128xbf16>
    %c1_168 = arith.constant 1 : index
    %c0_169 = arith.constant 0 : index
    %144 = tpu.strided_load %arg17[%c1_168, %c0_169] {strides = array<i32: 2, 1>} : memref<44x16xf32, #tpu.memory_space<vmem>>, vector<10x16xf32>
    %c2_170 = arith.constant 2 : index
    %c0_171 = arith.constant 0 : index
    %145 = tpu.strided_load %arg17[%c2_170, %c0_171] {strides = array<i32: 2, 1>} : memref<44x16xf32, #tpu.memory_space<vmem>>, vector<10x16xf32>
    %146 = arith.maximumf %144, %145 : vector<10x16xf32>
    %147 = arith.truncf %146 : vector<10x16xf32> to vector<10x16xbf16>
    %cst_172 = arith.constant dense<0.000000e+00> : vector<10x128xf32>
    %148 = tpu.matmul %147, %142, %cst_172 {dimension_numbers = #tpu.dot_dimension_numbers<[1], [0], [0], [1], [0, 0, 1, 1], [], []>} : vector<10x16xbf16>, vector<16x128xbf16>, vector<10x128xf32> -> vector<10x128xf32>
    %c0_173 = arith.constant 0 : index
    %c0_174 = arith.constant 0 : index
    %149 = vector.load %arg5[%c0_173, %c0_174] : memref<1x128xf32, #tpu.memory_space<vmem>>, vector<1x128xf32>
    %150 = vector.broadcast %149 : vector<1x128xf32> to vector<10x128xf32>
    %151 = arith.addf %148, %150 : vector<10x128xf32>
    %c0_175 = arith.constant 0 : index
    %c0_176 = arith.constant 0 : index
    %152 = vector.load %arg18[%c0_175, %c0_176] : memref<20x128xf32, #tpu.memory_space<vmem>>, vector<10x128xf32>
    tpu.vector_store %arg18[%c0_175, %c0_176], %151 {strides = array<i32>} : memref<20x128xf32, #tpu.memory_space<vmem>>, vector<10x128xf32>,
    %cst_177 = arith.constant dense<0.000000e+00> : vector<10x128xf32>
    %153 = tpu.matmul %147, %143, %cst_177 {dimension_numbers = #tpu.dot_dimension_numbers<[1], [0], [0], [1], [0, 0, 1, 1], [], []>} : vector<10x16xbf16>, vector<16x128xbf16>, vector<10x128xf32> -> vector<10x128xf32>
    %c0_178 = arith.constant 0 : index
    %c0_179 = arith.constant 0 : index
    %154 = vector.load %arg6[%c0_178, %c0_179] : memref<1x128xf32, #tpu.memory_space<vmem>>, vector<1x128xf32>
    %155 = vector.broadcast %154 : vector<1x128xf32> to vector<10x128xf32>
    %156 = arith.addf %153, %155 : vector<10x128xf32>
    %c0_180 = arith.constant 0 : index
    %c0_181 = arith.constant 0 : index
    %157 = vector.load %arg19[%c0_180, %c0_181] : memref<20x128xf32, #tpu.memory_space<vmem>>, vector<10x128xf32>
    tpu.vector_store %arg19[%c0_180, %c0_181], %156 {strides = array<i32>} : memref<20x128xf32, #tpu.memory_space<vmem>>, vector<10x128xf32>,
    %c22_182 = arith.constant 22 : index
    %c0_183 = arith.constant 0 : index
    %158 = tpu.strided_load %arg17[%c22_182, %c0_183] {strides = array<i32: 2, 1>} : memref<44x16xf32, #tpu.memory_space<vmem>>, vector<10x16xf32>
    %c23_184 = arith.constant 23 : index
    %c0_185 = arith.constant 0 : index
    %159 = tpu.strided_load %arg17[%c23_184, %c0_185] {strides = array<i32: 2, 1>} : memref<44x16xf32, #tpu.memory_space<vmem>>, vector<10x16xf32>
    %160 = arith.maximumf %158, %159 : vector<10x16xf32>
    %161 = arith.truncf %160 : vector<10x16xf32> to vector<10x16xbf16>
    %cst_186 = arith.constant dense<0.000000e+00> : vector<10x128xf32>
    %162 = tpu.matmul %161, %142, %cst_186 {dimension_numbers = #tpu.dot_dimension_numbers<[1], [0], [0], [1], [0, 0, 1, 1], [], []>} : vector<10x16xbf16>, vector<16x128xbf16>, vector<10x128xf32> -> vector<10x128xf32>
    %c0_187 = arith.constant 0 : index
    %c0_188 = arith.constant 0 : index
    %163 = vector.load %arg5[%c0_187, %c0_188] : memref<1x128xf32, #tpu.memory_space<vmem>>, vector<1x128xf32>
    %164 = vector.broadcast %163 : vector<1x128xf32> to vector<10x128xf32>
    %165 = arith.addf %162, %164 : vector<10x128xf32>
    %c10 = arith.constant 10 : index
    %c0_189 = arith.constant 0 : index
    %166 = vector.load %arg18[%c10, %c0_189] : memref<20x128xf32, #tpu.memory_space<vmem>>, vector<10x128xf32>
    tpu.vector_store %arg18[%c10, %c0_189], %165 {strides = array<i32>} : memref<20x128xf32, #tpu.memory_space<vmem>>, vector<10x128xf32>,
    %cst_190 = arith.constant dense<0.000000e+00> : vector<10x128xf32>
    %167 = tpu.matmul %161, %143, %cst_190 {dimension_numbers = #tpu.dot_dimension_numbers<[1], [0], [0], [1], [0, 0, 1, 1], [], []>} : vector<10x16xbf16>, vector<16x128xbf16>, vector<10x128xf32> -> vector<10x128xf32>
    %c0_191 = arith.constant 0 : index
    %c0_192 = arith.constant 0 : index
    %168 = vector.load %arg6[%c0_191, %c0_192] : memref<1x128xf32, #tpu.memory_space<vmem>>, vector<1x128xf32>
    %169 = vector.broadcast %168 : vector<1x128xf32> to vector<10x128xf32>
    %170 = arith.addf %167, %169 : vector<10x128xf32>
    %c10_193 = arith.constant 10 : index
    %c0_194 = arith.constant 0 : index
    %171 = vector.load %arg19[%c10_193, %c0_194] : memref<20x128xf32, #tpu.memory_space<vmem>>, vector<10x128xf32>
    tpu.vector_store %arg19[%c10_193, %c0_194], %170 {strides = array<i32>} : memref<20x128xf32, #tpu.memory_space<vmem>>, vector<10x128xf32>,
    %c0_195 = arith.constant 0 : index
    %c0_196 = arith.constant 0 : index
    %172 = vector.load %arg7[%c0_195, %c0_196] : memref<64x128xf32, #tpu.memory_space<vmem>>, vector<64x128xf32>
    %173 = tpu.iota {dimensions = array<i32: 0>} : vector<4x1xi32>
    %c2_i32 = arith.constant 2 : i32
    %174 = vector.broadcast %c2_i32 : i32 to vector<4x1xi32>
    %175 = arith.cmpi slt, %173, %174 : vector<4x1xi32>
    %cst_197 = arith.constant 0.000000e+00 : f32
    %176 = vector.broadcast %cst_197 : f32 to vector<4x32xf32>
    %cst_198 = arith.constant 0.000000e+00 : f32
    %177 = vector.broadcast %cst_198 : f32 to vector<2x128xf32>
    %c0_199 = arith.constant 0 : index
    %c0_200 = arith.constant 0 : index
    %178 = tpu.strided_load %arg18[%c0_199, %c0_200] {strides = array<i32: 10, 1>} : memref<20x128xf32, #tpu.memory_space<vmem>>, vector<2x128xf32>
    %c9 = arith.constant 9 : index
    %c0_201 = arith.constant 0 : index
    %179 = tpu.strided_load %arg19[%c9, %c0_201] {strides = array<i32: 10, 1>} : memref<20x128xf32, #tpu.memory_space<vmem>>, vector<2x128xf32>
    %180 = tpu.concatenate %178, %179 in 0 : vector<2x128xf32>, vector<2x128xf32> -> vector<4x128xf32>
    %181 = vector.extract_strided_slice %180 {offsets = [0, 0], sizes = [4, 32], strides = [1, 1]} : vector<4x128xf32> to vector<4x32xf32>
    %182 = arith.negf %181 : vector<4x32xf32>
    %183 = math.exp %182 : vector<4x32xf32>
    %cst_202 = arith.constant 1.000000e+00 : f32
    %184 = vector.broadcast %cst_202 : f32 to vector<4x32xf32>
    %185 = arith.addf %184, %183 : vector<4x32xf32>
    %186 = arith.divf %184, %185 : vector<4x32xf32>
    %187 = vector.extract_strided_slice %180 {offsets = [0, 32], sizes = [4, 32], strides = [1, 1]} : vector<4x128xf32> to vector<4x32xf32>
    %188 = arith.negf %187 : vector<4x32xf32>
    %189 = math.exp %188 : vector<4x32xf32>
    %cst_203 = arith.constant 1.000000e+00 : f32
    %190 = vector.broadcast %cst_203 : f32 to vector<4x32xf32>
    %191 = arith.addf %190, %189 : vector<4x32xf32>
    %192 = arith.divf %190, %191 : vector<4x32xf32>
    %193 = vector.extract_strided_slice %180 {offsets = [0, 64], sizes = [4, 32], strides = [1, 1]} : vector<4x128xf32> to vector<4x32xf32>
    %194 = math.tanh %193 : vector<4x32xf32>
    %195 = vector.extract_strided_slice %180 {offsets = [0, 96], sizes = [4, 32], strides = [1, 1]} : vector<4x128xf32> to vector<4x32xf32>
    %196 = arith.negf %195 : vector<4x32xf32>
    %197 = math.exp %196 : vector<4x32xf32>
    %cst_204 = arith.constant 1.000000e+00 : f32
    %198 = vector.broadcast %cst_204 : f32 to vector<4x32xf32>
    %199 = arith.addf %198, %197 : vector<4x32xf32>
    %200 = arith.divf %198, %199 : vector<4x32xf32>
    %201 = arith.mulf %192, %176 : vector<4x32xf32>
    %202 = arith.mulf %186, %194 : vector<4x32xf32>
    %203 = arith.addf %201, %202 : vector<4x32xf32>
    %204 = math.tanh %203 : vector<4x32xf32>
    %205 = arith.mulf %200, %204 : vector<4x32xf32>
    %cst_205 = arith.constant 0.000000e+00 : f32
    %206 = vector.shape_cast %175 : vector<4x1xi1> to vector<4x1xi1>
    %207 = vector.broadcast %206 : vector<4x1xi1> to vector<4x32xi1>
    %208 = vector.broadcast %cst_205 : f32 to vector<4x32xf32>
    %209 = arith.select %207, %205, %208 : vector<4x32xi1>, vector<4x32xf32>
    %cst_206 = arith.constant 0.000000e+00 : f32
    %210 = vector.shape_cast %175 : vector<4x1xi1> to vector<4x1xi1>
    %211 = vector.broadcast %210 : vector<4x1xi1> to vector<4x32xi1>
    %212 = vector.broadcast %cst_206 : f32 to vector<4x32xf32>
    %213 = arith.select %211, %212, %205 : vector<4x32xi1>, vector<4x32xf32>
    %214 = tpu.concatenate %209, %213 in 1 : vector<4x32xf32>, vector<4x32xf32> -> vector<4x64xf32>
    %c0_207 = arith.constant 0 : index
    %c0_208 = arith.constant 0 : index
    %215 = vector.load %arg8[%c0_207, %c0_208] : memref<640x128xbf16, #tpu.memory_space<vmem>>, vector<32x128xbf16>
    %c608 = arith.constant 608 : index
    %c0_209 = arith.constant 0 : index
    %216 = vector.load %arg8[%c608, %c0_209] : memref<640x128xbf16, #tpu.memory_space<vmem>>, vector<32x128xbf16>
    %217 = tpu.concatenate %215, %216 in 0 : vector<32x128xbf16>, vector<32x128xbf16> -> vector<64x128xbf16>
    %218 = arith.truncf %214 : vector<4x64xf32> to vector<4x64xbf16>
    %cst_210 = arith.constant dense<0.000000e+00> : vector<4x128xf32>
    %219 = tpu.matmul %218, %217, %cst_210 {dimension_numbers = #tpu.dot_dimension_numbers<[1], [0], [0], [1], [0, 0, 1, 1], [], []>} : vector<4x64xbf16>, vector<64x128xbf16>, vector<4x128xf32> -> vector<4x128xf32>
    %220 = vector.extract_strided_slice %219 {offsets = [0, 0], sizes = [2, 128], strides = [1, 1]} : vector<4x128xf32> to vector<2x128xf32>
    %221 = arith.addf %177, %220 : vector<2x128xf32>
    %222 = vector.extract_strided_slice %219 {offsets = [2, 0], sizes = [2, 128], strides = [1, 1]} : vector<4x128xf32> to vector<2x128xf32>
    %223 = arith.addf %221, %222 : vector<2x128xf32>
    %c1_211 = arith.constant 1 : index
    %c0_212 = arith.constant 0 : index
    %224 = tpu.strided_load %arg18[%c1_211, %c0_212] {strides = array<i32: 10, 1>} : memref<20x128xf32, #tpu.memory_space<vmem>>, vector<2x128xf32>
    %c8 = arith.constant 8 : index
    %c0_213 = arith.constant 0 : index
    %225 = tpu.strided_load %arg19[%c8, %c0_213] {strides = array<i32: 10, 1>} : memref<20x128xf32, #tpu.memory_space<vmem>>, vector<2x128xf32>
    %226 = tpu.concatenate %224, %225 in 0 : vector<2x128xf32>, vector<2x128xf32> -> vector<4x128xf32>
    %cst_214 = arith.constant dense<0.000000e+00> : vector<4x128xf32>
    %227 = tpu.matmul %214, %172, %cst_214 {dimension_numbers = #tpu.dot_dimension_numbers<[1], [0], [0], [1], [0, 0, 1, 1], [], []>} : vector<4x64xf32>, vector<64x128xf32>, vector<4x128xf32> -> vector<4x128xf32>
    %228 = arith.addf %226, %227 : vector<4x128xf32>
    %229 = vector.extract_strided_slice %228 {offsets = [0, 0], sizes = [4, 32], strides = [1, 1]} : vector<4x128xf32> to vector<4x32xf32>
    %230 = arith.negf %229 : vector<4x32xf32>
    %231 = math.exp %230 : vector<4x32xf32>
    %cst_215 = arith.constant 1.000000e+00 : f32
    %232 = vector.broadcast %cst_215 : f32 to vector<4x32xf32>
    %233 = arith.addf %232, %231 : vector<4x32xf32>
    %234 = arith.divf %232, %233 : vector<4x32xf32>
    %235 = vector.extract_strided_slice %228 {offsets = [0, 32], sizes = [4, 32], strides = [1, 1]} : vector<4x128xf32> to vector<4x32xf32>
    %236 = arith.negf %235 : vector<4x32xf32>
    %237 = math.exp %236 : vector<4x32xf32>
    %cst_216 = arith.constant 1.000000e+00 : f32
    %238 = vector.broadcast %cst_216 : f32 to vector<4x32xf32>
    %239 = arith.addf %238, %237 : vector<4x32xf32>
    %240 = arith.divf %238, %239 : vector<4x32xf32>
    %241 = vector.extract_strided_slice %228 {offsets = [0, 64], sizes = [4, 32], strides = [1, 1]} : vector<4x128xf32> to vector<4x32xf32>
    %242 = math.tanh %241 : vector<4x32xf32>
    %243 = vector.extract_strided_slice %228 {offsets = [0, 96], sizes = [4, 32], strides = [1, 1]} : vector<4x128xf32> to vector<4x32xf32>
    %244 = arith.negf %243 : vector<4x32xf32>
    %245 = math.exp %244 : vector<4x32xf32>
    %cst_217 = arith.constant 1.000000e+00 : f32
    %246 = vector.broadcast %cst_217 : f32 to vector<4x32xf32>
    %247 = arith.addf %246, %245 : vector<4x32xf32>
    %248 = arith.divf %246, %247 : vector<4x32xf32>
    %249 = arith.mulf %240, %203 : vector<4x32xf32>
    %250 = arith.mulf %234, %242 : vector<4x32xf32>
    %251 = arith.addf %249, %250 : vector<4x32xf32>
    %252 = math.tanh %251 : vector<4x32xf32>
    %253 = arith.mulf %248, %252 : vector<4x32xf32>
    %cst_218 = arith.constant 0.000000e+00 : f32
    %254 = vector.shape_cast %175 : vector<4x1xi1> to vector<4x1xi1>
    %255 = vector.broadcast %254 : vector<4x1xi1> to vector<4x32xi1>
    %256 = vector.broadcast %cst_218 : f32 to vector<4x32xf32>
    %257 = arith.select %255, %253, %256 : vector<4x32xi1>, vector<4x32xf32>
    %cst_219 = arith.constant 0.000000e+00 : f32
    %258 = vector.shape_cast %175 : vector<4x1xi1> to vector<4x1xi1>
    %259 = vector.broadcast %258 : vector<4x1xi1> to vector<4x32xi1>
    %260 = vector.broadcast %cst_219 : f32 to vector<4x32xf32>
    %261 = arith.select %259, %260, %253 : vector<4x32xi1>, vector<4x32xf32>
    %262 = tpu.concatenate %257, %261 in 1 : vector<4x32xf32>, vector<4x32xf32> -> vector<4x64xf32>
    %c64 = arith.constant 64 : index
    %c0_220 = arith.constant 0 : index
    %263 = vector.load %arg8[%c64, %c0_220] : memref<640x128xbf16, #tpu.memory_space<vmem>>, vector<32x128xbf16>
    %c544 = arith.constant 544 : index
    %c0_221 = arith.constant 0 : index
    %264 = vector.load %arg8[%c544, %c0_221] : memref<640x128xbf16, #tpu.memory_space<vmem>>, vector<32x128xbf16>
    %265 = tpu.concatenate %263, %264 in 0 : vector<32x128xbf16>, vector<32x128xbf16> -> vector<64x128xbf16>
    %266 = arith.truncf %262 : vector<4x64xf32> to vector<4x64xbf16>
    %cst_222 = arith.constant dense<0.000000e+00> : vector<4x128xf32>
    %267 = tpu.matmul %266, %265, %cst_222 {dimension_numbers = #tpu.dot_dimension_numbers<[1], [0], [0], [1], [0, 0, 1, 1], [], []>} : vector<4x64xbf16>, vector<64x128xbf16>, vector<4x128xf32> -> vector<4x128xf32>
    %268 = vector.extract_strided_slice %267 {offsets = [0, 0], sizes = [2, 128], strides = [1, 1]} : vector<4x128xf32> to vector<2x128xf32>
    %269 = arith.addf %223, %268 : vector<2x128xf32>
    %270 = vector.extract_strided_slice %267 {offsets = [2, 0], sizes = [2, 128], strides = [1, 1]} : vector<4x128xf32> to vector<2x128xf32>
    %271 = arith.addf %269, %270 : vector<2x128xf32>
    %c2_223 = arith.constant 2 : index
    %c0_224 = arith.constant 0 : index
    %272 = tpu.strided_load %arg18[%c2_223, %c0_224] {strides = array<i32: 10, 1>} : memref<20x128xf32, #tpu.memory_space<vmem>>, vector<2x128xf32>
    %c7 = arith.constant 7 : index
    %c0_225 = arith.constant 0 : index
    %273 = tpu.strided_load %arg19[%c7, %c0_225] {strides = array<i32: 10, 1>} : memref<20x128xf32, #tpu.memory_space<vmem>>, vector<2x128xf32>
    %274 = tpu.concatenate %272, %273 in 0 : vector<2x128xf32>, vector<2x128xf32> -> vector<4x128xf32>
    %cst_226 = arith.constant dense<0.000000e+00> : vector<4x128xf32>
    %275 = tpu.matmul %262, %172, %cst_226 {dimension_numbers = #tpu.dot_dimension_numbers<[1], [0], [0], [1], [0, 0, 1, 1], [], []>} : vector<4x64xf32>, vector<64x128xf32>, vector<4x128xf32> -> vector<4x128xf32>
    %276 = arith.addf %274, %275 : vector<4x128xf32>
    %277 = vector.extract_strided_slice %276 {offsets = [0, 0], sizes = [4, 32], strides = [1, 1]} : vector<4x128xf32> to vector<4x32xf32>
    %278 = arith.negf %277 : vector<4x32xf32>
    %279 = math.exp %278 : vector<4x32xf32>
    %cst_227 = arith.constant 1.000000e+00 : f32
    %280 = vector.broadcast %cst_227 : f32 to vector<4x32xf32>
    %281 = arith.addf %280, %279 : vector<4x32xf32>
    %282 = arith.divf %280, %281 : vector<4x32xf32>
    %283 = vector.extract_strided_slice %276 {offsets = [0, 32], sizes = [4, 32], strides = [1, 1]} : vector<4x128xf32> to vector<4x32xf32>
    %284 = arith.negf %283 : vector<4x32xf32>
    %285 = math.exp %284 : vector<4x32xf32>
    %cst_228 = arith.constant 1.000000e+00 : f32
    %286 = vector.broadcast %cst_228 : f32 to vector<4x32xf32>
    %287 = arith.addf %286, %285 : vector<4x32xf32>
    %288 = arith.divf %286, %287 : vector<4x32xf32>
    %289 = vector.extract_strided_slice %276 {offsets = [0, 64], sizes = [4, 32], strides = [1, 1]} : vector<4x128xf32> to vector<4x32xf32>
    %290 = math.tanh %289 : vector<4x32xf32>
    %291 = vector.extract_strided_slice %276 {offsets = [0, 96], sizes = [4, 32], strides = [1, 1]} : vector<4x128xf32> to vector<4x32xf32>
    %292 = arith.negf %291 : vector<4x32xf32>
    %293 = math.exp %292 : vector<4x32xf32>
    %cst_229 = arith.constant 1.000000e+00 : f32
    %294 = vector.broadcast %cst_229 : f32 to vector<4x32xf32>
    %295 = arith.addf %294, %293 : vector<4x32xf32>
    %296 = arith.divf %294, %295 : vector<4x32xf32>
    %297 = arith.mulf %288, %251 : vector<4x32xf32>
    %298 = arith.mulf %282, %290 : vector<4x32xf32>
    %299 = arith.addf %297, %298 : vector<4x32xf32>
    %300 = math.tanh %299 : vector<4x32xf32>
    %301 = arith.mulf %296, %300 : vector<4x32xf32>
    %cst_230 = arith.constant 0.000000e+00 : f32
    %302 = vector.shape_cast %175 : vector<4x1xi1> to vector<4x1xi1>
    %303 = vector.broadcast %302 : vector<4x1xi1> to vector<4x32xi1>
    %304 = vector.broadcast %cst_230 : f32 to vector<4x32xf32>
    %305 = arith.select %303, %301, %304 : vector<4x32xi1>, vector<4x32xf32>
    %cst_231 = arith.constant 0.000000e+00 : f32
    %306 = vector.shape_cast %175 : vector<4x1xi1> to vector<4x1xi1>
    %307 = vector.broadcast %306 : vector<4x1xi1> to vector<4x32xi1>
    %308 = vector.broadcast %cst_231 : f32 to vector<4x32xf32>
    %309 = arith.select %307, %308, %301 : vector<4x32xi1>, vector<4x32xf32>
    %310 = tpu.concatenate %305, %309 in 1 : vector<4x32xf32>, vector<4x32xf32> -> vector<4x64xf32>
    %c128 = arith.constant 128 : index
    %c0_232 = arith.constant 0 : index
    %311 = vector.load %arg8[%c128, %c0_232] : memref<640x128xbf16, #tpu.memory_space<vmem>>, vector<32x128xbf16>
    %c480 = arith.constant 480 : index
    %c0_233 = arith.constant 0 : index
    %312 = vector.load %arg8[%c480, %c0_233] : memref<640x128xbf16, #tpu.memory_space<vmem>>, vector<32x128xbf16>
    %313 = tpu.concatenate %311, %312 in 0 : vector<32x128xbf16>, vector<32x128xbf16> -> vector<64x128xbf16>
    %314 = arith.truncf %310 : vector<4x64xf32> to vector<4x64xbf16>
    %cst_234 = arith.constant dense<0.000000e+00> : vector<4x128xf32>
    %315 = tpu.matmul %314, %313, %cst_234 {dimension_numbers = #tpu.dot_dimension_numbers<[1], [0], [0], [1], [0, 0, 1, 1], [], []>} : vector<4x64xbf16>, vector<64x128xbf16>, vector<4x128xf32> -> vector<4x128xf32>
    %316 = vector.extract_strided_slice %315 {offsets = [0, 0], sizes = [2, 128], strides = [1, 1]} : vector<4x128xf32> to vector<2x128xf32>
    %317 = arith.addf %271, %316 : vector<2x128xf32>
    %318 = vector.extract_strided_slice %315 {offsets = [2, 0], sizes = [2, 128], strides = [1, 1]} : vector<4x128xf32> to vector<2x128xf32>
    %319 = arith.addf %317, %318 : vector<2x128xf32>
    %c3_235 = arith.constant 3 : index
    %c0_236 = arith.constant 0 : index
    %320 = tpu.strided_load %arg18[%c3_235, %c0_236] {strides = array<i32: 10, 1>} : memref<20x128xf32, #tpu.memory_space<vmem>>, vector<2x128xf32>
    %c6 = arith.constant 6 : index
    %c0_237 = arith.constant 0 : index
    %321 = tpu.strided_load %arg19[%c6, %c0_237] {strides = array<i32: 10, 1>} : memref<20x128xf32, #tpu.memory_space<vmem>>, vector<2x128xf32>
    %322 = tpu.concatenate %320, %321 in 0 : vector<2x128xf32>, vector<2x128xf32> -> vector<4x128xf32>
    %cst_238 = arith.constant dense<0.000000e+00> : vector<4x128xf32>
    %323 = tpu.matmul %310, %172, %cst_238 {dimension_numbers = #tpu.dot_dimension_numbers<[1], [0], [0], [1], [0, 0, 1, 1], [], []>} : vector<4x64xf32>, vector<64x128xf32>, vector<4x128xf32> -> vector<4x128xf32>
    %324 = arith.addf %322, %323 : vector<4x128xf32>
    %325 = vector.extract_strided_slice %324 {offsets = [0, 0], sizes = [4, 32], strides = [1, 1]} : vector<4x128xf32> to vector<4x32xf32>
    %326 = arith.negf %325 : vector<4x32xf32>
    %327 = math.exp %326 : vector<4x32xf32>
    %cst_239 = arith.constant 1.000000e+00 : f32
    %328 = vector.broadcast %cst_239 : f32 to vector<4x32xf32>
    %329 = arith.addf %328, %327 : vector<4x32xf32>
    %330 = arith.divf %328, %329 : vector<4x32xf32>
    %331 = vector.extract_strided_slice %324 {offsets = [0, 32], sizes = [4, 32], strides = [1, 1]} : vector<4x128xf32> to vector<4x32xf32>
    %332 = arith.negf %331 : vector<4x32xf32>
    %333 = math.exp %332 : vector<4x32xf32>
    %cst_240 = arith.constant 1.000000e+00 : f32
    %334 = vector.broadcast %cst_240 : f32 to vector<4x32xf32>
    %335 = arith.addf %334, %333 : vector<4x32xf32>
    %336 = arith.divf %334, %335 : vector<4x32xf32>
    %337 = vector.extract_strided_slice %324 {offsets = [0, 64], sizes = [4, 32], strides = [1, 1]} : vector<4x128xf32> to vector<4x32xf32>
    %338 = math.tanh %337 : vector<4x32xf32>
    %339 = vector.extract_strided_slice %324 {offsets = [0, 96], sizes = [4, 32], strides = [1, 1]} : vector<4x128xf32> to vector<4x32xf32>
    %340 = arith.negf %339 : vector<4x32xf32>
    %341 = math.exp %340 : vector<4x32xf32>
    %cst_241 = arith.constant 1.000000e+00 : f32
    %342 = vector.broadcast %cst_241 : f32 to vector<4x32xf32>
    %343 = arith.addf %342, %341 : vector<4x32xf32>
    %344 = arith.divf %342, %343 : vector<4x32xf32>
    %345 = arith.mulf %336, %299 : vector<4x32xf32>
    %346 = arith.mulf %330, %338 : vector<4x32xf32>
    %347 = arith.addf %345, %346 : vector<4x32xf32>
    %348 = math.tanh %347 : vector<4x32xf32>
    %349 = arith.mulf %344, %348 : vector<4x32xf32>
    %cst_242 = arith.constant 0.000000e+00 : f32
    %350 = vector.shape_cast %175 : vector<4x1xi1> to vector<4x1xi1>
    %351 = vector.broadcast %350 : vector<4x1xi1> to vector<4x32xi1>
    %352 = vector.broadcast %cst_242 : f32 to vector<4x32xf32>
    %353 = arith.select %351, %349, %352 : vector<4x32xi1>, vector<4x32xf32>
    %cst_243 = arith.constant 0.000000e+00 : f32
    %354 = vector.shape_cast %175 : vector<4x1xi1> to vector<4x1xi1>
    %355 = vector.broadcast %354 : vector<4x1xi1> to vector<4x32xi1>
    %356 = vector.broadcast %cst_243 : f32 to vector<4x32xf32>
    %357 = arith.select %355, %356, %349 : vector<4x32xi1>, vector<4x32xf32>
    %358 = tpu.concatenate %353, %357 in 1 : vector<4x32xf32>, vector<4x32xf32> -> vector<4x64xf32>
    %c192 = arith.constant 192 : index
    %c0_244 = arith.constant 0 : index
    %359 = vector.load %arg8[%c192, %c0_244] : memref<640x128xbf16, #tpu.memory_space<vmem>>, vector<32x128xbf16>
    %c416 = arith.constant 416 : index
    %c0_245 = arith.constant 0 : index
    %360 = vector.load %arg8[%c416, %c0_245] : memref<640x128xbf16, #tpu.memory_space<vmem>>, vector<32x128xbf16>
    %361 = tpu.concatenate %359, %360 in 0 : vector<32x128xbf16>, vector<32x128xbf16> -> vector<64x128xbf16>
    %362 = arith.truncf %358 : vector<4x64xf32> to vector<4x64xbf16>
    %cst_246 = arith.constant dense<0.000000e+00> : vector<4x128xf32>
    %363 = tpu.matmul %362, %361, %cst_246 {dimension_numbers = #tpu.dot_dimension_numbers<[1], [0], [0], [1], [0, 0, 1, 1], [], []>} : vector<4x64xbf16>, vector<64x128xbf16>, vector<4x128xf32> -> vector<4x128xf32>
    %364 = vector.extract_strided_slice %363 {offsets = [0, 0], sizes = [2, 128], strides = [1, 1]} : vector<4x128xf32> to vector<2x128xf32>
    %365 = arith.addf %319, %364 : vector<2x128xf32>
    %366 = vector.extract_strided_slice %363 {offsets = [2, 0], sizes = [2, 128], strides = [1, 1]} : vector<4x128xf32> to vector<2x128xf32>
    %367 = arith.addf %365, %366 : vector<2x128xf32>
    %c4_247 = arith.constant 4 : index
    %c0_248 = arith.constant 0 : index
    %368 = tpu.strided_load %arg18[%c4_247, %c0_248] {strides = array<i32: 10, 1>} : memref<20x128xf32, #tpu.memory_space<vmem>>, vector<2x128xf32>
    %c5_249 = arith.constant 5 : index
    %c0_250 = arith.constant 0 : index
    %369 = tpu.strided_load %arg19[%c5_249, %c0_250] {strides = array<i32: 10, 1>} : memref<20x128xf32, #tpu.memory_space<vmem>>, vector<2x128xf32>
    %370 = tpu.concatenate %368, %369 in 0 : vector<2x128xf32>, vector<2x128xf32> -> vector<4x128xf32>
    %cst_251 = arith.constant dense<0.000000e+00> : vector<4x128xf32>
    %371 = tpu.matmul %358, %172, %cst_251 {dimension_numbers = #tpu.dot_dimension_numbers<[1], [0], [0], [1], [0, 0, 1, 1], [], []>} : vector<4x64xf32>, vector<64x128xf32>, vector<4x128xf32> -> vector<4x128xf32>
    %372 = arith.addf %370, %371 : vector<4x128xf32>
    %373 = vector.extract_strided_slice %372 {offsets = [0, 0], sizes = [4, 32], strides = [1, 1]} : vector<4x128xf32> to vector<4x32xf32>
    %374 = arith.negf %373 : vector<4x32xf32>
    %375 = math.exp %374 : vector<4x32xf32>
    %cst_252 = arith.constant 1.000000e+00 : f32
    %376 = vector.broadcast %cst_252 : f32 to vector<4x32xf32>
    %377 = arith.addf %376, %375 : vector<4x32xf32>
    %378 = arith.divf %376, %377 : vector<4x32xf32>
    %379 = vector.extract_strided_slice %372 {offsets = [0, 32], sizes = [4, 32], strides = [1, 1]} : vector<4x128xf32> to vector<4x32xf32>
    %380 = arith.negf %379 : vector<4x32xf32>
    %381 = math.exp %380 : vector<4x32xf32>
    %cst_253 = arith.constant 1.000000e+00 : f32
    %382 = vector.broadcast %cst_253 : f32 to vector<4x32xf32>
    %383 = arith.addf %382, %381 : vector<4x32xf32>
    %384 = arith.divf %382, %383 : vector<4x32xf32>
    %385 = vector.extract_strided_slice %372 {offsets = [0, 64], sizes = [4, 32], strides = [1, 1]} : vector<4x128xf32> to vector<4x32xf32>
    %386 = math.tanh %385 : vector<4x32xf32>
    %387 = vector.extract_strided_slice %372 {offsets = [0, 96], sizes = [4, 32], strides = [1, 1]} : vector<4x128xf32> to vector<4x32xf32>
    %388 = arith.negf %387 : vector<4x32xf32>
    %389 = math.exp %388 : vector<4x32xf32>
    %cst_254 = arith.constant 1.000000e+00 : f32
    %390 = vector.broadcast %cst_254 : f32 to vector<4x32xf32>
    %391 = arith.addf %390, %389 : vector<4x32xf32>
    %392 = arith.divf %390, %391 : vector<4x32xf32>
    %393 = arith.mulf %384, %347 : vector<4x32xf32>
    %394 = arith.mulf %378, %386 : vector<4x32xf32>
    %395 = arith.addf %393, %394 : vector<4x32xf32>
    %396 = math.tanh %395 : vector<4x32xf32>
    %397 = arith.mulf %392, %396 : vector<4x32xf32>
    %cst_255 = arith.constant 0.000000e+00 : f32
    %398 = vector.shape_cast %175 : vector<4x1xi1> to vector<4x1xi1>
    %399 = vector.broadcast %398 : vector<4x1xi1> to vector<4x32xi1>
    %400 = vector.broadcast %cst_255 : f32 to vector<4x32xf32>
    %401 = arith.select %399, %397, %400 : vector<4x32xi1>, vector<4x32xf32>
    %cst_256 = arith.constant 0.000000e+00 : f32
    %402 = vector.shape_cast %175 : vector<4x1xi1> to vector<4x1xi1>
    %403 = vector.broadcast %402 : vector<4x1xi1> to vector<4x32xi1>
    %404 = vector.broadcast %cst_256 : f32 to vector<4x32xf32>
    %405 = arith.select %403, %404, %397 : vector<4x32xi1>, vector<4x32xf32>
    %406 = tpu.concatenate %401, %405 in 1 : vector<4x32xf32>, vector<4x32xf32> -> vector<4x64xf32>
    %c256 = arith.constant 256 : index
    %c0_257 = arith.constant 0 : index
    %407 = vector.load %arg8[%c256, %c0_257] : memref<640x128xbf16, #tpu.memory_space<vmem>>, vector<32x128xbf16>
    %c352 = arith.constant 352 : index
    %c0_258 = arith.constant 0 : index
    %408 = vector.load %arg8[%c352, %c0_258] : memref<640x128xbf16, #tpu.memory_space<vmem>>, vector<32x128xbf16>
    %409 = tpu.concatenate %407, %408 in 0 : vector<32x128xbf16>, vector<32x128xbf16> -> vector<64x128xbf16>
    %410 = arith.truncf %406 : vector<4x64xf32> to vector<4x64xbf16>
    %cst_259 = arith.constant dense<0.000000e+00> : vector<4x128xf32>
    %411 = tpu.matmul %410, %409, %cst_259 {dimension_numbers = #tpu.dot_dimension_numbers<[1], [0], [0], [1], [0, 0, 1, 1], [], []>} : vector<4x64xbf16>, vector<64x128xbf16>, vector<4x128xf32> -> vector<4x128xf32>
    %412 = vector.extract_strided_slice %411 {offsets = [0, 0], sizes = [2, 128], strides = [1, 1]} : vector<4x128xf32> to vector<2x128xf32>
    %413 = arith.addf %367, %412 : vector<2x128xf32>
    %414 = vector.extract_strided_slice %411 {offsets = [2, 0], sizes = [2, 128], strides = [1, 1]} : vector<4x128xf32> to vector<2x128xf32>
    %415 = arith.addf %413, %414 : vector<2x128xf32>
    %c5_260 = arith.constant 5 : index
    %c0_261 = arith.constant 0 : index
    %416 = tpu.strided_load %arg18[%c5_260, %c0_261] {strides = array<i32: 10, 1>} : memref<20x128xf32, #tpu.memory_space<vmem>>, vector<2x128xf32>
    %c4_262 = arith.constant 4 : index
    %c0_263 = arith.constant 0 : index
    %417 = tpu.strided_load %arg19[%c4_262, %c0_263] {strides = array<i32: 10, 1>} : memref<20x128xf32, #tpu.memory_space<vmem>>, vector<2x128xf32>
    %418 = tpu.concatenate %416, %417 in 0 : vector<2x128xf32>, vector<2x128xf32> -> vector<4x128xf32>
    %cst_264 = arith.constant dense<0.000000e+00> : vector<4x128xf32>
    %419 = tpu.matmul %406, %172, %cst_264 {dimension_numbers = #tpu.dot_dimension_numbers<[1], [0], [0], [1], [0, 0, 1, 1], [], []>} : vector<4x64xf32>, vector<64x128xf32>, vector<4x128xf32> -> vector<4x128xf32>
    %420 = arith.addf %418, %419 : vector<4x128xf32>
    %421 = vector.extract_strided_slice %420 {offsets = [0, 0], sizes = [4, 32], strides = [1, 1]} : vector<4x128xf32> to vector<4x32xf32>
    %422 = arith.negf %421 : vector<4x32xf32>
    %423 = math.exp %422 : vector<4x32xf32>
    %cst_265 = arith.constant 1.000000e+00 : f32
    %424 = vector.broadcast %cst_265 : f32 to vector<4x32xf32>
    %425 = arith.addf %424, %423 : vector<4x32xf32>
    %426 = arith.divf %424, %425 : vector<4x32xf32>
    %427 = vector.extract_strided_slice %420 {offsets = [0, 32], sizes = [4, 32], strides = [1, 1]} : vector<4x128xf32> to vector<4x32xf32>
    %428 = arith.negf %427 : vector<4x32xf32>
    %429 = math.exp %428 : vector<4x32xf32>
    %cst_266 = arith.constant 1.000000e+00 : f32
    %430 = vector.broadcast %cst_266 : f32 to vector<4x32xf32>
    %431 = arith.addf %430, %429 : vector<4x32xf32>
    %432 = arith.divf %430, %431 : vector<4x32xf32>
    %433 = vector.extract_strided_slice %420 {offsets = [0, 64], sizes = [4, 32], strides = [1, 1]} : vector<4x128xf32> to vector<4x32xf32>
    %434 = math.tanh %433 : vector<4x32xf32>
    %435 = vector.extract_strided_slice %420 {offsets = [0, 96], sizes = [4, 32], strides = [1, 1]} : vector<4x128xf32> to vector<4x32xf32>
    %436 = arith.negf %435 : vector<4x32xf32>
    %437 = math.exp %436 : vector<4x32xf32>
    %cst_267 = arith.constant 1.000000e+00 : f32
    %438 = vector.broadcast %cst_267 : f32 to vector<4x32xf32>
    %439 = arith.addf %438, %437 : vector<4x32xf32>
    %440 = arith.divf %438, %439 : vector<4x32xf32>
    %441 = arith.mulf %432, %395 : vector<4x32xf32>
    %442 = arith.mulf %426, %434 : vector<4x32xf32>
    %443 = arith.addf %441, %442 : vector<4x32xf32>
    %444 = math.tanh %443 : vector<4x32xf32>
    %445 = arith.mulf %440, %444 : vector<4x32xf32>
    %cst_268 = arith.constant 0.000000e+00 : f32
    %446 = vector.shape_cast %175 : vector<4x1xi1> to vector<4x1xi1>
    %447 = vector.broadcast %446 : vector<4x1xi1> to vector<4x32xi1>
    %448 = vector.broadcast %cst_268 : f32 to vector<4x32xf32>
    %449 = arith.select %447, %445, %448 : vector<4x32xi1>, vector<4x32xf32>
    %cst_269 = arith.constant 0.000000e+00 : f32
    %450 = vector.shape_cast %175 : vector<4x1xi1> to vector<4x1xi1>
    %451 = vector.broadcast %450 : vector<4x1xi1> to vector<4x32xi1>
    %452 = vector.broadcast %cst_269 : f32 to vector<4x32xf32>
    %453 = arith.select %451, %452, %445 : vector<4x32xi1>, vector<4x32xf32>
    %454 = tpu.concatenate %449, %453 in 1 : vector<4x32xf32>, vector<4x32xf32> -> vector<4x64xf32>
    %c320 = arith.constant 320 : index
    %c0_270 = arith.constant 0 : index
    %455 = vector.load %arg8[%c320, %c0_270] : memref<640x128xbf16, #tpu.memory_space<vmem>>, vector<32x128xbf16>
    %c288 = arith.constant 288 : index
    %c0_271 = arith.constant 0 : index
    %456 = vector.load %arg8[%c288, %c0_271] : memref<640x128xbf16, #tpu.memory_space<vmem>>, vector<32x128xbf16>
    %457 = tpu.concatenate %455, %456 in 0 : vector<32x128xbf16>, vector<32x128xbf16> -> vector<64x128xbf16>
    %458 = arith.truncf %454 : vector<4x64xf32> to vector<4x64xbf16>
    %cst_272 = arith.constant dense<0.000000e+00> : vector<4x128xf32>
    %459 = tpu.matmul %458, %457, %cst_272 {dimension_numbers = #tpu.dot_dimension_numbers<[1], [0], [0], [1], [0, 0, 1, 1], [], []>} : vector<4x64xbf16>, vector<64x128xbf16>, vector<4x128xf32> -> vector<4x128xf32>
    %460 = vector.extract_strided_slice %459 {offsets = [0, 0], sizes = [2, 128], strides = [1, 1]} : vector<4x128xf32> to vector<2x128xf32>
    %461 = arith.addf %415, %460 : vector<2x128xf32>
    %462 = vector.extract_strided_slice %459 {offsets = [2, 0], sizes = [2, 128], strides = [1, 1]} : vector<4x128xf32> to vector<2x128xf32>
    %463 = arith.addf %461, %462 : vector<2x128xf32>
    %c6_273 = arith.constant 6 : index
    %c0_274 = arith.constant 0 : index
    %464 = tpu.strided_load %arg18[%c6_273, %c0_274] {strides = array<i32: 10, 1>} : memref<20x128xf32, #tpu.memory_space<vmem>>, vector<2x128xf32>
    %c3_275 = arith.constant 3 : index
    %c0_276 = arith.constant 0 : index
    %465 = tpu.strided_load %arg19[%c3_275, %c0_276] {strides = array<i32: 10, 1>} : memref<20x128xf32, #tpu.memory_space<vmem>>, vector<2x128xf32>
    %466 = tpu.concatenate %464, %465 in 0 : vector<2x128xf32>, vector<2x128xf32> -> vector<4x128xf32>
    %cst_277 = arith.constant dense<0.000000e+00> : vector<4x128xf32>
    %467 = tpu.matmul %454, %172, %cst_277 {dimension_numbers = #tpu.dot_dimension_numbers<[1], [0], [0], [1], [0, 0, 1, 1], [], []>} : vector<4x64xf32>, vector<64x128xf32>, vector<4x128xf32> -> vector<4x128xf32>
    %468 = arith.addf %466, %467 : vector<4x128xf32>
    %469 = vector.extract_strided_slice %468 {offsets = [0, 0], sizes = [4, 32], strides = [1, 1]} : vector<4x128xf32> to vector<4x32xf32>
    %470 = arith.negf %469 : vector<4x32xf32>
    %471 = math.exp %470 : vector<4x32xf32>
    %cst_278 = arith.constant 1.000000e+00 : f32
    %472 = vector.broadcast %cst_278 : f32 to vector<4x32xf32>
    %473 = arith.addf %472, %471 : vector<4x32xf32>
    %474 = arith.divf %472, %473 : vector<4x32xf32>
    %475 = vector.extract_strided_slice %468 {offsets = [0, 32], sizes = [4, 32], strides = [1, 1]} : vector<4x128xf32> to vector<4x32xf32>
    %476 = arith.negf %475 : vector<4x32xf32>
    %477 = math.exp %476 : vector<4x32xf32>
    %cst_279 = arith.constant 1.000000e+00 : f32
    %478 = vector.broadcast %cst_279 : f32 to vector<4x32xf32>
    %479 = arith.addf %478, %477 : vector<4x32xf32>
    %480 = arith.divf %478, %479 : vector<4x32xf32>
    %481 = vector.extract_strided_slice %468 {offsets = [0, 64], sizes = [4, 32], strides = [1, 1]} : vector<4x128xf32> to vector<4x32xf32>
    %482 = math.tanh %481 : vector<4x32xf32>
    %483 = vector.extract_strided_slice %468 {offsets = [0, 96], sizes = [4, 32], strides = [1, 1]} : vector<4x128xf32> to vector<4x32xf32>
    %484 = arith.negf %483 : vector<4x32xf32>
    %485 = math.exp %484 : vector<4x32xf32>
    %cst_280 = arith.constant 1.000000e+00 : f32
    %486 = vector.broadcast %cst_280 : f32 to vector<4x32xf32>
    %487 = arith.addf %486, %485 : vector<4x32xf32>
    %488 = arith.divf %486, %487 : vector<4x32xf32>
    %489 = arith.mulf %480, %443 : vector<4x32xf32>
    %490 = arith.mulf %474, %482 : vector<4x32xf32>
    %491 = arith.addf %489, %490 : vector<4x32xf32>
    %492 = math.tanh %491 : vector<4x32xf32>
    %493 = arith.mulf %488, %492 : vector<4x32xf32>
    %cst_281 = arith.constant 0.000000e+00 : f32
    %494 = vector.shape_cast %175 : vector<4x1xi1> to vector<4x1xi1>
    %495 = vector.broadcast %494 : vector<4x1xi1> to vector<4x32xi1>
    %496 = vector.broadcast %cst_281 : f32 to vector<4x32xf32>
    %497 = arith.select %495, %493, %496 : vector<4x32xi1>, vector<4x32xf32>
    %cst_282 = arith.constant 0.000000e+00 : f32
    %498 = vector.shape_cast %175 : vector<4x1xi1> to vector<4x1xi1>
    %499 = vector.broadcast %498 : vector<4x1xi1> to vector<4x32xi1>
    %500 = vector.broadcast %cst_282 : f32 to vector<4x32xf32>
    %501 = arith.select %499, %500, %493 : vector<4x32xi1>, vector<4x32xf32>
    %502 = tpu.concatenate %497, %501 in 1 : vector<4x32xf32>, vector<4x32xf32> -> vector<4x64xf32>
    %c384 = arith.constant 384 : index
    %c0_283 = arith.constant 0 : index
    %503 = vector.load %arg8[%c384, %c0_283] : memref<640x128xbf16, #tpu.memory_space<vmem>>, vector<32x128xbf16>
    %c224 = arith.constant 224 : index
    %c0_284 = arith.constant 0 : index
    %504 = vector.load %arg8[%c224, %c0_284] : memref<640x128xbf16, #tpu.memory_space<vmem>>, vector<32x128xbf16>
    %505 = tpu.concatenate %503, %504 in 0 : vector<32x128xbf16>, vector<32x128xbf16> -> vector<64x128xbf16>
    %506 = arith.truncf %502 : vector<4x64xf32> to vector<4x64xbf16>
    %cst_285 = arith.constant dense<0.000000e+00> : vector<4x128xf32>
    %507 = tpu.matmul %506, %505, %cst_285 {dimension_numbers = #tpu.dot_dimension_numbers<[1], [0], [0], [1], [0, 0, 1, 1], [], []>} : vector<4x64xbf16>, vector<64x128xbf16>, vector<4x128xf32> -> vector<4x128xf32>
    %508 = vector.extract_strided_slice %507 {offsets = [0, 0], sizes = [2, 128], strides = [1, 1]} : vector<4x128xf32> to vector<2x128xf32>
    %509 = arith.addf %463, %508 : vector<2x128xf32>
    %510 = vector.extract_strided_slice %507 {offsets = [2, 0], sizes = [2, 128], strides = [1, 1]} : vector<4x128xf32> to vector<2x128xf32>
    %511 = arith.addf %509, %510 : vector<2x128xf32>
    %c7_286 = arith.constant 7 : index
    %c0_287 = arith.constant 0 : index
    %512 = tpu.strided_load %arg18[%c7_286, %c0_287] {strides = array<i32: 10, 1>} : memref<20x128xf32, #tpu.memory_space<vmem>>, vector<2x128xf32>
    %c2_288 = arith.constant 2 : index
    %c0_289 = arith.constant 0 : index
    %513 = tpu.strided_load %arg19[%c2_288, %c0_289] {strides = array<i32: 10, 1>} : memref<20x128xf32, #tpu.memory_space<vmem>>, vector<2x128xf32>
    %514 = tpu.concatenate %512, %513 in 0 : vector<2x128xf32>, vector<2x128xf32> -> vector<4x128xf32>
    %cst_290 = arith.constant dense<0.000000e+00> : vector<4x128xf32>
    %515 = tpu.matmul %502, %172, %cst_290 {dimension_numbers = #tpu.dot_dimension_numbers<[1], [0], [0], [1], [0, 0, 1, 1], [], []>} : vector<4x64xf32>, vector<64x128xf32>, vector<4x128xf32> -> vector<4x128xf32>
    %516 = arith.addf %514, %515 : vector<4x128xf32>
    %517 = vector.extract_strided_slice %516 {offsets = [0, 0], sizes = [4, 32], strides = [1, 1]} : vector<4x128xf32> to vector<4x32xf32>
    %518 = arith.negf %517 : vector<4x32xf32>
    %519 = math.exp %518 : vector<4x32xf32>
    %cst_291 = arith.constant 1.000000e+00 : f32
    %520 = vector.broadcast %cst_291 : f32 to vector<4x32xf32>
    %521 = arith.addf %520, %519 : vector<4x32xf32>
    %522 = arith.divf %520, %521 : vector<4x32xf32>
    %523 = vector.extract_strided_slice %516 {offsets = [0, 32], sizes = [4, 32], strides = [1, 1]} : vector<4x128xf32> to vector<4x32xf32>
    %524 = arith.negf %523 : vector<4x32xf32>
    %525 = math.exp %524 : vector<4x32xf32>
    %cst_292 = arith.constant 1.000000e+00 : f32
    %526 = vector.broadcast %cst_292 : f32 to vector<4x32xf32>
    %527 = arith.addf %526, %525 : vector<4x32xf32>
    %528 = arith.divf %526, %527 : vector<4x32xf32>
    %529 = vector.extract_strided_slice %516 {offsets = [0, 64], sizes = [4, 32], strides = [1, 1]} : vector<4x128xf32> to vector<4x32xf32>
    %530 = math.tanh %529 : vector<4x32xf32>
    %531 = vector.extract_strided_slice %516 {offsets = [0, 96], sizes = [4, 32], strides = [1, 1]} : vector<4x128xf32> to vector<4x32xf32>
    %532 = arith.negf %531 : vector<4x32xf32>
    %533 = math.exp %532 : vector<4x32xf32>
    %cst_293 = arith.constant 1.000000e+00 : f32
    %534 = vector.broadcast %cst_293 : f32 to vector<4x32xf32>
    %535 = arith.addf %534, %533 : vector<4x32xf32>
    %536 = arith.divf %534, %535 : vector<4x32xf32>
    %537 = arith.mulf %528, %491 : vector<4x32xf32>
    %538 = arith.mulf %522, %530 : vector<4x32xf32>
    %539 = arith.addf %537, %538 : vector<4x32xf32>
    %540 = math.tanh %539 : vector<4x32xf32>
    %541 = arith.mulf %536, %540 : vector<4x32xf32>
    %cst_294 = arith.constant 0.000000e+00 : f32
    %542 = vector.shape_cast %175 : vector<4x1xi1> to vector<4x1xi1>
    %543 = vector.broadcast %542 : vector<4x1xi1> to vector<4x32xi1>
    %544 = vector.broadcast %cst_294 : f32 to vector<4x32xf32>
    %545 = arith.select %543, %541, %544 : vector<4x32xi1>, vector<4x32xf32>
    %cst_295 = arith.constant 0.000000e+00 : f32
    %546 = vector.shape_cast %175 : vector<4x1xi1> to vector<4x1xi1>
    %547 = vector.broadcast %546 : vector<4x1xi1> to vector<4x32xi1>
    %548 = vector.broadcast %cst_295 : f32 to vector<4x32xf32>
    %549 = arith.select %547, %548, %541 : vector<4x32xi1>, vector<4x32xf32>
    %550 = tpu.concatenate %545, %549 in 1 : vector<4x32xf32>, vector<4x32xf32> -> vector<4x64xf32>
    %c448 = arith.constant 448 : index
    %c0_296 = arith.constant 0 : index
    %551 = vector.load %arg8[%c448, %c0_296] : memref<640x128xbf16, #tpu.memory_space<vmem>>, vector<32x128xbf16>
    %c160 = arith.constant 160 : index
    %c0_297 = arith.constant 0 : index
    %552 = vector.load %arg8[%c160, %c0_297] : memref<640x128xbf16, #tpu.memory_space<vmem>>, vector<32x128xbf16>
    %553 = tpu.concatenate %551, %552 in 0 : vector<32x128xbf16>, vector<32x128xbf16> -> vector<64x128xbf16>
    %554 = arith.truncf %550 : vector<4x64xf32> to vector<4x64xbf16>
    %cst_298 = arith.constant dense<0.000000e+00> : vector<4x128xf32>
    %555 = tpu.matmul %554, %553, %cst_298 {dimension_numbers = #tpu.dot_dimension_numbers<[1], [0], [0], [1], [0, 0, 1, 1], [], []>} : vector<4x64xbf16>, vector<64x128xbf16>, vector<4x128xf32> -> vector<4x128xf32>
    %556 = vector.extract_strided_slice %555 {offsets = [0, 0], sizes = [2, 128], strides = [1, 1]} : vector<4x128xf32> to vector<2x128xf32>
    %557 = arith.addf %511, %556 : vector<2x128xf32>
    %558 = vector.extract_strided_slice %555 {offsets = [2, 0], sizes = [2, 128], strides = [1, 1]} : vector<4x128xf32> to vector<2x128xf32>
    %559 = arith.addf %557, %558 : vector<2x128xf32>
    %c8_299 = arith.constant 8 : index
    %c0_300 = arith.constant 0 : index
    %560 = tpu.strided_load %arg18[%c8_299, %c0_300] {strides = array<i32: 10, 1>} : memref<20x128xf32, #tpu.memory_space<vmem>>, vector<2x128xf32>
    %c1_301 = arith.constant 1 : index
    %c0_302 = arith.constant 0 : index
    %561 = tpu.strided_load %arg19[%c1_301, %c0_302] {strides = array<i32: 10, 1>} : memref<20x128xf32, #tpu.memory_space<vmem>>, vector<2x128xf32>
    %562 = tpu.concatenate %560, %561 in 0 : vector<2x128xf32>, vector<2x128xf32> -> vector<4x128xf32>
    %cst_303 = arith.constant dense<0.000000e+00> : vector<4x128xf32>
    %563 = tpu.matmul %550, %172, %cst_303 {dimension_numbers = #tpu.dot_dimension_numbers<[1], [0], [0], [1], [0, 0, 1, 1], [], []>} : vector<4x64xf32>, vector<64x128xf32>, vector<4x128xf32> -> vector<4x128xf32>
    %564 = arith.addf %562, %563 : vector<4x128xf32>
    %565 = vector.extract_strided_slice %564 {offsets = [0, 0], sizes = [4, 32], strides = [1, 1]} : vector<4x128xf32> to vector<4x32xf32>
    %566 = arith.negf %565 : vector<4x32xf32>
    %567 = math.exp %566 : vector<4x32xf32>
    %cst_304 = arith.constant 1.000000e+00 : f32
    %568 = vector.broadcast %cst_304 : f32 to vector<4x32xf32>
    %569 = arith.addf %568, %567 : vector<4x32xf32>
    %570 = arith.divf %568, %569 : vector<4x32xf32>
    %571 = vector.extract_strided_slice %564 {offsets = [0, 32], sizes = [4, 32], strides = [1, 1]} : vector<4x128xf32> to vector<4x32xf32>
    %572 = arith.negf %571 : vector<4x32xf32>
    %573 = math.exp %572 : vector<4x32xf32>
    %cst_305 = arith.constant 1.000000e+00 : f32
    %574 = vector.broadcast %cst_305 : f32 to vector<4x32xf32>
    %575 = arith.addf %574, %573 : vector<4x32xf32>
    %576 = arith.divf %574, %575 : vector<4x32xf32>
    %577 = vector.extract_strided_slice %564 {offsets = [0, 64], sizes = [4, 32], strides = [1, 1]} : vector<4x128xf32> to vector<4x32xf32>
    %578 = math.tanh %577 : vector<4x32xf32>
    %579 = vector.extract_strided_slice %564 {offsets = [0, 96], sizes = [4, 32], strides = [1, 1]} : vector<4x128xf32> to vector<4x32xf32>
    %580 = arith.negf %579 : vector<4x32xf32>
    %581 = math.exp %580 : vector<4x32xf32>
    %cst_306 = arith.constant 1.000000e+00 : f32
    %582 = vector.broadcast %cst_306 : f32 to vector<4x32xf32>
    %583 = arith.addf %582, %581 : vector<4x32xf32>
    %584 = arith.divf %582, %583 : vector<4x32xf32>
    %585 = arith.mulf %576, %539 : vector<4x32xf32>
    %586 = arith.mulf %570, %578 : vector<4x32xf32>
    %587 = arith.addf %585, %586 : vector<4x32xf32>
    %588 = math.tanh %587 : vector<4x32xf32>
    %589 = arith.mulf %584, %588 : vector<4x32xf32>
    %cst_307 = arith.constant 0.000000e+00 : f32
    %590 = vector.shape_cast %175 : vector<4x1xi1> to vector<4x1xi1>
    %591 = vector.broadcast %590 : vector<4x1xi1> to vector<4x32xi1>
    %592 = vector.broadcast %cst_307 : f32 to vector<4x32xf32>
    %593 = arith.select %591, %589, %592 : vector<4x32xi1>, vector<4x32xf32>
    %cst_308 = arith.constant 0.000000e+00 : f32
    %594 = vector.shape_cast %175 : vector<4x1xi1> to vector<4x1xi1>
    %595 = vector.broadcast %594 : vector<4x1xi1> to vector<4x32xi1>
    %596 = vector.broadcast %cst_308 : f32 to vector<4x32xf32>
    %597 = arith.select %595, %596, %589 : vector<4x32xi1>, vector<4x32xf32>
    %598 = tpu.concatenate %593, %597 in 1 : vector<4x32xf32>, vector<4x32xf32> -> vector<4x64xf32>
    %c512 = arith.constant 512 : index
    %c0_309 = arith.constant 0 : index
    %599 = vector.load %arg8[%c512, %c0_309] : memref<640x128xbf16, #tpu.memory_space<vmem>>, vector<32x128xbf16>
    %c96 = arith.constant 96 : index
    %c0_310 = arith.constant 0 : index
    %600 = vector.load %arg8[%c96, %c0_310] : memref<640x128xbf16, #tpu.memory_space<vmem>>, vector<32x128xbf16>
    %601 = tpu.concatenate %599, %600 in 0 : vector<32x128xbf16>, vector<32x128xbf16> -> vector<64x128xbf16>
    %602 = arith.truncf %598 : vector<4x64xf32> to vector<4x64xbf16>
    %cst_311 = arith.constant dense<0.000000e+00> : vector<4x128xf32>
    %603 = tpu.matmul %602, %601, %cst_311 {dimension_numbers = #tpu.dot_dimension_numbers<[1], [0], [0], [1], [0, 0, 1, 1], [], []>} : vector<4x64xbf16>, vector<64x128xbf16>, vector<4x128xf32> -> vector<4x128xf32>
    %604 = vector.extract_strided_slice %603 {offsets = [0, 0], sizes = [2, 128], strides = [1, 1]} : vector<4x128xf32> to vector<2x128xf32>
    %605 = arith.addf %559, %604 : vector<2x128xf32>
    %606 = vector.extract_strided_slice %603 {offsets = [2, 0], sizes = [2, 128], strides = [1, 1]} : vector<4x128xf32> to vector<2x128xf32>
    %607 = arith.addf %605, %606 : vector<2x128xf32>
    %c9_312 = arith.constant 9 : index
    %c0_313 = arith.constant 0 : index
    %608 = tpu.strided_load %arg18[%c9_312, %c0_313] {strides = array<i32: 10, 1>} : memref<20x128xf32, #tpu.memory_space<vmem>>, vector<2x128xf32>
    %c0_314 = arith.constant 0 : index
    %c0_315 = arith.constant 0 : index
    %609 = tpu.strided_load %arg19[%c0_314, %c0_315] {strides = array<i32: 10, 1>} : memref<20x128xf32, #tpu.memory_space<vmem>>, vector<2x128xf32>
    %610 = tpu.concatenate %608, %609 in 0 : vector<2x128xf32>, vector<2x128xf32> -> vector<4x128xf32>
    %cst_316 = arith.constant dense<0.000000e+00> : vector<4x128xf32>
    %611 = tpu.matmul %598, %172, %cst_316 {dimension_numbers = #tpu.dot_dimension_numbers<[1], [0], [0], [1], [0, 0, 1, 1], [], []>} : vector<4x64xf32>, vector<64x128xf32>, vector<4x128xf32> -> vector<4x128xf32>
    %612 = arith.addf %610, %611 : vector<4x128xf32>
    %613 = vector.extract_strided_slice %612 {offsets = [0, 0], sizes = [4, 32], strides = [1, 1]} : vector<4x128xf32> to vector<4x32xf32>
    %614 = arith.negf %613 : vector<4x32xf32>
    %615 = math.exp %614 : vector<4x32xf32>
    %cst_317 = arith.constant 1.000000e+00 : f32
    %616 = vector.broadcast %cst_317 : f32 to vector<4x32xf32>
    %617 = arith.addf %616, %615 : vector<4x32xf32>
    %618 = arith.divf %616, %617 : vector<4x32xf32>
    %619 = vector.extract_strided_slice %612 {offsets = [0, 32], sizes = [4, 32], strides = [1, 1]} : vector<4x128xf32> to vector<4x32xf32>
    %620 = arith.negf %619 : vector<4x32xf32>
    %621 = math.exp %620 : vector<4x32xf32>
    %cst_318 = arith.constant 1.000000e+00 : f32
    %622 = vector.broadcast %cst_318 : f32 to vector<4x32xf32>
    %623 = arith.addf %622, %621 : vector<4x32xf32>
    %624 = arith.divf %622, %623 : vector<4x32xf32>
    %625 = vector.extract_strided_slice %612 {offsets = [0, 64], sizes = [4, 32], strides = [1, 1]} : vector<4x128xf32> to vector<4x32xf32>
    %626 = math.tanh %625 : vector<4x32xf32>
    %627 = vector.extract_strided_slice %612 {offsets = [0, 96], sizes = [4, 32], strides = [1, 1]} : vector<4x128xf32> to vector<4x32xf32>
    %628 = arith.negf %627 : vector<4x32xf32>
    %629 = math.exp %628 : vector<4x32xf32>
    %cst_319 = arith.constant 1.000000e+00 : f32
    %630 = vector.broadcast %cst_319 : f32 to vector<4x32xf32>
    %631 = arith.addf %630, %629 : vector<4x32xf32>
    %632 = arith.divf %630, %631 : vector<4x32xf32>
    %633 = arith.mulf %624, %587 : vector<4x32xf32>
    %634 = arith.mulf %618, %626 : vector<4x32xf32>
    %635 = arith.addf %633, %634 : vector<4x32xf32>
    %636 = math.tanh %635 : vector<4x32xf32>
    %637 = arith.mulf %632, %636 : vector<4x32xf32>
    %cst_320 = arith.constant 0.000000e+00 : f32
    %638 = vector.shape_cast %175 : vector<4x1xi1> to vector<4x1xi1>
    %639 = vector.broadcast %638 : vector<4x1xi1> to vector<4x32xi1>
    %640 = vector.broadcast %cst_320 : f32 to vector<4x32xf32>
    %641 = arith.select %639, %637, %640 : vector<4x32xi1>, vector<4x32xf32>
    %cst_321 = arith.constant 0.000000e+00 : f32
    %642 = vector.shape_cast %175 : vector<4x1xi1> to vector<4x1xi1>
    %643 = vector.broadcast %642 : vector<4x1xi1> to vector<4x32xi1>
    %644 = vector.broadcast %cst_321 : f32 to vector<4x32xf32>
    %645 = arith.select %643, %644, %637 : vector<4x32xi1>, vector<4x32xf32>
    %646 = tpu.concatenate %641, %645 in 1 : vector<4x32xf32>, vector<4x32xf32> -> vector<4x64xf32>
    %c576 = arith.constant 576 : index
    %c0_322 = arith.constant 0 : index
    %647 = vector.load %arg8[%c576, %c0_322] : memref<640x128xbf16, #tpu.memory_space<vmem>>, vector<32x128xbf16>
    %c32 = arith.constant 32 : index
    %c0_323 = arith.constant 0 : index
    %648 = vector.load %arg8[%c32, %c0_323] : memref<640x128xbf16, #tpu.memory_space<vmem>>, vector<32x128xbf16>
    %649 = tpu.concatenate %647, %648 in 0 : vector<32x128xbf16>, vector<32x128xbf16> -> vector<64x128xbf16>
    %650 = arith.truncf %646 : vector<4x64xf32> to vector<4x64xbf16>
    %cst_324 = arith.constant dense<0.000000e+00> : vector<4x128xf32>
    %651 = tpu.matmul %650, %649, %cst_324 {dimension_numbers = #tpu.dot_dimension_numbers<[1], [0], [0], [1], [0, 0, 1, 1], [], []>} : vector<4x64xbf16>, vector<64x128xbf16>, vector<4x128xf32> -> vector<4x128xf32>
    %652 = vector.extract_strided_slice %651 {offsets = [0, 0], sizes = [2, 128], strides = [1, 1]} : vector<4x128xf32> to vector<2x128xf32>
    %653 = arith.addf %607, %652 : vector<2x128xf32>
    %654 = vector.extract_strided_slice %651 {offsets = [2, 0], sizes = [2, 128], strides = [1, 1]} : vector<4x128xf32> to vector<2x128xf32>
    %655 = arith.addf %653, %654 : vector<2x128xf32>
    %c0_325 = arith.constant 0 : index
    %c0_326 = arith.constant 0 : index
    %656 = vector.load %arg9[%c0_325, %c0_326] : memref<1x128xf32, #tpu.memory_space<vmem>>, vector<1x128xf32>
    %657 = vector.broadcast %656 : vector<1x128xf32> to vector<2x128xf32>
    %658 = arith.addf %655, %657 : vector<2x128xf32>
    %cst_327 = arith.constant 0.000000e+00 : f32
    %659 = vector.broadcast %cst_327 : f32 to vector<2x128xf32>
    %660 = arith.maximumf %658, %659 : vector<2x128xf32>
    %661 = arith.truncf %660 : vector<2x128xf32> to vector<2x128xbf16>
    %c0_328 = arith.constant 0 : index
    %c0_329 = arith.constant 0 : index
    %662 = vector.load %arg10[%c0_328, %c0_329] : memref<128x64xbf16, #tpu.memory_space<vmem>>, vector<128x64xbf16>
    %cst_330 = arith.constant dense<0.000000e+00> : vector<2x64xf32>
    %663 = tpu.matmul %661, %662, %cst_330 {dimension_numbers = #tpu.dot_dimension_numbers<[1], [0], [0], [1], [0, 0, 1, 1], [], []>} : vector<2x128xbf16>, vector<128x64xbf16>, vector<2x64xf32> -> vector<2x64xf32>
    %c0_331 = arith.constant 0 : index
    %c0_332 = arith.constant 0 : index
    %664 = vector.load %arg11[%c0_331, %c0_332] : memref<1x64xf32, #tpu.memory_space<vmem>>, vector<1x64xf32>
    %665 = vector.broadcast %664 : vector<1x64xf32> to vector<2x64xf32>
    %666 = arith.addf %663, %665 : vector<2x64xf32>
    %cst_333 = arith.constant 0.000000e+00 : f32
    %667 = vector.broadcast %cst_333 : f32 to vector<2x64xf32>
    %668 = arith.maximumf %666, %667 : vector<2x64xf32>
    %c0_334 = arith.constant 0 : index
    %c0_335 = arith.constant 0 : index
    %669 = vector.load %arg12[%c0_334, %c0_335] : memref<64x2xf32, #tpu.memory_space<vmem>>, vector<64x2xf32>
    %cst_336 = arith.constant dense<0.000000e+00> : vector<2x2xf32>
    %670 = tpu.matmul %668, %669, %cst_336 {dimension_numbers = #tpu.dot_dimension_numbers<[1], [0], [0], [1], [0, 0, 1, 1], [], []>} : vector<2x64xf32>, vector<64x2xf32>, vector<2x2xf32> -> vector<2x2xf32>
    %c0_337 = arith.constant 0 : index
    %c0_338 = arith.constant 0 : index
    %671 = vector.load %arg13[%c0_337, %c0_338] : memref<1x2xf32, #tpu.memory_space<vmem>>, vector<1x2xf32>
    %672 = vector.broadcast %671 : vector<1x2xf32> to vector<2x2xf32>
    %673 = arith.addf %670, %672 : vector<2x2xf32>
    %c0_339 = arith.constant 0 : index
    %c0_340 = arith.constant 0 : index
    %674 = vector.load %arg14[%c0_339, %c0_340] : memref<2x2xf32, #tpu.memory_space<vmem>>, vector<2x2xf32>
    tpu.vector_store %arg14[%c0_339, %c0_340], %673 {strides = array<i32>} : memref<2x2xf32, #tpu.memory_space<vmem>>, vector<2x2xf32>,
    return
  }
}

</mosaic_0001>

<bundles_post_ra>
// kernel: forward.1
= control target key start
LH: loop header
LB: loop body
LE: loop exit
PB: predicated region body
PF: predicated region fallthrough
CT: control target
= control target key end

     0   :  { %s4321_s23 = smov 16   ;;  %s4322_s27 = smov 32   ;;  %s5645_s0 = inlined_call_operand.vmem [shape: f32[150,16], index: 0, kind: input, shape index: {}]   ;;  %s5646_s1 = inlined_call_operand.vmem [shape: bf16[6,48,16], index: 1, kind: input, shape index: {}]   ;;  %s5647_s2 = inlined_call_operand.vmem [shape: f32[6,1,16], index: 2, kind: input, shape index: {}]   ;;  %s5648_s3 = inlined_call_operand.vmem [shape: bf16[16,128], index: 3, kind: input, shape index: {}]   ;;  %s5649_s4 = inlined_call_operand.vmem [shape: bf16[16,128], index: 4, kind: input, shape index: {}]   ;;  %s5650_s5 = inlined_call_operand.vmem [shape: f32[1,128], index: 5, kind: input, shape index: {}]   ;;  %s5651_s6 = inlined_call_operand.vmem [shape: f32[1,128], index: 6, kind: input, shape index: {}]   ;;  %s5652_s7 = inlined_call_operand.vmem [shape: f32[64,128], index: 7, kind: input, shape index: {}]   ;;  %s5653_s8 = inlined_call_operand.vmem [shape: bf16[640,128], index: 8, kind: input, shape index: {}]   ;;  %s5654_s9 = inlined_call_operand.vmem [shape: f32[1,128], index: 9, kind: input, shape index: {}]   ;;  %s5655_s10 = inlined_call_operand.vmem [shape: bf16[128,64], index: 10, kind: input, shape index: {}]   ;;  %s5656_s11 = inlined_call_operand.vmem [shape: f32[1,64], index: 11, kind: input, shape index: {}]   ;;  %s5657_s12 = inlined_call_operand.vmem [shape: f32[64,2], index: 12, kind: input, shape index: {}]   ;;  %s5658_s13 = inlined_call_operand.vmem [shape: f32[1,2], index: 13, kind: input, shape index: {}]   ;;  %s5659_s14 = inlined_call_operand.hbm [shape: f32[2,2], index: 14, kind: output, shape index: {}]  }
   0x1   :  { %v113_v0 = vld [vmem:[%s5645_s0 + $0x1] sm:$0xff]  ;;  %v114_v1 = vld [vmem:[%s5645_s0 + $0x9] sm:$0xff]  ;;  %v115_v3 = vld [vmem:[%s5645_s0 + $0x11] sm:$0xff] }
   0x2   :  { %v3862_v2 = vpack.i.bf16 %v114_v1, %v113_v0  ;;  %v116_v4 = vld [vmem:[%s5645_s0 + $0x19] sm:$0xff]  ;;  %v117_v6 = vld [vmem:[%s5645_s0 + $0x21] sm:$0xff]  ;;  %v118_v7 = vld [vmem:[%s5645_s0 + $0x29] sm:$0xff] }
   0x3   :  { %v3872_v5 = vpack.i.bf16 %v116_v4, %v115_v3  ;;  %v132_v8 = vld [vmem:[%s5645_s0 + $0x2] sm:$0xff]  ;;  %v133_v9 = vld [vmem:[%s5645_s0 + $0xa] sm:$0xff]  ;;  %v3882_v10 = vpack.i.bf16 %v118_v7, %v117_v6  ;;  %v134_v11 = vld [vmem:[%s5645_s0 + $0x12] sm:$0xff] }
   0x4   :  { %3863 = vrot.lane.b32.xlu0 %v3862_v2, %s4321_s23  ;;  %v135_v12 = vld [vmem:[%s5645_s0 + $0x1a] sm:$0xff]  ;;  %v3867_v13 = vpack.i.bf16 %v133_v9, %v132_v8  ;;  %v136_v14 = vld [vmem:[%s5645_s0 + $0x22] sm:$0xff]  ;;  %v137_v15 = vld [vmem:[%s5645_s0 + $0x2a] sm:$0xff] }
   0x5   :  { %3873 = vrot.lane.b32.xlu1 %v3872_v5, %s4321_s23  ;;  %3883 = vrot.lane.b32.xlu2 %v3882_v10, %s4321_s23  ;;  %v3877_v16 = vpack.i.bf16 %v135_v12, %v134_v11  ;;  %v119_v17 = vld [vmem:[%s5645_s0 + $0x31] sm:$0xff]  ;;  %v120_v18 = vld [vmem:[%s5645_s0 + $0x39] sm:$0xff]  ;;  %v3887_v19 = vpack.i.bf16 %v137_v15, %v136_v14 }
   0x6   :  { %v138_v20 = vld [vmem:[%s5645_s0 + $0x32] sm:$0xff]  ;;  %v139_v21 = vld [vmem:[%s5645_s0 + $0x3a] sm:$0xff] }
   0xc   :  { %3868 = vrot.lane.b32.xlu0 %v3867_v13, %s4322_s27 }
   0xd   :  { %3878 = vrot.lane.b32.xlu1 %v3877_v16, %s4322_s27 }
   0xe   :  { %19 = vsyncpa [#allocation8], 0  ;;  %3888 = vrot.lane.b32.xlu2 %v3887_v19, %s4322_s27  ;;  %v3892_v22 = vpack.i.bf16 %v120_v18, %v119_v17  ;;  %v121_v23 = vld [vmem:[%s5645_s0 + $0x41] sm:$0xff]  ;;  %v122_v24 = vld [vmem:[%s5645_s0 + $0x49] sm:$0xff]  ;;  %v3897_v25 = vpack.i.bf16 %v139_v21, %v138_v20  ;;  %vm49_vm0 = vcmask 130048   ;;  %vm322_vm1 = vcmask 261120  }
   0xf   :  { %v3902_v26 = vpack.i.bf16 %v122_v24, %v121_v23  ;;  %v140_v27 = vld [vmem:[%s5645_s0 + $0x42] sm:$0xff]  ;;  %v141_v28 = vld [vmem:[%s5645_s0 + $0x4a] sm:$0xff]  ;;  %v124_v30 = vld [vmem:[%s5645_s0 + $0x59] sm:$0xff]  ;;  %vm373_vm2 = vcmask 392192   ;;  %vm500_vm3 = vcmask 122880   ;;  %vm68_vm4 = vcmask 128000  }
  0x10   :  { %v123_v29 = vld [vmem:[%s5645_s0 + $0x51] sm:$0xff]  ;;  %v3907_v31 = vpack.i.bf16 %v141_v28, %v140_v27  ;;  %v143_v33 = vld [vmem:[%s5645_s0 + $0x5a] sm:$0xff]  ;;  %v126_v37 = vld [vmem:[%s5645_s0 + $0x69] sm:$0xff]  ;;  %vm85_vm5 = vcmask 125952   ;;  %vm951_vm6 = vcmask 126976   ;;  %vm1476_vm7 = vcmask 124928  }
  0x11   :  { %v142_v32 = vld [vmem:[%s5645_s0 + $0x52] sm:$0xff]  ;;  %v3912_v34 = vpack.i.bf16 %v124_v30, %v123_v29  ;;  %v125_v36 = vld [vmem:[%s5645_s0 + $0x61] sm:$0xff]  ;;  %v145_v39 = vld [vmem:[%s5645_s0 + $0x6a] sm:$0xff]  ;;  %vm1651_vm8 = vcmask 123904   ;;  %vm1958_vm9 = vcmask 1041408   ;;  %vm2043_vm15 = vcmask 523264  }
  0x12   :  { %v3917_v35 = vpack.i.bf16 %v143_v33, %v142_v32  ;;  %v144_v38 = vld [vmem:[%s5645_s0 + $0x62] sm:$0xff]  ;;  %v3922_v40 = vpack.i.bf16 %v126_v37, %v125_v36  ;;  %v3791_v42 = vld [vmem:[%s5646_s1 + $0x10] sm:$0xff]  ;;  %v147_v44 = vld [vmem:[%s5645_s0 + $0x7a] sm:$0xff]  ;;  %s4325_s19 = smov [#allocation7]  }
  0x13   :  { %v3927_v41 = vpack.i.bf16 %v145_v39, %v144_v38  ;;  %409 = vmatpush.bf16.msra.mxu0 %v3791_v42  ;;  %v146_v43 = vld [vmem:[%s5645_s0 + $0x72] sm:$0xff]  ;;  %v3790_v45 = vld [vmem:[%s5646_s1 + $0x8] sm:$0xff]  ;;  %v3789_v47 = vld [vmem:[%s5646_s1] sm:$0xff]  ;;  %s3401_s20 = sshll.u32 %s4325_s19, 4  ;;  %s3402_s20 = int_to_ptr.vmem [resolvable:$true] %s3401_s20 }
  0x14   :  { %3893 = vrot.lane.b32.xlu0 %v3892_v22, %s4321_s23  ;;  %v3937_v46 = vpack.i.bf16 %v147_v44, %v146_v43  ;;  %v129_v48 = vld [vmem:[%s5645_s0 + $0x81] sm:$0xff]  ;;  %v130_v49 = vld [vmem:[%s5645_s0 + $0x89] sm:$0xff]  ;;  %v127_v51 = vld [vmem:[%s5645_s0 + $0x71] sm:$0xff] }
  0x15   :  { %3898 = vrot.lane.b32.xlu1 %v3897_v25, %s4322_s27  ;;  %v3942_v50 = vpack.i.bf16 %v130_v49, %v129_v48  ;;  %v128_v52 = vld [vmem:[%s5645_s0 + $0x79] sm:$0xff]  ;;  %v131_v54 = vld [vmem:[%s5645_s0 + $0x91] sm:$0xf]  ;;  %v148_v56 = vld [vmem:[%s5645_s0 + $0x82] sm:$0xff] }
  0x16   :  { %3903 = vrot.lane.b32.xlu2 %v3902_v26, %s4321_s23  ;;  %v3932_v53 = vpack.i.bf16 %v128_v52, %v127_v51  ;;  %v150_v55 = vld [vmem:[%s5645_s0 + $0x92] sm:$0xf]  ;;  %v149_v57 = vld [vmem:[%s5645_s0 + $0x8a] sm:$0xff]  ;;  %v94_v62 = vld [vmem:[%s5645_s0] sm:$0xff] }
  0x17   :  { %410 = vmatpush.bf16.msra.mxu0 %v3790_v45  ;;  %v3947_v59 = vpack.i.bf16 %v149_v57, %v148_v56  ;;  %v95_v63 = vld [vmem:[%s5645_s0 + $0x8] sm:$0xff]  ;;  %v96_v12 = vld [vmem:[%s5645_s0 + $0x10] sm:$0xff]  ;;  %v97_v13 = vld [vmem:[%s5645_s0 + $0x18] sm:$0xff] }
  0x18   :  { %v98_v25 = vld [vmem:[%s5645_s0 + $0x20] sm:$0xff]  ;;  %v99_v26 = vld [vmem:[%s5645_s0 + $0x28] sm:$0xff]  ;;  %v100_v38 = vld [vmem:[%s5645_s0 + $0x30] sm:$0xff] }
  0x19   :  { %v101_v39 = vld [vmem:[%s5645_s0 + $0x38] sm:$0xff]  ;;  %v102_v51 = vld [vmem:[%s5645_s0 + $0x40] sm:$0xff]  ;;  %v103_v52 = vld [vmem:[%s5645_s0 + $0x48] sm:$0xff] }
  0x1b   :  { %411 = vmatpush.bf16.msra.mxu0 %v3789_v47 }
  0x1c   :  { %3908 = vrot.lane.b32.xlu0 %v3907_v31, %s4322_s27 }
  0x1d   :  { %3913 = vrot.lane.b32.xlu1 %v3912_v34, %s4321_s23 }
  0x1e   :  { %3918 = vrot.lane.b32.xlu2 %v3917_v35, %s4322_s27 }
  0x24   :  { %3923 = vrot.lane.b32.xlu0 %v3922_v40, %s4321_s23 }
  0x25   :  { %3928 = vrot.lane.b32.xlu1 %v3927_v41, %s4322_s27 }
  0x26   :  { %3933 = vrot.lane.b32.xlu2 %v3932_v53, %s4321_s23 }
  0x2c   :  { %3938 = vrot.lane.b32.xlu0 %v3937_v46, %s4322_s27 }
  0x2d   :  { %3943 = vrot.lane.b32.xlu1 %v3942_v50, %s4321_s23 }
  0x2e   :  { %3948 = vrot.lane.b32.xlu2 %v3947_v59, %s4322_s27 }
  0x34   :  { %206 = vrot.lane.b32.xlu0 %v131_v54, %s4321_s23 }
  0x35   :  { %282 = vrot.lane.b32.xlu1 %v150_v55, %s4322_s27 }
  0x5f   :  { %v3884_v18 = vpop.permute.xlu2 %3883 }
  0x60   :  { %v3886_v22 = vunpack.i.h.bf16 %v3884_v18  ;;  %v3885_v23 = vunpack.i.l.bf16 %v3884_v18 }
  0x62   :  { %v307_v29 = vsel %vm49_vm0, %v98_v25, %v3885_v23  ;;  %v308_v30 = vsel %vm49_vm0, %v99_v26, %v3886_v22 }
  0x68   :  { %v3889_v24 = vpop.permute.xlu2 %3888 }
  0x69   :  { %v3891_v27 = vunpack.i.h.bf16 %v3889_v24  ;;  %v3890_v28 = vunpack.i.l.bf16 %v3889_v24 }
  0x6b   :  { %v327_v31 = vsel %vm322_vm1, %v307_v29, %v3890_v28  ;;  %v328_v32 = vsel %vm322_vm1, %v308_v30, %v3891_v27  ;;  %v108_v27 = vld [vmem:[%s5645_s0 + $0x70] sm:$0xff]  ;;  %v109_v28 = vld [vmem:[%s5645_s0 + $0x78] sm:$0xff] }
  0x6c   :  { %v344_v33 = vpack.c.bf16 %v328_v32, %v327_v31 }
  0x70   :  { %v3904_v47 = vpop.permute.xlu2 %3903 }
  0x71   :  { %v3906_v48 = vunpack.i.h.bf16 %v3904_v47  ;;  %v3905_v49 = vunpack.i.l.bf16 %v3904_v47 }
  0x73   :  { %v311_v55 = vsel %vm49_vm0, %v102_v51, %v3905_v49  ;;  %v312_v56 = vsel %vm49_vm0, %v103_v52, %v3906_v48  ;;  %v4711_v48 = vld [vmem:[%s5647_s2] ss:$0 sm:$0xff] }
  0x76   :  { %v3864_v58 = vpop.permute.xlu0 %3863 }
  0x77   :  { %v3866_v60 = vunpack.i.h.bf16 %v3864_v58  ;;  %v3865_v61 = vunpack.i.l.bf16 %v3864_v58  ;;  %v3874_v1 = vpop.permute.xlu1 %3873 }
  0x78   :  { %v3876_v9 = vunpack.i.h.bf16 %v3874_v1  ;;  %v3875_v10 = vunpack.i.l.bf16 %v3874_v1  ;;  %v105_v1 = vld [vmem:[%s5645_s0 + $0x58] sm:$0xff] }
  0x79   :  { %v303_v4 = vsel %vm49_vm0, %v94_v62, %v3865_v61  ;;  %v304_v5 = vsel %vm49_vm0, %v95_v63, %v3866_v60  ;;  %v3919_v63 = vpop.permute.xlu2 %3918 }
  0x7a   :  { %v305_v16 = vsel %vm49_vm0, %v96_v12, %v3875_v10  ;;  %v306_v17 = vsel %vm49_vm0, %v97_v13, %v3876_v9  ;;  %v4323_v10 = vmov 0.0  }
  0x7b   :  { %50 = vst.msk [vmem:[#allocation2] sm:$0xff] %vm49_vm0, %v4323_v10 }
  0x7c   :  { %51 = vst.msk [vmem:[#allocation2 + $0x8] sm:$0xff] %vm49_vm0, %v4323_v10 }
  0x7d   :  { %52 = vst.msk [vmem:[#allocation2 + $0x10] sm:$0xff] %vm49_vm0, %v4323_v10 }
  0x7e   :  { %v3869_v0 = vpop.permute.xlu0 %3868  ;;  %53 = vst.msk [vmem:[#allocation2 + $0x18] sm:$0xff] %vm49_vm0, %v4323_v10 }
  0x7f   :  { %v3871_v2 = vunpack.i.h.bf16 %v3869_v0  ;;  %v3870_v3 = vunpack.i.l.bf16 %v3869_v0  ;;  %v3879_v11 = vpop.permute.xlu1 %3878  ;;  %v104_v0 = vld [vmem:[%s5645_s0 + $0x50] sm:$0xff]  ;;  %54 = vst.msk [vmem:[#allocation2 + $0x20] sm:$0xff] %vm49_vm0, %v4323_v10 }
  0x80   :  { %v3881_v14 = vunpack.i.h.bf16 %v3879_v11  ;;  %v3880_v15 = vunpack.i.l.bf16 %v3879_v11  ;;  %55 = vst.msk [vmem:[#allocation2 + $0x28] sm:$0xff] %vm49_vm0, %v4323_v10 }
  0x81   :  { %v323_v6 = vsel %vm322_vm1, %v303_v4, %v3870_v3  ;;  %v324_v7 = vsel %vm322_vm1, %v304_v5, %v3871_v2  ;;  %v3921_v2 = vunpack.i.h.bf16 %v3919_v63  ;;  %v3920_v3 = vunpack.i.l.bf16 %v3919_v63  ;;  %56 = vst.msk [vmem:[#allocation2 + $0x30] sm:$0xff] %vm49_vm0, %v4323_v10  ;;  %v3934_v23 = vpop.permute.xlu2 %3933 }
  0x82   :  { %v342_v8 = vpack.c.bf16 %v324_v7, %v323_v6  ;;  %v325_v19 = vsel %vm322_vm1, %v305_v16, %v3880_v15  ;;  %v326_v20 = vsel %vm322_vm1, %v306_v17, %v3881_v14  ;;  %v106_v14 = vld [vmem:[%s5645_s0 + $0x60] sm:$0xff]  ;;  %v107_v15 = vld [vmem:[%s5645_s0 + $0x68] sm:$0xff]  ;;  %57 = vst.msk [vmem:[#allocation2 + $0x38] sm:$0xff] %vm49_vm0, %v4323_v10  ;;  %v3936_v24 = vunpack.i.h.bf16 %v3934_v23 }
  0x83   :  { %v343_v21 = vpack.c.bf16 %v326_v20, %v325_v19  ;;  %58 = vst.msk [vmem:[#allocation2 + $0x40] sm:$0xff] %vm49_vm0, %v4323_v10  ;;  %v3935_v25 = vunpack.i.l.bf16 %v3934_v23 }
  0x84   :  { %3424 = vmatmul.msk.bf16.vlgmr.msra.gmra.mxu0 %vm373_vm2, %v342_v8  ;;  %59 = vst.msk [vmem:[#allocation2 + $0x48] sm:$0xff] %vm49_vm0, %v4323_v10  ;;  %v318_v32 = vsel %vm49_vm0, %v109_v28, %v3936_v24 }
  0x85   :  { %60 = vst.msk [vmem:[#allocation2 + $0x50] sm:$0xff] %vm49_vm0, %v4323_v10  ;;  %v317_v31 = vsel %vm49_vm0, %v108_v27, %v3935_v25 }
  0x86   :  { %v3894_v34 = vpop.permute.xlu0 %3893  ;;  %61 = vst.msk [vmem:[#allocation2 + $0x58] sm:$0xff] %vm49_vm0, %v4323_v10 }
  0x87   :  { %v3896_v35 = vunpack.i.h.bf16 %v3894_v34  ;;  %v3895_v36 = vunpack.i.l.bf16 %v3894_v34  ;;  %v3899_v37 = vpop.permute.xlu1 %3898  ;;  %62 = vst.msk [vmem:[#allocation2 + $0x60] sm:$0xff] %vm49_vm0, %v4323_v10 }
  0x88   :  { %v3901_v40 = vunpack.i.h.bf16 %v3899_v37  ;;  %v3900_v41 = vunpack.i.l.bf16 %v3899_v37  ;;  %63 = vst.msk [vmem:[#allocation2 + $0x68] sm:$0xff] %vm49_vm0, %v4323_v10 }
  0x89   :  { %v309_v42 = vsel %vm49_vm0, %v100_v38, %v3895_v36  ;;  %v310_v43 = vsel %vm49_vm0, %v101_v39, %v3896_v35  ;;  %64 = vst.msk [vmem:[#allocation2 + $0x70] sm:$0xff] %vm49_vm0, %v4323_v10  ;;  %v3949_v39 = vpop.permute.xlu2 %3948 }
  0x8a   :  { %v329_v44 = vsel %vm322_vm1, %v309_v42, %v3900_v41  ;;  %v330_v45 = vsel %vm322_vm1, %v310_v43, %v3901_v40  ;;  %65 = vst.msk [vmem:[#allocation2 + $0x78] sm:$0xff] %vm49_vm0, %v4323_v10  ;;  %v110_v40 = vld [vmem:[%s5645_s0 + $0x80] sm:$0xff]  ;;  %v111_v41 = vld [vmem:[%s5645_s0 + $0x88] sm:$0xff]  ;;  %v3951_v42 = vunpack.i.h.bf16 %v3949_v39  ;;  %v3950_v43 = vunpack.i.l.bf16 %v3949_v39 }
  0x8b   :  { %v345_v46 = vpack.c.bf16 %v330_v45, %v329_v44  ;;  %66 = vst.msk [vmem:[#allocation2 + $0x80] sm:$0xff] %vm49_vm0, %v4323_v10 }
  0x8c   :  { %67 = vst.msk [vmem:[#allocation2 + $0x88] sm:$0xff] %vm49_vm0, %v4323_v10 }
  0x8d   :  { %70 = vst.msk [vmem:[#allocation3] sm:$0xff] %vm49_vm0, %v4323_v10 }
  0x8e   :  { %v3909_v50 = vpop.permute.xlu0 %3908  ;;  %71 = vst.msk [vmem:[#allocation3 + $0x8] sm:$0xff] %vm49_vm0, %v4323_v10 }
  0x8f   :  { %v3911_v53 = vunpack.i.h.bf16 %v3909_v50  ;;  %v3910_v54 = vunpack.i.l.bf16 %v3909_v50  ;;  %v3914_v60 = vpop.permute.xlu1 %3913  ;;  %72 = vst.msk [vmem:[#allocation3 + $0x10] sm:$0xff] %vm49_vm0, %v4323_v10 }
  0x90   :  { %v3916_v61 = vunpack.i.h.bf16 %v3914_v60  ;;  %v3915_v62 = vunpack.i.l.bf16 %v3914_v60  ;;  %73 = vst.msk [vmem:[#allocation3 + $0x18] sm:$0xff] %vm49_vm0, %v4323_v10 }
  0x91   :  { %v331_v57 = vsel %vm322_vm1, %v311_v55, %v3910_v54  ;;  %v332_v58 = vsel %vm322_vm1, %v312_v56, %v3911_v53  ;;  %74 = vst.msk [vmem:[#allocation3 + $0x20] sm:$0xff] %vm49_vm0, %v4323_v10  ;;  %v112_v54 = vld [vmem:[%s5645_s0 + $0x90] sm:$0xf]  ;;  %s3403_s0 = sshll.u32 %s5659_s14, 4  ;;  %s3404_s0 = int_to_ptr.hbm [resolvable:$true] %s3403_s0 }
  0x92   :  { %v346_v59 = vpack.c.bf16 %v332_v58, %v331_v57  ;;  %v313_v4 = vsel %vm49_vm0, %v104_v0, %v3915_v62  ;;  %v314_v5 = vsel %vm49_vm0, %v105_v1, %v3916_v61  ;;  %75 = vst.msk [vmem:[#allocation3 + $0x28] sm:$0xff] %vm49_vm0, %v4323_v10 }
  0x93   :  { %v333_v6 = vsel %vm322_vm1, %v313_v4, %v3920_v3  ;;  %v334_v7 = vsel %vm322_vm1, %v314_v5, %v3921_v2  ;;  %76 = vst.msk [vmem:[#allocation3 + $0x30] sm:$0xff] %vm49_vm0, %v4323_v10 }
  0x94   :  { %3425 = vmatmul.msk.bf16.gmra.mxu0 %vm373_vm2, %v343_v21  ;;  %v347_v8 = vpack.c.bf16 %v334_v7, %v333_v6  ;;  %77 = vst.msk [vmem:[#allocation3 + $0x38] sm:$0xff] %vm49_vm0, %v4323_v10 }
  0x95   :  { %78 = vst.msk [vmem:[#allocation3 + $0x40] sm:$0xff] %vm49_vm0, %v4323_v10 }
  0x96   :  { %v3924_v9 = vpop.permute.xlu0 %3923  ;;  %79 = vst.msk [vmem:[#allocation3 + $0x48] sm:$0xff] %vm49_vm0, %v4323_v10 }
  0x97   :  { %v3926_v11 = vunpack.i.h.bf16 %v3924_v9  ;;  %v3925_v12 = vunpack.i.l.bf16 %v3924_v9  ;;  %v3929_v13 = vpop.permute.xlu1 %3928  ;;  %80 = vst.msk [vmem:[#allocation4] sm:$0xff] %vm49_vm0, %v4323_v10 }
  0x98   :  { %v3931_v16 = vunpack.i.h.bf16 %v3929_v13  ;;  %v3930_v17 = vunpack.i.l.bf16 %v3929_v13  ;;  %81 = vst.msk [vmem:[#allocation4 + $0x8] sm:$0xff] %vm49_vm0, %v4323_v10 }
  0x99   :  { %v315_v18 = vsel %vm49_vm0, %v106_v14, %v3925_v12  ;;  %v316_v19 = vsel %vm49_vm0, %v107_v15, %v3926_v11  ;;  %82 = vst.msk [vmem:[#allocation4 + $0x10] sm:$0xff] %vm49_vm0, %v4323_v10 }
  0x9a   :  { %v335_v20 = vsel %vm322_vm1, %v315_v18, %v3930_v17  ;;  %v336_v21 = vsel %vm322_vm1, %v316_v19, %v3931_v16  ;;  %83 = vst.msk [vmem:[#allocation4 + $0x18] sm:$0xff] %vm49_vm0, %v4323_v10 }
  0x9b   :  { %v348_v22 = vpack.c.bf16 %v336_v21, %v335_v20  ;;  %84 = vst.msk [vmem:[#allocation4 + $0x20] sm:$0xff] %vm49_vm0, %v4323_v10 }
  0x9c   :  { %69 = vst.msk [vmem:[#allocation2 + $0x90] sm:$0x3f] %vm68_vm4, %v4323_v10 }
  0x9d   :  { %86 = vst.msk [vmem:[#allocation4 + $0x28] sm:$0xf] %vm85_vm5, %v4323_v10 }
  0x9e   :  { %v3939_v26 = vpop.permute.xlu0 %3938 }
  0x9f   :  { %v3941_v29 = vunpack.i.h.bf16 %v3939_v26  ;;  %v3940_v30 = vunpack.i.l.bf16 %v3939_v26  ;;  %v3944_v36 = vpop.permute.xlu1 %3943 }
  0xa0   :  { %v3946_v37 = vunpack.i.h.bf16 %v3944_v36  ;;  %v3945_v38 = vunpack.i.l.bf16 %v3944_v36 }
  0xa1   :  { %v338_v34 = vsel %vm322_vm1, %v318_v32, %v3941_v29 }
  0xa2   :  { %v319_v44 = vsel %vm49_vm0, %v110_v40, %v3945_v38  ;;  %v320_v45 = vsel %vm49_vm0, %v111_v41, %v3946_v37 }
  0xa3   :  { %v340_v47 = vsel %vm322_vm1, %v320_v45, %v3951_v42 }
  0xa4   :  { %3426 = vmatmul.msk.bf16.gmra.mxu0 %vm373_vm2, %v344_v33  ;;  %v337_v33 = vsel %vm322_vm1, %v317_v31, %v3940_v30 }
  0xa5   :  { %v349_v35 = vpack.c.bf16 %v338_v34, %v337_v33 }
  0xa6   :  { %v207_v53 = vpop.permute.xlu0 %206 }
  0xa7   :  { %v321_v57 = vsel %vm49_vm0, %v112_v54, %v207_v53  ;;  %v283_v58 = vpop.permute.xlu1 %282 }
  0xa8   :  { %v341_v60 = vsel %vm322_vm1, %v321_v57, %v283_v58 }
  0xa9   :  { %v351_v61 = vpack.c.bf16 %v341_v60, %v341_v60 }
  0xb4   :  { %3427 = vmatmul.msk.bf16.gmra.mxu0 %vm373_vm2, %v345_v46  ;;  %v339_v46 = vsel %vm322_vm1, %v319_v44, %v3950_v43 }
  0xb5   :  { %v350_v49 = vpack.c.bf16 %v340_v47, %v339_v46 }
  0xc4   :  { %3428 = vmatmul.msk.bf16.gmra.mxu0 %vm373_vm2, %v346_v59 }
  0xd4   :  { %3429 = vmatmul.msk.bf16.gmra.mxu0 %vm373_vm2, %v347_v8 }
  0xe4   :  { %3430 = vmatmul.msk.bf16.gmra.mxu0 %vm373_vm2, %v348_v22 }
  0xf4   :  { %3431 = vmatmul.msk.bf16.gmra.mxu0 %vm373_vm2, %v349_v35 }
 0x101   :  { %v413_v50 = vpop.f32.mrf.mxu0 }
 0x102   :  { %v414_v51 = vadd.f32 %v4711_v48, %v413_v50 }
 0x104   :  { %v462_v52 = vmax.f32 %v414_v51, 0.0  ;;  %3432 = vmatmul.msk.bf16.gmra.mxu0 %vm373_vm2, %v350_v49 }
 0x106   :  { %481 = vst.msk [vmem:[#allocation2 + $0x1] sm:$0xff] %vm49_vm0, %v462_v52 }
 0x107   :  { %501 = vst.msk [vmem:[#allocation2 + $0x1] sm:$0x1] %vm500_vm3, %v4323_v10 }
 0x109   :  { %v415_v55 = vpop.f32.mrf.mxu0 }
 0x10a   :  { %v416_v56 = vadd.f32 %v4711_v48, %v415_v55 }
 0x10c   :  { %v463_v59 = vmax.f32 %v416_v56, 0.0 }
 0x10e   :  { %482 = vst.msk [vmem:[#allocation2 + $0x9] sm:$0xff] %vm49_vm0, %v463_v59  ;;  %v533_v1 = vld [vmem:[#allocation2 + $0x1] sm:$0xff] }
 0x111   :  { %v418_v62 = vpop.f32.mrf.mxu0 }
 0x112   :  { %v419_v63 = vadd.f32 %v4711_v48, %v418_v62 }
 0x114   :  { %v464_v0 = vmax.f32 %v419_v63, 0.0  ;;  %3433 = vmatmul.msk.bf16.gmra.mxu0 %vm373_vm2, %v351_v61 }
 0x115   :  { %v534_v2 = vld [vmem:[#allocation2 + $0x9] sm:$0xff] }
 0x116   :  { %483 = vst.msk [vmem:[#allocation2 + $0x11] sm:$0xff] %vm49_vm0, %v464_v0  ;;  %v3952_v3 = vpack.i.bf16 %v534_v2, %v533_v1  ;;  %v552_v7 = vld [vmem:[#allocation2 + $0x2] sm:$0xff] }
 0x118   :  { %3953 = vrot.lane.b32.xlu2 %v3952_v3, %s4321_s23 }
 0x119   :  { %v420_v4 = vpop.f32.mrf.mxu0 }
 0x11a   :  { %v421_v5 = vadd.f32 %v4711_v48, %v420_v4 }
 0x11c   :  { %v465_v6 = vmax.f32 %v421_v5, 0.0  ;;  %v3794_v5 = vld [vmem:[%s5646_s1 + $0x28] sm:$0xff] }
 0x11d   :  { %v553_v8 = vld [vmem:[#allocation2 + $0xa] sm:$0xff]  ;;  %827 = vmatpush.bf16.msra.mxu1 %v3794_v5 }
 0x11e   :  { %484 = vst.msk [vmem:[#allocation2 + $0x19] sm:$0xff] %vm49_vm0, %v465_v6  ;;  %v3957_v9 = vpack.i.bf16 %v553_v8, %v552_v7  ;;  %v535_v14 = vld [vmem:[#allocation2 + $0x11] sm:$0xff] }
 0x120   :  { %3958 = vrot.lane.b32.xlu0 %v3957_v9, %s4322_s27  ;;  %v3793_v9 = vld [vmem:[%s5646_s1 + $0x20] sm:$0xff] }
 0x121   :  { %v423_v11 = vpop.f32.mrf.mxu0  ;;  %828 = vmatpush.bf16.msra.mxu1 %v3793_v9 }
 0x122   :  { %v424_v12 = vadd.f32 %v4711_v48, %v423_v11 }
 0x124   :  { %v466_v13 = vmax.f32 %v424_v12, 0.0 }
 0x125   :  { %v536_v15 = vld [vmem:[#allocation2 + $0x19] sm:$0xff] }
 0x126   :  { %485 = vst.msk [vmem:[#allocation2 + $0x21] sm:$0xff] %vm49_vm0, %v466_v13  ;;  %v3962_v16 = vpack.i.bf16 %v536_v15, %v535_v14  ;;  %v554_v20 = vld [vmem:[#allocation2 + $0x12] sm:$0xff] }
 0x127   :  { %v3792_v14 = vld [vmem:[%s5646_s1 + $0x18] sm:$0xff] }
 0x128   :  { %3963 = vrot.lane.b32.xlu1 %v3962_v16, %s4321_s23  ;;  %829 = vmatpush.bf16.msra.mxu1 %v3792_v14 }
 0x129   :  { %v425_v17 = vpop.f32.mrf.mxu0 }
 0x12a   :  { %v426_v18 = vadd.f32 %v4711_v48, %v425_v17 }
 0x12c   :  { %v467_v19 = vmax.f32 %v426_v18, 0.0 }
 0x12d   :  { %v555_v21 = vld [vmem:[#allocation2 + $0x1a] sm:$0xff] }
 0x12e   :  { %486 = vst.msk [vmem:[#allocation2 + $0x29] sm:$0xff] %vm49_vm0, %v467_v19  ;;  %v3967_v22 = vpack.i.bf16 %v555_v21, %v554_v20  ;;  %v537_v26 = vld [vmem:[#allocation2 + $0x21] sm:$0xff] }
 0x130   :  { %3968 = vrot.lane.b32.xlu2 %v3967_v22, %s4322_s27 }
 0x131   :  { %v428_v23 = vpop.f32.mrf.mxu0 }
 0x132   :  { %v429_v24 = vadd.f32 %v4711_v48, %v428_v23 }
 0x134   :  { %v468_v25 = vmax.f32 %v429_v24, 0.0 }
 0x135   :  { %v538_v27 = vld [vmem:[#allocation2 + $0x29] sm:$0xff] }
 0x136   :  { %487 = vst.msk [vmem:[#allocation2 + $0x31] sm:$0xff] %vm49_vm0, %v468_v25  ;;  %v3972_v28 = vpack.i.bf16 %v538_v27, %v537_v26  ;;  %v556_v32 = vld [vmem:[#allocation2 + $0x22] sm:$0xff] }
 0x138   :  { %3973 = vrot.lane.b32.xlu0 %v3972_v28, %s4321_s23 }
 0x139   :  { %v430_v29 = vpop.f32.mrf.mxu0 }
 0x13a   :  { %v431_v30 = vadd.f32 %v4711_v48, %v430_v29 }
 0x13c   :  { %v469_v31 = vmax.f32 %v431_v30, 0.0 }
 0x13d   :  { %v557_v33 = vld [vmem:[#allocation2 + $0x2a] sm:$0xff] }
 0x13e   :  { %488 = vst.msk [vmem:[#allocation2 + $0x39] sm:$0xff] %vm49_vm0, %v469_v31  ;;  %v3977_v34 = vpack.i.bf16 %v557_v33, %v556_v32  ;;  %v539_v38 = vld [vmem:[#allocation2 + $0x31] sm:$0xff] }
 0x140   :  { %3978 = vrot.lane.b32.xlu1 %v3977_v34, %s4322_s27 }
 0x141   :  { %v433_v35 = vpop.f32.mrf.mxu0 }
 0x142   :  { %v434_v36 = vadd.f32 %v4711_v48, %v433_v35 }
 0x144   :  { %v470_v37 = vmax.f32 %v434_v36, 0.0 }
 0x145   :  { %v540_v39 = vld [vmem:[#allocation2 + $0x39] sm:$0xff] }
 0x146   :  { %489 = vst.msk [vmem:[#allocation2 + $0x41] sm:$0xff] %vm49_vm0, %v470_v37  ;;  %v3982_v40 = vpack.i.bf16 %v540_v39, %v539_v38  ;;  %v558_v44 = vld [vmem:[#allocation2 + $0x32] sm:$0xff] }
 0x148   :  { %3983 = vrot.lane.b32.xlu2 %v3982_v40, %s4321_s23 }
 0x149   :  { %v435_v41 = vpop.f32.mrf.mxu0 }
 0x14a   :  { %v436_v42 = vadd.f32 %v4711_v48, %v435_v41 }
 0x14c   :  { %v471_v43 = vmax.f32 %v436_v42, 0.0  ;;  %v515_v42 = vld [vmem:[#allocation2 + $0x8] sm:$0xff] }
 0x14d   :  { %v559_v45 = vld [vmem:[#allocation2 + $0x3a] sm:$0xff] }
 0x14e   :  { %490 = vst.msk [vmem:[#allocation2 + $0x49] sm:$0xff] %vm49_vm0, %v471_v43  ;;  %v3987_v46 = vpack.i.bf16 %v559_v45, %v558_v44  ;;  %v541_v51 = vld [vmem:[#allocation2 + $0x41] sm:$0xff] }
 0x14f   :  { %502 = vst.msk [vmem:[#allocation2 + $0x4a] sm:$0x1] %vm500_vm3, %v4323_v10  ;;  %v514_v43 = vld [vmem:[#allocation2] sm:$0xff] }
 0x150   :  { %503 = vst.msk [vmem:[#allocation2 + $0x4b] sm:$0x1] %vm500_vm3, %v4323_v10  ;;  %3988 = vrot.lane.b32.xlu0 %v3987_v46, %s4322_s27 }
 0x151   :  { %v438_v47 = vpop.f32.mrf.mxu0 }
 0x152   :  { %v439_v49 = vadd.f32 %v4711_v48, %v438_v47 }
 0x154   :  { %v472_v50 = vmax.f32 %v439_v49, 0.0 }
 0x155   :  { %v560_v57 = vld [vmem:[#allocation2 + $0x42] sm:$0xff] }
 0x156   :  { %491 = vst.msk [vmem:[#allocation2 + $0x51] sm:$0xff] %vm49_vm0, %v472_v50 }
 0x157   :  { %v542_v52 = vld [vmem:[#allocation2 + $0x49] sm:$0xff] }
 0x158   :  { %v3992_v53 = vpack.i.bf16 %v542_v52, %v541_v51 }
 0x159   :  { %v440_v54 = vpop.f32.mrf.mxu0 }
 0x15a   :  { %v441_v55 = vadd.f32 %v4711_v48, %v440_v54  ;;  %3993 = vrot.lane.b32.xlu1 %v3992_v53, %s4321_s23 }
 0x15c   :  { %v473_v56 = vmax.f32 %v441_v55, 0.0 }
 0x15d   :  { %v561_v58 = vld [vmem:[#allocation2 + $0x4a] sm:$0xff] }
 0x15e   :  { %492 = vst.msk [vmem:[#allocation2 + $0x59] sm:$0xff] %vm49_vm0, %v473_v56  ;;  %v3997_v59 = vpack.i.bf16 %v561_v58, %v560_v57  ;;  %v543_v63 = vld [vmem:[#allocation2 + $0x51] sm:$0xff] }
 0x160   :  { %3998 = vrot.lane.b32.xlu2 %v3997_v59, %s4322_s27 }
 0x161   :  { %v443_v60 = vpop.f32.mrf.mxu0 }
 0x162   :  { %v444_v61 = vadd.f32 %v4711_v48, %v443_v60 }
 0x164   :  { %v474_v62 = vmax.f32 %v444_v61, 0.0 }
 0x165   :  { %v544_v0 = vld [vmem:[#allocation2 + $0x59] sm:$0xff] }
 0x166   :  { %493 = vst.msk [vmem:[#allocation2 + $0x61] sm:$0xff] %vm49_vm0, %v474_v62  ;;  %v4002_v1 = vpack.i.bf16 %v544_v0, %v543_v63  ;;  %v562_v6 = vld [vmem:[#allocation2 + $0x52] sm:$0xff] }
 0x168   :  { %4003 = vrot.lane.b32.xlu0 %v4002_v1, %s4321_s23  ;;  %v516_v1 = vld [vmem:[#allocation2 + $0x10] sm:$0xff] }
 0x169   :  { %v445_v2 = vpop.f32.mrf.mxu0 }
 0x16a   :  { %v446_v3 = vadd.f32 %v4711_v48, %v445_v2  ;;  %v517_v2 = vld [vmem:[#allocation2 + $0x18] sm:$0xff] }
 0x16c   :  { %v475_v4 = vmax.f32 %v446_v3, 0.0 }
 0x16d   :  { %v563_v7 = vld [vmem:[#allocation2 + $0x5a] sm:$0xff] }
 0x16e   :  { %494 = vst.msk [vmem:[#allocation2 + $0x69] sm:$0xff] %vm49_vm0, %v475_v4  ;;  %v4007_v8 = vpack.i.bf16 %v563_v7, %v562_v6  ;;  %v545_v15 = vld [vmem:[#allocation2 + $0x61] sm:$0xff] }
 0x170   :  { %4008 = vrot.lane.b32.xlu1 %v4007_v8, %s4322_s27 }
 0x171   :  { %v448_v11 = vpop.f32.mrf.mxu0 }
 0x172   :  { %v449_v12 = vadd.f32 %v4711_v48, %v448_v11  ;;  %v3954_v33 = vpop.permute.xlu2 %3953 }
 0x173   :  { %v3956_v37 = vunpack.i.h.bf16 %v3954_v33  ;;  %v3955_v38 = vunpack.i.l.bf16 %v3954_v33 }
 0x174   :  { %v476_v13 = vmax.f32 %v449_v12, 0.0 }
 0x175   :  { %v546_v16 = vld [vmem:[#allocation2 + $0x69] sm:$0xff]  ;;  %v724_v46 = vsel %vm49_vm0, %v515_v42, %v3956_v37  ;;  %v723_v47 = vsel %vm49_vm0, %v514_v43, %v3955_v38 }
 0x176   :  { %495 = vst.msk [vmem:[#allocation2 + $0x71] sm:$0xff] %vm49_vm0, %v476_v13  ;;  %v4012_v17 = vpack.i.bf16 %v546_v16, %v545_v15  ;;  %v564_v21 = vld [vmem:[#allocation2 + $0x62] sm:$0xff] }
 0x177   :  { %v518_v15 = vld [vmem:[#allocation2 + $0x20] sm:$0xff]  ;;  %v519_v16 = vld [vmem:[#allocation2 + $0x28] sm:$0xff] }
 0x178   :  { %4013 = vrot.lane.b32.xlu2 %v4012_v17, %s4321_s23  ;;  %v523_v42 = vld [vmem:[#allocation2 + $0x48] sm:$0xff] }
 0x179   :  { %v450_v18 = vpop.f32.mrf.mxu0 }
 0x17a   :  { %v451_v19 = vadd.f32 %v4711_v48, %v450_v18 }
 0x17c   :  { %v477_v20 = vmax.f32 %v451_v19, 0.0 }
 0x17d   :  { %v565_v22 = vld [vmem:[#allocation2 + $0x6a] sm:$0xff] }
 0x17e   :  { %496 = vst.msk [vmem:[#allocation2 + $0x79] sm:$0xff] %vm49_vm0, %v477_v20  ;;  %v4017_v23 = vpack.i.bf16 %v565_v22, %v564_v21  ;;  %v547_v27 = vld [vmem:[#allocation2 + $0x71] sm:$0xff] }
 0x180   :  { %4018 = vrot.lane.b32.xlu0 %v4017_v23, %s4322_s27 }
 0x181   :  { %v453_v24 = vpop.f32.mrf.mxu0 }
 0x182   :  { %v454_v25 = vadd.f32 %v4711_v48, %v453_v24 }
 0x184   :  { %v478_v26 = vmax.f32 %v454_v25, 0.0 }
 0x185   :  { %v548_v28 = vld [vmem:[#allocation2 + $0x79] sm:$0xff] }
 0x186   :  { %497 = vst.msk [vmem:[#allocation2 + $0x81] sm:$0xff] %vm49_vm0, %v478_v26  ;;  %v4022_v29 = vpack.i.bf16 %v548_v28, %v547_v27  ;;  %v566_v34 = vld [vmem:[#allocation2 + $0x72] sm:$0xff] }
 0x187   :  { %v520_v28 = vld [vmem:[#allocation2 + $0x30] sm:$0xff] }
 0x188   :  { %4023 = vrot.lane.b32.xlu1 %v4022_v29, %s4321_s23  ;;  %v521_v29 = vld [vmem:[#allocation2 + $0x38] sm:$0xff] }
 0x189   :  { %v455_v30 = vpop.f32.mrf.mxu0 }
 0x18a   :  { %v456_v31 = vadd.f32 %v4711_v48, %v455_v30  ;;  %v3969_v61 = vpop.permute.xlu2 %3968 }
 0x18b   :  { %v3971_v5 = vunpack.i.h.bf16 %v3969_v61  ;;  %v3970_v6 = vunpack.i.l.bf16 %v3969_v61 }
 0x18c   :  { %v479_v32 = vmax.f32 %v456_v31, 0.0 }
 0x18d   :  { %v567_v35 = vld [vmem:[#allocation2 + $0x7a] sm:$0xff] }
 0x18e   :  { %v4027_v36 = vpack.i.bf16 %v567_v35, %v566_v34  ;;  %498 = vst.msk [vmem:[#allocation2 + $0x89] sm:$0xff] %vm49_vm0, %v479_v32  ;;  %v549_v50 = vld [vmem:[#allocation2 + $0x81] sm:$0xff] }
 0x190   :  { %4028 = vrot.lane.b32.xlu2 %v4027_v36, %s4322_s27 }
 0x191   :  { %v458_v39 = vpop.f32.mrf.mxu0 }
 0x192   :  { %v459_v40 = vadd.f32 %v4711_v48, %v458_v39  ;;  %v3959_v41 = vpop.permute.xlu0 %3958 }
 0x193   :  { %v3961_v44 = vunpack.i.h.bf16 %v3959_v41  ;;  %v3960_v45 = vunpack.i.l.bf16 %v3959_v41  ;;  %v522_v41 = vld [vmem:[#allocation2 + $0x40] sm:$0xff] }
 0x194   :  { %v480_v49 = vmax.f32 %v459_v40, 0.0 }
 0x195   :  { %v550_v51 = vld [vmem:[#allocation2 + $0x89] sm:$0xff]  ;;  %v742_v52 = vsel %vm322_vm1, %v723_v47, %v3960_v45  ;;  %v743_v53 = vsel %vm322_vm1, %v724_v46, %v3961_v44 }
 0x196   :  { %499 = vst.msk [vmem:[#allocation2 + $0x91] sm:$0xf] %vm85_vm5, %v480_v49  ;;  %v4032_v54 = vpack.i.bf16 %v550_v51, %v549_v50  ;;  %v761_v48 = vpack.c.bf16 %v743_v53, %v742_v52  ;;  %v568_v59 = vld [vmem:[#allocation2 + $0x82] sm:$0xff] }
 0x197   :  { %504 = vst.msk [vmem:[#allocation2 + $0x94] sm:$0x1] %vm500_vm3, %v4323_v10 }
 0x198   :  { %4033 = vrot.lane.b32.xlu0 %v4032_v54, %s4321_s23  ;;  %3453 = vmatmul.msk.bf16.vlgmr.msra.gmra.mxu1 %vm373_vm2, %v761_v48  ;;  %v524_v48 = vld [vmem:[#allocation2 + $0x50] sm:$0xff] }
 0x199   :  { %v460_v55 = vpop.f32.mrf.mxu0 }
 0x19a   :  { %v3964_v56 = vpop.permute.xlu1 %3963  ;;  %v525_v55 = vld [vmem:[#allocation2 + $0x58] sm:$0xff] }
 0x19b   :  { %v3966_v57 = vunpack.i.h.bf16 %v3964_v56  ;;  %v3965_v58 = vunpack.i.l.bf16 %v3964_v56 }
 0x19d   :  { %v569_v60 = vld [vmem:[#allocation2 + $0x8a] sm:$0xff]  ;;  %v725_v3 = vsel %vm49_vm0, %v516_v1, %v3965_v58  ;;  %v726_v4 = vsel %vm49_vm0, %v517_v2, %v3966_v57 }
 0x19e   :  { %v551_v62 = vld [vmem:[#allocation2 + $0x91] sm:$0xf]  ;;  %v4037_v63 = vpack.i.bf16 %v569_v60, %v568_v59  ;;  %v744_v7 = vsel %vm322_vm1, %v725_v3, %v3970_v6  ;;  %v745_v8 = vsel %vm322_vm1, %v726_v4, %v3971_v5  ;;  %v526_v3 = vld [vmem:[#allocation2 + $0x60] sm:$0xff]  ;;  %v527_v4 = vld [vmem:[#allocation2 + $0x68] sm:$0xff] }
 0x19f   :  { %v570_v0 = vld [vmem:[#allocation2 + $0x92] sm:$0xf]  ;;  %626 = vrot.lane.b32.xlu2 %v551_v62, %s4321_s23  ;;  %v762_v9 = vpack.c.bf16 %v745_v8, %v744_v7 }
 0x1a0   :  { %4038 = vrot.lane.b32.xlu1 %v4037_v63, %s4322_s27  ;;  %702 = vrot.lane.b32.xlu0 %v570_v0, %s4322_s27 }
 0x1a2   :  { %v3984_v24 = vpop.permute.xlu2 %3983 }
 0x1a3   :  { %v3986_v25 = vunpack.i.h.bf16 %v3984_v24  ;;  %v3985_v26 = vunpack.i.l.bf16 %v3984_v24 }
 0x1a5   :  { %v730_v32 = vsel %vm49_vm0, %v521_v29, %v3986_v25  ;;  %v729_v33 = vsel %vm49_vm0, %v520_v28, %v3985_v26 }
 0x1a8   :  { %3454 = vmatmul.msk.bf16.gmra.mxu1 %vm373_vm2, %v762_v9 }
 0x1aa   :  { %v3974_v11 = vpop.permute.xlu0 %3973 }
 0x1ab   :  { %v3976_v12 = vunpack.i.h.bf16 %v3974_v11  ;;  %v3975_v13 = vunpack.i.l.bf16 %v3974_v11 }
 0x1ad   :  { %v728_v19 = vsel %vm49_vm0, %v519_v16, %v3976_v12  ;;  %v727_v20 = vsel %vm49_vm0, %v518_v15, %v3975_v13 }
 0x1b2   :  { %v3979_v14 = vpop.permute.xlu1 %3978 }
 0x1b3   :  { %v3981_v17 = vunpack.i.h.bf16 %v3979_v14  ;;  %v3980_v18 = vunpack.i.l.bf16 %v3979_v14 }
 0x1b5   :  { %v746_v21 = vsel %vm322_vm1, %v727_v20, %v3980_v18  ;;  %v747_v22 = vsel %vm322_vm1, %v728_v19, %v3981_v17  ;;  %v528_v17 = vld [vmem:[#allocation2 + $0x70] sm:$0xff]  ;;  %v529_v18 = vld [vmem:[#allocation2 + $0x78] sm:$0xff] }
 0x1b6   :  { %v763_v23 = vpack.c.bf16 %v747_v22, %v746_v21 }
 0x1b8   :  { %3455 = vmatmul.msk.bf16.gmra.mxu1 %vm373_vm2, %v763_v23 }
 0x1ba   :  { %v3999_v40 = vpop.permute.xlu2 %3998 }
 0x1bb   :  { %v4001_v45 = vunpack.i.h.bf16 %v3999_v40  ;;  %v4000_v46 = vunpack.i.l.bf16 %v3999_v40 }
 0x1c2   :  { %v3989_v27 = vpop.permute.xlu0 %3988 }
 0x1c3   :  { %v3991_v30 = vunpack.i.h.bf16 %v3989_v27  ;;  %v3990_v31 = vunpack.i.l.bf16 %v3989_v27 }
 0x1c5   :  { %v748_v34 = vsel %vm322_vm1, %v729_v33, %v3990_v31  ;;  %v749_v35 = vsel %vm322_vm1, %v730_v32, %v3991_v30  ;;  %v4842_v30 = vld [vmem:[%s5647_s2 + $0x1] ss:$0 sm:$0xff]  ;;  %v531_v32 = vld [vmem:[#allocation2 + $0x88] sm:$0xff] }
 0x1c6   :  { %v764_v36 = vpack.c.bf16 %v749_v35, %v748_v34  ;;  %v530_v31 = vld [vmem:[#allocation2 + $0x80] sm:$0xff] }
 0x1c8   :  { %3456 = vmatmul.msk.bf16.gmra.mxu1 %vm373_vm2, %v764_v36 }
 0x1cc   :  { %v3994_v37 = vpop.permute.xlu1 %3993 }
 0x1cd   :  { %v3996_v38 = vunpack.i.h.bf16 %v3994_v37  ;;  %v3995_v39 = vunpack.i.l.bf16 %v3994_v37 }
 0x1cf   :  { %v732_v43 = vsel %vm49_vm0, %v523_v42, %v3996_v38  ;;  %v731_v44 = vsel %vm49_vm0, %v522_v41, %v3995_v39 }
 0x1d0   :  { %v750_v47 = vsel %vm322_vm1, %v731_v44, %v4000_v46  ;;  %v751_v49 = vsel %vm322_vm1, %v732_v43, %v4001_v45 }
 0x1d1   :  { %v765_v50 = vpack.c.bf16 %v751_v49, %v750_v47  ;;  %v532_v49 = vld [vmem:[#allocation2 + $0x90] sm:$0xf] }
 0x1d2   :  { %v4014_v63 = vpop.permute.xlu2 %4013 }
 0x1d3   :  { %v4016_v0 = vunpack.i.h.bf16 %v4014_v63  ;;  %v4015_v1 = vunpack.i.l.bf16 %v4014_v63 }
 0x1d5   :  { %v736_v7 = vsel %vm49_vm0, %v527_v4, %v4016_v0  ;;  %v735_v8 = vsel %vm49_vm0, %v526_v3, %v4015_v1 }
 0x1d8   :  { %3457 = vmatmul.msk.bf16.gmra.mxu1 %vm373_vm2, %v765_v50 }
 0x1da   :  { %v4004_v51 = vpop.permute.xlu0 %4003 }
 0x1db   :  { %v4006_v52 = vunpack.i.h.bf16 %v4004_v51  ;;  %v4005_v53 = vunpack.i.l.bf16 %v4004_v51 }
 0x1dd   :  { %v734_v58 = vsel %vm49_vm0, %v525_v55, %v4006_v52  ;;  %v733_v59 = vsel %vm49_vm0, %v524_v48, %v4005_v53 }
 0x1e2   :  { %v4009_v54 = vpop.permute.xlu1 %4008 }
 0x1e3   :  { %v4011_v56 = vunpack.i.h.bf16 %v4009_v54  ;;  %v4010_v57 = vunpack.i.l.bf16 %v4009_v54 }
 0x1e5   :  { %v752_v60 = vsel %vm322_vm1, %v733_v59, %v4010_v57  ;;  %v753_v61 = vsel %vm322_vm1, %v734_v58, %v4011_v56 }
 0x1e6   :  { %v766_v62 = vpack.c.bf16 %v753_v61, %v752_v60 }
 0x1e8   :  { %3458 = vmatmul.msk.bf16.gmra.mxu1 %vm373_vm2, %v766_v62 }
 0x1ea   :  { %v4029_v16 = vpop.permute.xlu2 %4028 }
 0x1eb   :  { %v4031_v21 = vunpack.i.h.bf16 %v4029_v16  ;;  %v4030_v22 = vunpack.i.l.bf16 %v4029_v16 }
 0x1f2   :  { %v4019_v2 = vpop.permute.xlu0 %4018 }
 0x1f3   :  { %v4021_v5 = vunpack.i.h.bf16 %v4019_v2  ;;  %v4020_v6 = vunpack.i.l.bf16 %v4019_v2 }
 0x1f5   :  { %v754_v9 = vsel %vm322_vm1, %v735_v8, %v4020_v6  ;;  %v755_v11 = vsel %vm322_vm1, %v736_v7, %v4021_v5 }
 0x1f6   :  { %v767_v12 = vpack.c.bf16 %v755_v11, %v754_v9 }
 0x1f8   :  { %3459 = vmatmul.msk.bf16.gmra.mxu1 %vm373_vm2, %v767_v12 }
 0x1f9   :  { %v627_v45 = vpop.permute.xlu2 %626 }
 0x1fa   :  { %v4024_v13 = vpop.permute.xlu1 %4023  ;;  %v741_v50 = vsel %vm49_vm0, %v532_v49, %v627_v45 }
 0x1fb   :  { %v4026_v14 = vunpack.i.h.bf16 %v4024_v13  ;;  %v4025_v15 = vunpack.i.l.bf16 %v4024_v13 }
 0x1fd   :  { %v738_v19 = vsel %vm49_vm0, %v529_v18, %v4026_v14  ;;  %v737_v20 = vsel %vm49_vm0, %v528_v17, %v4025_v15 }
 0x1fe   :  { %v756_v23 = vsel %vm322_vm1, %v737_v20, %v4030_v22  ;;  %v757_v24 = vsel %vm322_vm1, %v738_v19, %v4031_v21 }
 0x1ff   :  { %v768_v25 = vpack.c.bf16 %v757_v24, %v756_v23 }
 0x208   :  { %3460 = vmatmul.msk.bf16.gmra.mxu1 %vm373_vm2, %v768_v25 }
 0x20a   :  { %v4034_v26 = vpop.permute.xlu0 %4033 }
 0x20b   :  { %v4036_v27 = vunpack.i.h.bf16 %v4034_v26  ;;  %v4035_v28 = vunpack.i.l.bf16 %v4034_v26 }
 0x20d   :  { %v740_v35 = vsel %vm49_vm0, %v531_v32, %v4036_v27  ;;  %v739_v36 = vsel %vm49_vm0, %v530_v31, %v4035_v28 }
 0x212   :  { %v4039_v29 = vpop.permute.xlu1 %4038  ;;  %v703_v46 = vpop.permute.xlu0 %702 }
 0x213   :  { %v4041_v33 = vunpack.i.h.bf16 %v4039_v29  ;;  %v4040_v34 = vunpack.i.l.bf16 %v4039_v29  ;;  %v760_v51 = vsel %vm322_vm1, %v741_v50, %v703_v46 }
 0x214   :  { %v770_v53 = vpack.c.bf16 %v760_v51, %v760_v51 }
 0x215   :  { %v831_v37 = vpop.f32.mrf.mxu1  ;;  %v758_v38 = vsel %vm322_vm1, %v739_v36, %v4040_v34  ;;  %v759_v39 = vsel %vm322_vm1, %v740_v35, %v4041_v33 }
 0x216   :  { %v832_v40 = vadd.f32 %v4842_v30, %v831_v37  ;;  %v769_v41 = vpack.c.bf16 %v759_v39, %v758_v38 }
 0x218   :  { %v880_v42 = vmax.f32 %v832_v40, 0.0  ;;  %3461 = vmatmul.msk.bf16.gmra.mxu1 %vm373_vm2, %v769_v41 }
 0x21a   :  { %899 = vst.msk [vmem:[#allocation2 + $0x1] sm:$0xff] %vm49_vm0, %v880_v42 }
 0x21b   :  { %918 = vst.msk [vmem:[#allocation2 + $0x1] sm:$0x1] %vm500_vm3, %v4323_v10 }
 0x21d   :  { %v833_v43 = vpop.f32.mrf.mxu1 }
 0x21e   :  { %v834_v44 = vadd.f32 %v4842_v30, %v833_v43 }
 0x220   :  { %v881_v47 = vmax.f32 %v834_v44, 0.0 }
 0x222   :  { %900 = vst.msk [vmem:[#allocation2 + $0x9] sm:$0xff] %vm49_vm0, %v881_v47 }
 0x225   :  { %v836_v52 = vpop.f32.mrf.mxu1 }
 0x226   :  { %v837_v54 = vadd.f32 %v4842_v30, %v836_v52 }
 0x228   :  { %v882_v48 = vmax.f32 %v837_v54, 0.0  ;;  %3462 = vmatmul.msk.bf16.gmra.mxu1 %vm373_vm2, %v770_v53 }
 0x229   :  { %v923_v55 = vld [vmem:[#allocation2 + $0x1] ss:$2 sm:$0xff]  ;;  %v933_v56 = vld [vmem:[#allocation2 + $0x2] ss:$2 sm:$0xff] }
 0x22a   :  { %901 = vst.msk [vmem:[#allocation2 + $0x11] sm:$0xff] %vm49_vm0, %v882_v48  ;;  %v942_v57 = vmax.f32 %v923_v55, %v933_v56 }
 0x22c   :  { %947 = vst.msk [vmem:[#allocation3 + $0x2] sm:$0xff] %vm49_vm0, %v942_v57 }
 0x22d   :  { %v838_v58 = vpop.f32.mrf.mxu1 }
 0x22e   :  { %v839_v59 = vadd.f32 %v4842_v30, %v838_v58 }
 0x230   :  { %v883_v60 = vmax.f32 %v839_v59, 0.0 }
 0x232   :  { %902 = vst.msk [vmem:[#allocation2 + $0x19] sm:$0xff] %vm49_vm0, %v883_v60 }
 0x233   :  { %v1012_v6 = vld [vmem:[#allocation3 + $0x2] sm:$0xff] }
 0x234   :  { %v1002_v8 = vld [vmem:[#allocation3 + $0x1] sm:$0xff] }
 0x235   :  { %v841_v61 = vpop.f32.mrf.mxu1 }
 0x236   :  { %v842_v62 = vadd.f32 %v4842_v30, %v841_v61 }
 0x238   :  { %v884_v63 = vmax.f32 %v842_v62, 0.0 }
 0x239   :  { %v925_v0 = vld [vmem:[#allocation2 + $0x11] ss:$2 sm:$0xff]  ;;  %v935_v1 = vld [vmem:[#allocation2 + $0x12] ss:$2 sm:$0xff] }
 0x23a   :  { %903 = vst.msk [vmem:[#allocation2 + $0x21] sm:$0xff] %vm49_vm0, %v884_v63  ;;  %v943_v2 = vmax.f32 %v925_v0, %v935_v1 }
 0x23c   :  { %948 = vst.msk [vmem:[#allocation3 + $0xa] sm:$0xff] %vm49_vm0, %v943_v2  ;;  %v3797_v2 = vld [vmem:[%s5646_s1 + $0x40] sm:$0xff] }
 0x23d   :  { %v843_v3 = vpop.f32.mrf.mxu1  ;;  %1168 = vmatpush.bf16.msra.mxu2 %v3797_v2 }
 0x23e   :  { %v844_v4 = vadd.f32 %v4842_v30, %v843_v3 }
 0x240   :  { %v885_v5 = vmax.f32 %v844_v4, 0.0 }
 0x242   :  { %904 = vst.msk [vmem:[#allocation2 + $0x29] sm:$0xff] %vm49_vm0, %v885_v5 }
 0x243   :  { %v1013_v7 = vld [vmem:[#allocation3 + $0xa] sm:$0xff] }
 0x244   :  { %v1003_v9 = vld [vmem:[#allocation3 + $0x9] sm:$0xff]  ;;  %v4047_v11 = vpack.i.bf16 %v1013_v7, %v1012_v6 }
 0x245   :  { %v4042_v12 = vpack.i.bf16 %v1003_v9, %v1002_v8  ;;  %v846_v13 = vpop.f32.mrf.mxu1 }
 0x246   :  { %v847_v14 = vadd.f32 %v4842_v30, %v846_v13  ;;  %4048 = vrot.lane.b32.xlu2 %v4047_v11, %s4322_s27  ;;  %v3796_v11 = vld [vmem:[%s5646_s1 + $0x38] sm:$0xff] }
 0x247   :  { %4043 = vrot.lane.b32.xlu1 %v4042_v12, %s4321_s23  ;;  %1169 = vmatpush.bf16.msra.mxu2 %v3796_v11 }
 0x248   :  { %v886_v15 = vmax.f32 %v847_v14, 0.0 }
 0x249   :  { %v927_v16 = vld [vmem:[#allocation2 + $0x21] ss:$2 sm:$0xff]  ;;  %v937_v17 = vld [vmem:[#allocation2 + $0x22] ss:$2 sm:$0xff] }
 0x24a   :  { %905 = vst.msk [vmem:[#allocation2 + $0x31] sm:$0xff] %vm49_vm0, %v886_v15  ;;  %v944_v18 = vmax.f32 %v927_v16, %v937_v17  ;;  %v3795_v16 = vld [vmem:[%s5646_s1 + $0x30] sm:$0xff] }
 0x24b   :  { %1170 = vmatpush.bf16.msra.mxu2 %v3795_v16 }
 0x24c   :  { %949 = vst.msk [vmem:[#allocation3 + $0x12] sm:$0xff] %vm49_vm0, %v944_v18 }
 0x24d   :  { %v848_v19 = vpop.f32.mrf.mxu1 }
 0x24e   :  { %v849_v20 = vadd.f32 %v4842_v30, %v848_v19 }
 0x250   :  { %v887_v21 = vmax.f32 %v849_v20, 0.0 }
 0x252   :  { %906 = vst.msk [vmem:[#allocation2 + $0x39] sm:$0xff] %vm49_vm0, %v887_v21 }
 0x253   :  { %v1004_v32 = vld [vmem:[#allocation3 + $0x11] sm:$0xff] }
 0x254   :  { %v1014_v34 = vld [vmem:[#allocation3 + $0x12] sm:$0xff] }
 0x255   :  { %v851_v22 = vpop.f32.mrf.mxu1 }
 0x256   :  { %v852_v23 = vadd.f32 %v4842_v30, %v851_v22 }
 0x258   :  { %v888_v24 = vmax.f32 %v852_v23, 0.0 }
 0x259   :  { %v929_v25 = vld [vmem:[#allocation2 + $0x31] ss:$2 sm:$0xff]  ;;  %v939_v26 = vld [vmem:[#allocation2 + $0x32] ss:$2 sm:$0xff] }
 0x25a   :  { %907 = vst.msk [vmem:[#allocation2 + $0x41] sm:$0xff] %vm49_vm0, %v888_v24  ;;  %v945_v27 = vmax.f32 %v929_v25, %v939_v26 }
 0x25c   :  { %950 = vst.msk [vmem:[#allocation3 + $0x1a] sm:$0xff] %vm49_vm0, %v945_v27 }
 0x25d   :  { %v853_v28 = vpop.f32.mrf.mxu1 }
 0x25e   :  { %v854_v29 = vadd.f32 %v4842_v30, %v853_v28 }
 0x260   :  { %v889_v31 = vmax.f32 %v854_v29, 0.0 }
 0x262   :  { %908 = vst.msk [vmem:[#allocation2 + $0x49] sm:$0xff] %vm49_vm0, %v889_v31 }
 0x263   :  { %919 = vst.msk [vmem:[#allocation2 + $0x4a] sm:$0x1] %vm500_vm3, %v4323_v10  ;;  %v1005_v33 = vld [vmem:[#allocation3 + $0x19] sm:$0xff] }
 0x264   :  { %v1015_v35 = vld [vmem:[#allocation3 + $0x1a] sm:$0xff]  ;;  %920 = vst.msk [vmem:[#allocation2 + $0x4b] sm:$0x1] %vm500_vm3, %v4323_v10  ;;  %v4052_v36 = vpack.i.bf16 %v1005_v33, %v1004_v32 }
 0x265   :  { %v4057_v37 = vpack.i.bf16 %v1015_v35, %v1014_v34  ;;  %v856_v38 = vpop.f32.mrf.mxu1 }
 0x266   :  { %v857_v39 = vadd.f32 %v4842_v30, %v856_v38  ;;  %4053 = vrot.lane.b32.xlu0 %v4052_v36, %s4321_s23 }
 0x267   :  { %4058 = vrot.lane.b32.xlu1 %v4057_v37, %s4322_s27 }
 0x268   :  { %v890_v40 = vmax.f32 %v857_v39, 0.0 }
 0x269   :  { %v931_v41 = vld [vmem:[#allocation2 + $0x41] ss:$2 sm:$0x1f] }
 0x26a   :  { %909 = vst.msk [vmem:[#allocation2 + $0x51] sm:$0xff] %vm49_vm0, %v890_v40  ;;  %v941_v42 = vld [vmem:[#allocation2 + $0x42] ss:$2 sm:$0x1f] }
 0x26b   :  { %v946_v43 = vmax.f32 %v931_v41, %v941_v42  ;;  %v992_v42 = vld [vmem:[#allocation3] sm:$0xff] }
 0x26d   :  { %v858_v44 = vpop.f32.mrf.mxu1  ;;  %952 = vst.msk [vmem:[#allocation3 + $0x22] sm:$0x1f] %vm951_vm6, %v946_v43  ;;  %v993_v43 = vld [vmem:[#allocation3 + $0x8] sm:$0xff] }
 0x26e   :  { %v859_v45 = vadd.f32 %v4842_v30, %v858_v44 }
 0x270   :  { %v891_v46 = vmax.f32 %v859_v45, 0.0 }
 0x272   :  { %910 = vst.msk [vmem:[#allocation2 + $0x59] sm:$0xff] %vm49_vm0, %v891_v46 }
 0x274   :  { %v1006_v56 = vld [vmem:[#allocation3 + $0x21] sm:$0xff] }
 0x275   :  { %v861_v47 = vpop.f32.mrf.mxu1 }
 0x276   :  { %v862_v49 = vadd.f32 %v4842_v30, %v861_v47 }
 0x278   :  { %v892_v50 = vmax.f32 %v862_v49, 0.0 }
 0x279   :  { %v954_v51 = vld [vmem:[#allocation2 + $0x4b] ss:$2 sm:$0xff]  ;;  %v964_v52 = vld [vmem:[#allocation2 + $0x4c] ss:$2 sm:$0xff] }
 0x27a   :  { %911 = vst.msk [vmem:[#allocation2 + $0x61] sm:$0xff] %vm49_vm0, %v892_v50  ;;  %v973_v53 = vmax.f32 %v954_v51, %v964_v52 }
 0x27c   :  { %978 = vst.msk [vmem:[#allocation3 + $0x29] sm:$0xff] %vm49_vm0, %v973_v53 }
 0x27d   :  { %v863_v54 = vpop.f32.mrf.mxu1 }
 0x27e   :  { %v864_v48 = vadd.f32 %v4842_v30, %v863_v54 }
 0x280   :  { %v893_v55 = vmax.f32 %v864_v48, 0.0 }
 0x282   :  { %912 = vst.msk [vmem:[#allocation2 + $0x69] sm:$0xff] %vm49_vm0, %v893_v55 }
 0x283   :  { %v1007_v57 = vld [vmem:[#allocation3 + $0x29] sm:$0xff] }
 0x284   :  { %v4062_v58 = vpack.i.bf16 %v1007_v57, %v1006_v56  ;;  %v1016_v5 = vld [vmem:[#allocation3 + $0x22] sm:$0xff] }
 0x285   :  { %v866_v59 = vpop.f32.mrf.mxu1 }
 0x286   :  { %v867_v60 = vadd.f32 %v4842_v30, %v866_v59  ;;  %4063 = vrot.lane.b32.xlu2 %v4062_v58, %s4321_s23 }
 0x288   :  { %v894_v61 = vmax.f32 %v867_v60, 0.0 }
 0x289   :  { %v956_v62 = vld [vmem:[#allocation2 + $0x5b] ss:$2 sm:$0xff]  ;;  %v966_v63 = vld [vmem:[#allocation2 + $0x5c] ss:$2 sm:$0xff] }
 0x28a   :  { %913 = vst.msk [vmem:[#allocation2 + $0x71] sm:$0xff] %vm49_vm0, %v894_v61  ;;  %v974_v0 = vmax.f32 %v956_v62, %v966_v63  ;;  %v995_v61 = vld [vmem:[#allocation3 + $0x18] sm:$0xff]  ;;  %v994_v62 = vld [vmem:[#allocation3 + $0x10] sm:$0xff] }
 0x28c   :  { %979 = vst.msk [vmem:[#allocation3 + $0x31] sm:$0xff] %vm49_vm0, %v974_v0 }
 0x28d   :  { %v868_v1 = vpop.f32.mrf.mxu1 }
 0x28e   :  { %v869_v3 = vadd.f32 %v4842_v30, %v868_v1 }
 0x290   :  { %v895_v4 = vmax.f32 %v869_v3, 0.0 }
 0x292   :  { %914 = vst.msk [vmem:[#allocation2 + $0x79] sm:$0xff] %vm49_vm0, %v895_v4 }
 0x293   :  { %v1017_v6 = vld [vmem:[#allocation3 + $0x2a] sm:$0xff] }
 0x294   :  { %v4067_v7 = vpack.i.bf16 %v1017_v6, %v1016_v5  ;;  %v1008_v20 = vld [vmem:[#allocation3 + $0x31] sm:$0xff] }
 0x295   :  { %v871_v8 = vpop.f32.mrf.mxu1 }
 0x296   :  { %v872_v9 = vadd.f32 %v4842_v30, %v871_v8  ;;  %4068 = vrot.lane.b32.xlu0 %v4067_v7, %s4322_s27  ;;  %v996_v8 = vld [vmem:[#allocation3 + $0x20] sm:$0xff] }
 0x298   :  { %v896_v12 = vmax.f32 %v872_v9, 0.0  ;;  %v997_v9 = vld [vmem:[#allocation3 + $0x28] sm:$0xff] }
 0x299   :  { %v958_v13 = vld [vmem:[#allocation2 + $0x6b] ss:$2 sm:$0xff]  ;;  %v968_v14 = vld [vmem:[#allocation2 + $0x6c] ss:$2 sm:$0xff] }
 0x29a   :  { %915 = vst.msk [vmem:[#allocation2 + $0x81] sm:$0xff] %vm49_vm0, %v896_v12  ;;  %v975_v15 = vmax.f32 %v958_v13, %v968_v14 }
 0x29c   :  { %980 = vst.msk [vmem:[#allocation3 + $0x39] sm:$0xff] %vm49_vm0, %v975_v15 }
 0x29d   :  { %v873_v17 = vpop.f32.mrf.mxu1 }
 0x29e   :  { %v874_v18 = vadd.f32 %v4842_v30, %v873_v17 }
 0x2a0   :  { %v897_v19 = vmax.f32 %v874_v18, 0.0  ;;  %v4049_v36 = vpop.permute.xlu2 %4048 }
 0x2a1   :  { %v4051_v40 = vunpack.i.h.bf16 %v4049_v36  ;;  %v4050_v41 = vunpack.i.l.bf16 %v4049_v36 }
 0x2a2   :  { %916 = vst.msk [vmem:[#allocation2 + $0x89] sm:$0xff] %vm49_vm0, %v897_v19 }
 0x2a3   :  { %v1009_v21 = vld [vmem:[#allocation3 + $0x39] sm:$0xff] }
 0x2a4   :  { %v4072_v22 = vpack.i.bf16 %v1009_v21, %v1008_v20  ;;  %v1018_v33 = vld [vmem:[#allocation3 + $0x32] sm:$0xff] }
 0x2a5   :  { %v876_v23 = vpop.f32.mrf.mxu1 }
 0x2a6   :  { %v877_v24 = vadd.f32 %v4842_v30, %v876_v23  ;;  %4073 = vrot.lane.b32.xlu1 %v4072_v22, %s4321_s23 }
 0x2a8   :  { %v898_v25 = vmax.f32 %v877_v24, 0.0  ;;  %v998_v24 = vld [vmem:[#allocation3 + $0x30] sm:$0xff] }
 0x2a9   :  { %v960_v26 = vld [vmem:[#allocation2 + $0x7b] ss:$2 sm:$0xff]  ;;  %v970_v27 = vld [vmem:[#allocation2 + $0x7c] ss:$2 sm:$0xff] }
 0x2aa   :  { %917 = vst.msk [vmem:[#allocation2 + $0x91] sm:$0xf] %vm85_vm5, %v898_v25  ;;  %v976_v28 = vmax.f32 %v960_v26, %v970_v27  ;;  %v999_v25 = vld [vmem:[#allocation3 + $0x38] sm:$0xff] }
 0x2ab   :  { %921 = vst.msk [vmem:[#allocation2 + $0x94] sm:$0x1] %vm500_vm3, %v4323_v10 }
 0x2ac   :  { %981 = vst.msk [vmem:[#allocation3 + $0x41] sm:$0xff] %vm49_vm0, %v976_v28 }
 0x2ad   :  { %v878_v29 = vpop.f32.mrf.mxu1 }
 0x2b1   :  { %v962_v31 = vld [vmem:[#allocation2 + $0x8b] ss:$2 sm:$0x1f] }
 0x2b2   :  { %v972_v32 = vld [vmem:[#allocation2 + $0x8c] ss:$2 sm:$0x1f] }
 0x2b3   :  { %v1019_v34 = vld [vmem:[#allocation3 + $0x3a] sm:$0xff]  ;;  %v977_v35 = vmax.f32 %v962_v31, %v972_v32 }
 0x2b4   :  { %v4077_v30 = vpack.i.bf16 %v1019_v34, %v1018_v33  ;;  %v1010_v46 = vld [vmem:[#allocation3 + $0x41] sm:$0xff] }
 0x2b5   :  { %982 = vst.msk [vmem:[#allocation3 + $0x49] sm:$0x1f] %vm951_vm6, %v977_v35 }
 0x2b6   :  { %4078 = vrot.lane.b32.xlu2 %v4077_v30, %s4322_s27 }
 0x2b9   :  { %v4044_v37 = vpop.permute.xlu1 %4043 }
 0x2ba   :  { %v4046_v38 = vunpack.i.h.bf16 %v4044_v37  ;;  %v4045_v39 = vunpack.i.l.bf16 %v4044_v37  ;;  %v1000_v37 = vld [vmem:[#allocation3 + $0x40] sm:$0xff] }
 0x2bc   :  { %v1102_v44 = vsel %vm49_vm0, %v992_v42, %v4045_v39  ;;  %v1103_v45 = vsel %vm49_vm0, %v993_v43, %v4046_v38  ;;  %v1011_v47 = vld [vmem:[#allocation3 + $0x49] sm:$0x3f] }
 0x2bd   :  { %v1020_v49 = vld [vmem:[#allocation3 + $0x42] sm:$0xff]  ;;  %v1021_v50 = vld [vmem:[#allocation3 + $0x4a] sm:$0x3f]  ;;  %v1112_v51 = vsel %vm322_vm1, %v1102_v44, %v4050_v41  ;;  %v1113_v52 = vsel %vm322_vm1, %v1103_v45, %v4051_v40  ;;  %v4082_v53 = vpack.i.bf16 %v1011_v47, %v1010_v46 }
 0x2be   :  { %v4087_v54 = vpack.i.bf16 %v1021_v50, %v1020_v49  ;;  %v1122_v48 = vpack.c.bf16 %v1113_v52, %v1112_v51  ;;  %v1001_v38 = vld [vmem:[#allocation3 + $0x48] sm:$0x3f] }
 0x2bf   :  { %4083 = vrot.lane.b32.xlu0 %v4082_v53, %s4321_s23  ;;  %v4955_v44 = vld [vmem:[%s5647_s2 + $0x2] ss:$0 sm:$0xff] }
 0x2c0   :  { %4088 = vrot.lane.b32.xlu1 %v4087_v54, %s4322_s27  ;;  %3482 = vmatmul.msk.bf16.vlgmr.msra.gmra.mxu2 %vm373_vm2, %v1122_v48 }
 0x2d8   :  { %v4054_v55 = vpop.permute.xlu0 %4053 }
 0x2d9   :  { %v4059_v56 = vpop.permute.xlu1 %4058  ;;  %v4056_v57 = vunpack.i.h.bf16 %v4054_v55  ;;  %v4055_v58 = vunpack.i.l.bf16 %v4054_v55 }
 0x2da   :  { %v4061_v59 = vunpack.i.h.bf16 %v4059_v56  ;;  %v4060_v60 = vunpack.i.l.bf16 %v4059_v56 }
 0x2db   :  { %v1105_v63 = vsel %vm49_vm0, %v995_v61, %v4056_v57  ;;  %v1104_v0 = vsel %vm49_vm0, %v994_v62, %v4055_v58 }
 0x2dc   :  { %v1114_v1 = vsel %vm322_vm1, %v1104_v0, %v4060_v60  ;;  %v1115_v2 = vsel %vm322_vm1, %v1105_v63, %v4061_v59 }
 0x2dd   :  { %v1123_v3 = vpack.c.bf16 %v1115_v2, %v1114_v1 }
 0x2df   :  { %3483 = vmatmul.msk.bf16.gmra.mxu2 %vm373_vm2, %v1123_v3 }
 0x2e0   :  { %v4064_v4 = vpop.permute.xlu2 %4063 }
 0x2e1   :  { %v4066_v5 = vunpack.i.h.bf16 %v4064_v4  ;;  %v4065_v6 = vunpack.i.l.bf16 %v4064_v4 }
 0x2e3   :  { %v1107_v13 = vsel %vm49_vm0, %v997_v9, %v4066_v5  ;;  %v1106_v14 = vsel %vm49_vm0, %v996_v8, %v4065_v6 }
 0x308   :  { %v4069_v7 = vpop.permute.xlu0 %4068 }
 0x309   :  { %v4071_v11 = vunpack.i.h.bf16 %v4069_v7  ;;  %v4070_v12 = vunpack.i.l.bf16 %v4069_v7 }
 0x30b   :  { %v1116_v15 = vsel %vm322_vm1, %v1106_v14, %v4070_v12  ;;  %v1117_v16 = vsel %vm322_vm1, %v1107_v13, %v4071_v11 }
 0x30c   :  { %v1124_v17 = vpack.c.bf16 %v1117_v16, %v1116_v15 }
 0x30e   :  { %3484 = vmatmul.msk.bf16.gmra.mxu2 %vm373_vm2, %v1124_v17 }
 0x310   :  { %v4079_v18 = vpop.permute.xlu2 %4078 }
 0x311   :  { %v4081_v22 = vunpack.i.h.bf16 %v4079_v18  ;;  %v4080_v23 = vunpack.i.l.bf16 %v4079_v18 }
 0x318   :  { %v4074_v19 = vpop.permute.xlu1 %4073 }
 0x319   :  { %v4076_v20 = vunpack.i.h.bf16 %v4074_v19  ;;  %v4075_v21 = vunpack.i.l.bf16 %v4074_v19 }
 0x31b   :  { %v1109_v26 = vsel %vm49_vm0, %v999_v25, %v4076_v20  ;;  %v1108_v27 = vsel %vm49_vm0, %v998_v24, %v4075_v21  ;;  %v3800_v24 = vld [vmem:[%s5646_s1 + $0x58] sm:$0xff]  ;;  %v3799_v25 = vld [vmem:[%s5646_s1 + $0x50] sm:$0xff] }
 0x31c   :  { %v1118_v28 = vsel %vm322_vm1, %v1108_v27, %v4080_v23  ;;  %v1119_v29 = vsel %vm322_vm1, %v1109_v26, %v4081_v22  ;;  %1406 = vmatpush.bf16.msra.mxu3 %v3800_v24 }
 0x31d   :  { %v1125_v31 = vpack.c.bf16 %v1119_v29, %v1118_v28 }
 0x31f   :  { %3485 = vmatmul.msk.bf16.gmra.mxu2 %vm373_vm2, %v1125_v31 }
 0x320   :  { %1407 = vmatpush.bf16.msra.mxu3 %v3799_v25 }
 0x331   :  { %v4084_v32 = vpop.permute.xlu0 %4083 }
 0x332   :  { %v4089_v33 = vpop.permute.xlu1 %4088  ;;  %v4086_v34 = vunpack.i.h.bf16 %v4084_v32  ;;  %v4085_v35 = vunpack.i.l.bf16 %v4084_v32 }
 0x333   :  { %v4091_v30 = vunpack.i.h.bf16 %v4089_v33  ;;  %v4090_v36 = vunpack.i.l.bf16 %v4089_v33 }
 0x334   :  { %v1111_v39 = vsel %vm49_vm0, %v1001_v38, %v4086_v34  ;;  %v1110_v40 = vsel %vm49_vm0, %v1000_v37, %v4085_v35  ;;  %v3798_v35 = vld [vmem:[%s5646_s1 + $0x48] sm:$0xff] }
 0x335   :  { %v1120_v41 = vsel %vm322_vm1, %v1110_v40, %v4090_v36  ;;  %v1121_v42 = vsel %vm322_vm1, %v1111_v39, %v4091_v30  ;;  %1408 = vmatpush.bf16.msra.mxu3 %v3798_v35 }
 0x336   :  { %v1126_v43 = vpack.c.bf16 %v1121_v42, %v1120_v41 }
 0x338   :  { %3486 = vmatmul.msk.bf16.gmra.mxu2 %vm373_vm2, %v1126_v43 }
 0x343   :  { %v1172_v45 = vpop.f32.mrf.mxu2 }
 0x344   :  { %v1173_v46 = vadd.f32 %v4955_v44, %v1172_v45 }
 0x346   :  { %v1197_v47 = vmax.f32 %v1173_v46, 0.0 }
 0x348   :  { %1207 = vst.msk [vmem:[#allocation3 + $0x1] sm:$0xff] %vm49_vm0, %v1197_v47 }
 0x349   :  { %1217 = vst.msk [vmem:[#allocation3 + $0x1] sm:$0x1] %vm500_vm3, %v4323_v10 }
 0x34b   :  { %v1174_v49 = vpop.f32.mrf.mxu2 }
 0x34c   :  { %v1175_v50 = vadd.f32 %v4955_v44, %v1174_v49 }
 0x34e   :  { %v1198_v51 = vmax.f32 %v1175_v50, 0.0 }
 0x350   :  { %1208 = vst.msk [vmem:[#allocation3 + $0x9] sm:$0xff] %vm49_vm0, %v1198_v51  ;;  %v1240_v52 = vld [vmem:[#allocation3 + $0x1] sm:$0xff] }
 0x351   :  { %v1230_v51 = vld [vmem:[#allocation3] sm:$0xff] }
 0x357   :  { %v1241_v53 = vld [vmem:[#allocation3 + $0x9] sm:$0xff] }
 0x358   :  { %v4092_v54 = vpack.i.bf16 %v1241_v53, %v1240_v52  ;;  %v1250_v60 = vld [vmem:[#allocation3 + $0x2] sm:$0xff] }
 0x359   :  { %v1231_v50 = vld [vmem:[#allocation3 + $0x8] sm:$0xff] }
 0x35a   :  { %4093 = vrot.lane.b32.xlu2 %v4092_v54, %s4321_s23 }
 0x362   :  { %v1177_v48 = vpop.f32.mrf.mxu2 }
 0x363   :  { %v1178_v55 = vadd.f32 %v4955_v44, %v1177_v48 }
 0x365   :  { %v1199_v56 = vmax.f32 %v1178_v55, 0.0 }
 0x367   :  { %1209 = vst.msk [vmem:[#allocation3 + $0x11] sm:$0xff] %vm49_vm0, %v1199_v56 }
 0x36a   :  { %v1179_v57 = vpop.f32.mrf.mxu2 }
 0x36b   :  { %v1180_v58 = vadd.f32 %v4955_v44, %v1179_v57 }
 0x36d   :  { %v1200_v59 = vmax.f32 %v1180_v58, 0.0 }
 0x36e   :  { %v1251_v61 = vld [vmem:[#allocation3 + $0xa] sm:$0xff] }
 0x36f   :  { %1210 = vst.msk [vmem:[#allocation3 + $0x19] sm:$0xff] %vm49_vm0, %v1200_v59  ;;  %v4097_v62 = vpack.i.bf16 %v1251_v61, %v1250_v60  ;;  %v1242_v63 = vld [vmem:[#allocation3 + $0x11] sm:$0xff] }
 0x371   :  { %4098 = vrot.lane.b32.xlu0 %v4097_v62, %s4322_s27  ;;  %v1232_v62 = vld [vmem:[#allocation3 + $0x10] sm:$0xff] }
 0x376   :  { %v1243_v0 = vld [vmem:[#allocation3 + $0x19] sm:$0xff] }
 0x377   :  { %v4102_v1 = vpack.i.bf16 %v1243_v0, %v1242_v63  ;;  %v1252_v8 = vld [vmem:[#allocation3 + $0x12] sm:$0xff] }
 0x378   :  { %v1233_v63 = vld [vmem:[#allocation3 + $0x18] sm:$0xff] }
 0x379   :  { %4103 = vrot.lane.b32.xlu1 %v4102_v1, %s4321_s23 }
 0x391   :  { %v1182_v2 = vpop.f32.mrf.mxu2 }
 0x392   :  { %v1183_v3 = vadd.f32 %v4955_v44, %v1182_v2 }
 0x394   :  { %v1201_v4 = vmax.f32 %v1183_v3, 0.0 }
 0x396   :  { %1211 = vst.msk [vmem:[#allocation3 + $0x21] sm:$0xff] %vm49_vm0, %v1201_v4 }
 0x397   :  { %1218 = vst.msk [vmem:[#allocation3 + $0x27] sm:$0x1] %vm500_vm3, %v4323_v10 }
 0x398   :  { %1219 = vst.msk [vmem:[#allocation3 + $0x28] sm:$0x1] %vm500_vm3, %v4323_v10 }
 0x399   :  { %v1184_v5 = vpop.f32.mrf.mxu2 }
 0x39a   :  { %v1185_v6 = vadd.f32 %v4955_v44, %v1184_v5 }
 0x39c   :  { %v1202_v7 = vmax.f32 %v1185_v6, 0.0 }
 0x39d   :  { %v1253_v9 = vld [vmem:[#allocation3 + $0x1a] sm:$0xff] }
 0x39e   :  { %1212 = vst.msk [vmem:[#allocation3 + $0x29] sm:$0xff] %vm49_vm0, %v1202_v7  ;;  %v4107_v11 = vpack.i.bf16 %v1253_v9, %v1252_v8 }
 0x39f   :  { %v1244_v15 = vld [vmem:[#allocation3 + $0x21] sm:$0xff] }
 0x3a0   :  { %4108 = vrot.lane.b32.xlu2 %v4107_v11, %s4322_s27 }
 0x3a2   :  { %v1187_v12 = vpop.f32.mrf.mxu2 }
 0x3a3   :  { %v1188_v13 = vadd.f32 %v4955_v44, %v1187_v12  ;;  %v1234_v12 = vld [vmem:[#allocation3 + $0x20] sm:$0xff] }
 0x3a5   :  { %v1203_v14 = vmax.f32 %v1188_v13, 0.0  ;;  %v1245_v16 = vld [vmem:[#allocation3 + $0x29] sm:$0xff] }
 0x3a6   :  { %v4112_v17 = vpack.i.bf16 %v1245_v16, %v1244_v15  ;;  %v1254_v21 = vld [vmem:[#allocation3 + $0x22] sm:$0xff] }
 0x3a7   :  { %1213 = vst.msk [vmem:[#allocation3 + $0x31] sm:$0xff] %vm49_vm0, %v1203_v14  ;;  %v1235_v13 = vld [vmem:[#allocation3 + $0x28] sm:$0xff] }
 0x3a8   :  { %4113 = vrot.lane.b32.xlu0 %v4112_v17, %s4321_s23 }
 0x3aa   :  { %v1189_v18 = vpop.f32.mrf.mxu2 }
 0x3ab   :  { %v1190_v19 = vadd.f32 %v4955_v44, %v1189_v18 }
 0x3ad   :  { %v1204_v20 = vmax.f32 %v1190_v19, 0.0 }
 0x3ae   :  { %v1255_v22 = vld [vmem:[#allocation3 + $0x2a] sm:$0xff] }
 0x3af   :  { %1214 = vst.msk [vmem:[#allocation3 + $0x39] sm:$0xff] %vm49_vm0, %v1204_v20  ;;  %v4117_v23 = vpack.i.bf16 %v1255_v22, %v1254_v21  ;;  %v1246_v26 = vld [vmem:[#allocation3 + $0x31] sm:$0xff] }
 0x3b0   :  { %v1236_v25 = vld [vmem:[#allocation3 + $0x30] sm:$0xff] }
 0x3b1   :  { %4118 = vrot.lane.b32.xlu1 %v4117_v23, %s4322_s27 }
 0x3b4   :  { %v4094_v45 = vpop.permute.xlu2 %4093 }
 0x3b5   :  { %v4096_v46 = vunpack.i.h.bf16 %v4094_v45  ;;  %v4095_v47 = vunpack.i.l.bf16 %v4094_v45 }
 0x3b6   :  { %v1247_v27 = vld [vmem:[#allocation3 + $0x39] sm:$0xff] }
 0x3b7   :  { %v4122_v28 = vpack.i.bf16 %v1247_v27, %v1246_v26  ;;  %v1256_v36 = vld [vmem:[#allocation3 + $0x32] sm:$0xff]  ;;  %v1341_v54 = vsel %vm49_vm0, %v1231_v50, %v4096_v46  ;;  %v1340_v48 = vsel %vm49_vm0, %v1230_v51, %v4095_v47  ;;  %v5032_v47 = vld [vmem:[%s5647_s2 + $0x3] ss:$0 sm:$0xff] }
 0x3b8   :  { %v1237_v26 = vld [vmem:[#allocation3 + $0x38] sm:$0xff] }
 0x3b9   :  { %4123 = vrot.lane.b32.xlu2 %v4122_v28, %s4321_s23 }
 0x3bb   :  { %v1192_v29 = vpop.f32.mrf.mxu2 }
 0x3bc   :  { %v1193_v31 = vadd.f32 %v4955_v44, %v1192_v29 }
 0x3be   :  { %v1205_v32 = vmax.f32 %v1193_v31, 0.0 }
 0x3c0   :  { %1215 = vst.msk [vmem:[#allocation3 + $0x41] sm:$0xff] %vm49_vm0, %v1205_v32 }
 0x3c3   :  { %v1194_v33 = vpop.f32.mrf.mxu2 }
 0x3c4   :  { %v1195_v34 = vadd.f32 %v4955_v44, %v1194_v33 }
 0x3c6   :  { %v1206_v30 = vmax.f32 %v1195_v34, 0.0 }
 0x3c7   :  { %v1257_v37 = vld [vmem:[#allocation3 + $0x3a] sm:$0xff] }
 0x3c8   :  { %1216 = vst.msk [vmem:[#allocation3 + $0x49] sm:$0x3f] %vm68_vm4, %v1206_v30  ;;  %v4127_v38 = vpack.i.bf16 %v1257_v37, %v1256_v36  ;;  %v1248_v40 = vld [vmem:[#allocation3 + $0x41] sm:$0xff] }
 0x3c9   :  { %1220 = vst.msk [vmem:[#allocation3 + $0x4e] sm:$0x1] %vm500_vm3, %v4323_v10 }
 0x3ca   :  { %4128 = vrot.lane.b32.xlu0 %v4127_v38, %s4322_s27  ;;  %v1238_v38 = vld [vmem:[#allocation3 + $0x40] sm:$0xff] }
 0x3cf   :  { %v1258_v39 = vld [vmem:[#allocation3 + $0x42] sm:$0xff] }
 0x3d0   :  { %v1249_v41 = vld [vmem:[#allocation3 + $0x49] sm:$0x3f] }
 0x3d1   :  { %v1259_v42 = vld [vmem:[#allocation3 + $0x4a] sm:$0x3f]  ;;  %v4132_v43 = vpack.i.bf16 %v1249_v41, %v1248_v40 }
 0x3d2   :  { %v4137_v44 = vpack.i.bf16 %v1259_v42, %v1258_v39  ;;  %v1239_v39 = vld [vmem:[#allocation3 + $0x48] sm:$0x3f] }
 0x3d3   :  { %4133 = vrot.lane.b32.xlu1 %v4132_v43, %s4321_s23 }
 0x3d4   :  { %4138 = vrot.lane.b32.xlu2 %v4137_v44, %s4322_s27 }
 0x3e3   :  { %v4099_v49 = vpop.permute.xlu0 %4098 }
 0x3e4   :  { %v4101_v52 = vunpack.i.h.bf16 %v4099_v49  ;;  %v4100_v53 = vunpack.i.l.bf16 %v4099_v49 }
 0x3e6   :  { %v1350_v55 = vsel %vm322_vm1, %v1340_v48, %v4100_v53  ;;  %v1351_v56 = vsel %vm322_vm1, %v1341_v54, %v4101_v52 }
 0x3e7   :  { %v1360_v57 = vpack.c.bf16 %v1351_v56, %v1350_v55 }
 0x3e9   :  { %3506 = vmatmul.msk.bf16.vlgmr.msra.gmra.mxu3 %vm373_vm2, %v1360_v57 }
 0x3eb   :  { %v4104_v58 = vpop.permute.xlu1 %4103 }
 0x3ec   :  { %v4106_v59 = vunpack.i.h.bf16 %v4104_v58  ;;  %v4105_v60 = vunpack.i.l.bf16 %v4104_v58 }
 0x3ee   :  { %v1342_v2 = vsel %vm49_vm0, %v1232_v62, %v4105_v60  ;;  %v1343_v3 = vsel %vm49_vm0, %v1233_v63, %v4106_v59 }
 0x3fa   :  { %v4109_v61 = vpop.permute.xlu2 %4108 }
 0x3fb   :  { %v4111_v0 = vunpack.i.h.bf16 %v4109_v61  ;;  %v4110_v1 = vunpack.i.l.bf16 %v4109_v61 }
 0x3fd   :  { %v1352_v4 = vsel %vm322_vm1, %v1342_v2, %v4110_v1  ;;  %v1353_v5 = vsel %vm322_vm1, %v1343_v3, %v4111_v0 }
 0x3fe   :  { %v1361_v6 = vpack.c.bf16 %v1353_v5, %v1352_v4 }
 0x400   :  { %3507 = vmatmul.msk.bf16.gmra.mxu3 %vm373_vm2, %v1361_v6 }
 0x413   :  { %v4124_v21 = vpop.permute.xlu2 %4123 }
 0x414   :  { %v4126_v22 = vunpack.i.h.bf16 %v4124_v21  ;;  %v4125_v23 = vunpack.i.l.bf16 %v4124_v21 }
 0x416   :  { %v1347_v29 = vsel %vm49_vm0, %v1237_v26, %v4126_v22  ;;  %v1346_v31 = vsel %vm49_vm0, %v1236_v25, %v4125_v23 }
 0x41a   :  { %v4114_v7 = vpop.permute.xlu0 %4113 }
 0x41b   :  { %v4116_v8 = vunpack.i.h.bf16 %v4114_v7  ;;  %v4115_v9 = vunpack.i.l.bf16 %v4114_v7 }
 0x41d   :  { %v1345_v16 = vsel %vm49_vm0, %v1235_v13, %v4116_v8  ;;  %v1344_v17 = vsel %vm49_vm0, %v1234_v12, %v4115_v9 }
 0x423   :  { %v4119_v11 = vpop.permute.xlu1 %4118 }
 0x424   :  { %v4121_v14 = vunpack.i.h.bf16 %v4119_v11  ;;  %v4120_v15 = vunpack.i.l.bf16 %v4119_v11 }
 0x426   :  { %v1354_v18 = vsel %vm322_vm1, %v1344_v17, %v4120_v15  ;;  %v1355_v19 = vsel %vm322_vm1, %v1345_v16, %v4121_v14 }
 0x427   :  { %v1362_v20 = vpack.c.bf16 %v1355_v19, %v1354_v18 }
 0x429   :  { %3508 = vmatmul.msk.bf16.gmra.mxu3 %vm373_vm2, %v1362_v20 }
 0x42e   :  { %v4139_v37 = vpop.permute.xlu2 %4138 }
 0x42f   :  { %v4141_v42 = vunpack.i.h.bf16 %v4139_v37  ;;  %v4140_v43 = vunpack.i.l.bf16 %v4139_v37 }
 0x43c   :  { %v4129_v24 = vpop.permute.xlu0 %4128 }
 0x43d   :  { %v4131_v27 = vunpack.i.h.bf16 %v4129_v24  ;;  %v4130_v28 = vunpack.i.l.bf16 %v4129_v24 }
 0x43f   :  { %v1356_v32 = vsel %vm322_vm1, %v1346_v31, %v4130_v28  ;;  %v1357_v33 = vsel %vm322_vm1, %v1347_v29, %v4131_v27  ;;  %v3803_v29 = vld [vmem:[%s5646_s1 + $0x70] sm:$0xff] }
 0x440   :  { %v1363_v34 = vpack.c.bf16 %v1357_v33, %v1356_v32  ;;  %1621 = vmatpush.bf16.msrb.mxu2 %v3803_v29  ;;  %v3802_v32 = vld [vmem:[%s5646_s1 + $0x68] sm:$0xff] }
 0x442   :  { %3509 = vmatmul.msk.bf16.gmra.mxu3 %vm373_vm2, %v1363_v34 }
 0x444   :  { %1622 = vmatpush.bf16.msrb.mxu2 %v3802_v32 }
 0x445   :  { %v4134_v35 = vpop.permute.xlu1 %4133 }
 0x446   :  { %v4136_v30 = vunpack.i.h.bf16 %v4134_v35  ;;  %v4135_v36 = vunpack.i.l.bf16 %v4134_v35 }
 0x448   :  { %v1349_v40 = vsel %vm49_vm0, %v1239_v39, %v4136_v30  ;;  %v1348_v41 = vsel %vm49_vm0, %v1238_v38, %v4135_v36 }
 0x449   :  { %v1358_v44 = vsel %vm322_vm1, %v1348_v41, %v4140_v43  ;;  %v1359_v45 = vsel %vm322_vm1, %v1349_v40, %v4141_v42 }
 0x44a   :  { %v1364_v46 = vpack.c.bf16 %v1359_v45, %v1358_v44 }
 0x452   :  { %3510 = vmatmul.msk.bf16.gmra.mxu3 %vm373_vm2, %v1364_v46 }
 0x46c   :  { %v1410_v49 = vpop.f32.mrf.mxu3 }
 0x46d   :  { %v1411_v50 = vadd.f32 %v5032_v47, %v1410_v49 }
 0x46f   :  { %v1435_v51 = vmax.f32 %v1411_v50, 0.0 }
 0x471   :  { %1445 = vst.msk [vmem:[#allocation3 + $0x1] sm:$0xff] %vm49_vm0, %v1435_v51 }
 0x472   :  { %1455 = vst.msk [vmem:[#allocation3 + $0x1] sm:$0x1] %vm500_vm3, %v4323_v10 }
 0x474   :  { %v1412_v52 = vpop.f32.mrf.mxu3 }
 0x475   :  { %v1413_v53 = vadd.f32 %v5032_v47, %v1412_v52 }
 0x477   :  { %v1436_v54 = vmax.f32 %v1413_v53, 0.0 }
 0x479   :  { %1446 = vst.msk [vmem:[#allocation3 + $0x9] sm:$0xff] %vm49_vm0, %v1436_v54  ;;  %v3801_v54 = vld [vmem:[%s5646_s1 + $0x60] sm:$0xff] }
 0x47a   :  { %1623 = vmatpush.bf16.msrb.mxu2 %v3801_v54 }
 0x480   :  { %v1460_v48 = vld [vmem:[#allocation3 + $0x1] ss:$2 sm:$0xff]  ;;  %v1466_v55 = vld [vmem:[#allocation3 + $0x2] ss:$2 sm:$0xff] }
 0x481   :  { %v1471_v56 = vmax.f32 %v1460_v48, %v1466_v55 }
 0x483   :  { %v1415_v57 = vpop.f32.mrf.mxu3  ;;  %1474 = vst.msk [vmem:[#allocation4 + $0x2] sm:$0xff] %vm49_vm0, %v1471_v56 }
 0x484   :  { %v1416_v58 = vadd.f32 %v5032_v47, %v1415_v57 }
 0x486   :  { %v1437_v59 = vmax.f32 %v1416_v58, 0.0 }
 0x488   :  { %1447 = vst.msk [vmem:[#allocation3 + $0x11] sm:$0xff] %vm49_vm0, %v1437_v59 }
 0x48a   :  { %v1517_v2 = vld [vmem:[#allocation4 + $0x2] sm:$0xff] }
 0x48b   :  { %v1417_v60 = vpop.f32.mrf.mxu3  ;;  %v1511_v4 = vld [vmem:[#allocation4 + $0x1] sm:$0xff] }
 0x48c   :  { %v1418_v61 = vadd.f32 %v5032_v47, %v1417_v60  ;;  %v1505_v60 = vld [vmem:[#allocation4] sm:$0xff] }
 0x48e   :  { %v1438_v62 = vmax.f32 %v1418_v61, 0.0 }
 0x490   :  { %1448 = vst.msk [vmem:[#allocation3 + $0x19] sm:$0xff] %vm49_vm0, %v1438_v62 }
 0x497   :  { %v1462_v63 = vld [vmem:[#allocation3 + $0x11] ss:$2 sm:$0xff]  ;;  %v1468_v0 = vld [vmem:[#allocation3 + $0x12] ss:$2 sm:$0xff] }
 0x498   :  { %v1472_v1 = vmax.f32 %v1462_v63, %v1468_v0 }
 0x49a   :  { %1475 = vst.msk [vmem:[#allocation4 + $0xa] sm:$0xff] %vm49_vm0, %v1472_v1 }
 0x4a1   :  { %v1518_v3 = vld [vmem:[#allocation4 + $0xa] sm:$0xff] }
 0x4a2   :  { %v1512_v5 = vld [vmem:[#allocation4 + $0x9] sm:$0xff]  ;;  %v4147_v6 = vpack.i.bf16 %v1518_v3, %v1517_v2 }
 0x4a3   :  { %v4142_v7 = vpack.i.bf16 %v1512_v5, %v1511_v4  ;;  %v1506_v61 = vld [vmem:[#allocation4 + $0x8] sm:$0xff] }
 0x4a4   :  { %4148 = vrot.lane.b32.xlu1 %v4147_v6, %s4322_s27 }
 0x4a5   :  { %4143 = vrot.lane.b32.xlu0 %v4142_v7, %s4321_s23 }
 0x4ac   :  { %v1420_v8 = vpop.f32.mrf.mxu3 }
 0x4ad   :  { %v1421_v9 = vadd.f32 %v5032_v47, %v1420_v8 }
 0x4af   :  { %v1439_v11 = vmax.f32 %v1421_v9, 0.0 }
 0x4b1   :  { %1449 = vst.msk [vmem:[#allocation3 + $0x21] sm:$0xff] %vm49_vm0, %v1439_v11 }
 0x4b2   :  { %1456 = vst.msk [vmem:[#allocation3 + $0x27] sm:$0x1] %vm500_vm3, %v4323_v10 }
 0x4b3   :  { %1457 = vst.msk [vmem:[#allocation3 + $0x28] sm:$0x1] %vm500_vm3, %v4323_v10 }
 0x4b4   :  { %v1422_v12 = vpop.f32.mrf.mxu3 }
 0x4b5   :  { %v1423_v13 = vadd.f32 %v5032_v47, %v1422_v12 }
 0x4b7   :  { %v1440_v14 = vmax.f32 %v1423_v13, 0.0 }
 0x4b8   :  { %v1464_v15 = vld [vmem:[#allocation3 + $0x21] ss:$2 sm:$0x7]  ;;  %v1470_v16 = vld [vmem:[#allocation3 + $0x22] ss:$2 sm:$0x7] }
 0x4b9   :  { %1450 = vst.msk [vmem:[#allocation3 + $0x29] sm:$0xff] %vm49_vm0, %v1440_v14  ;;  %v1473_v17 = vmax.f32 %v1464_v15, %v1470_v16 }
 0x4bb   :  { %1477 = vst.msk [vmem:[#allocation4 + $0x12] sm:$0x7] %vm1476_vm7, %v1473_v17 }
 0x4c5   :  { %v1425_v18 = vpop.f32.mrf.mxu3 }
 0x4c6   :  { %v1426_v19 = vadd.f32 %v5032_v47, %v1425_v18 }
 0x4c8   :  { %v1441_v20 = vmax.f32 %v1426_v19, 0.0 }
 0x4ca   :  { %1451 = vst.msk [vmem:[#allocation3 + $0x31] sm:$0xff] %vm49_vm0, %v1441_v20 }
 0x4cd   :  { %v1427_v21 = vpop.f32.mrf.mxu3 }
 0x4ce   :  { %v1428_v22 = vadd.f32 %v5032_v47, %v1427_v21 }
 0x4d0   :  { %v1442_v23 = vmax.f32 %v1428_v22, 0.0 }
 0x4d1   :  { %v1479_v24 = vld [vmem:[#allocation3 + $0x28] ss:$2 sm:$0xff]  ;;  %v1485_v25 = vld [vmem:[#allocation3 + $0x29] ss:$2 sm:$0xff] }
 0x4d2   :  { %1452 = vst.msk [vmem:[#allocation3 + $0x39] sm:$0xff] %vm49_vm0, %v1442_v23  ;;  %v1490_v26 = vmax.f32 %v1479_v24, %v1485_v25 }
 0x4d4   :  { %1493 = vst.msk [vmem:[#allocation4 + $0x17] sm:$0xff] %vm49_vm0, %v1490_v26 }
 0x4d5   :  { %v1430_v27 = vpop.f32.mrf.mxu3 }
 0x4d6   :  { %v1431_v28 = vadd.f32 %v5032_v47, %v1430_v27 }
 0x4d8   :  { %v1443_v31 = vmax.f32 %v1431_v28, 0.0 }
 0x4da   :  { %1453 = vst.msk [vmem:[#allocation3 + $0x41] sm:$0xff] %vm49_vm0, %v1443_v31  ;;  %v4206_v31 = vld [vmem:[%s5647_s2 + $0x4] ss:$0 sm:$0xff] }
 0x4db   :  { %v1513_v40 = vld [vmem:[#allocation4 + $0x11] sm:$0xff] }
 0x4dc   :  { %v1519_v43 = vld [vmem:[#allocation4 + $0x12] sm:$0xff] }
 0x4dd   :  { %v1432_v33 = vpop.f32.mrf.mxu3  ;;  %v1507_v8 = vld [vmem:[#allocation4 + $0x10] sm:$0xff] }
 0x4de   :  { %v1433_v34 = vadd.f32 %v5032_v47, %v1432_v33  ;;  %v1522_v47 = vld [vmem:[#allocation4 + $0x2a] sm:$0x3] }
 0x4e0   :  { %v1444_v35 = vmax.f32 %v1433_v34, 0.0 }
 0x4e1   :  { %v1481_v30 = vld [vmem:[#allocation3 + $0x38] ss:$2 sm:$0xff]  ;;  %v1487_v36 = vld [vmem:[#allocation3 + $0x39] ss:$2 sm:$0xff] }
 0x4e2   :  { %1454 = vst.msk [vmem:[#allocation3 + $0x49] sm:$0x3f] %vm68_vm4, %v1444_v35  ;;  %v1491_v37 = vmax.f32 %v1481_v30, %v1487_v36 }
 0x4e3   :  { %1458 = vst.msk [vmem:[#allocation3 + $0x4e] sm:$0x1] %vm500_vm3, %v4323_v10 }
 0x4e4   :  { %1494 = vst.msk [vmem:[#allocation4 + $0x1f] sm:$0xff] %vm49_vm0, %v1491_v37 }
 0x4e9   :  { %v1483_v38 = vld [vmem:[#allocation3 + $0x48] ss:$2 sm:$0x7]  ;;  %v1489_v39 = vld [vmem:[#allocation3 + $0x49] ss:$2 sm:$0x7] }
 0x4ea   :  { %v1492_v41 = vmax.f32 %v1483_v38, %v1489_v39 }
 0x4eb   :  { %v1514_v42 = vld [vmem:[#allocation4 + $0x19] sm:$0xff] }
 0x4ec   :  { %v1520_v44 = vld [vmem:[#allocation4 + $0x1a] sm:$0xff]  ;;  %v4152_v45 = vpack.i.bf16 %v1514_v42, %v1513_v40  ;;  %1495 = vst.msk [vmem:[#allocation4 + $0x27] sm:$0x7] %vm1476_vm7, %v1492_v41 }
 0x4ed   :  { %v4157_v46 = vpack.i.bf16 %v1520_v44, %v1519_v43  ;;  %v1508_v7 = vld [vmem:[#allocation4 + $0x18] sm:$0xff]  ;;  %v3806_v44 = vld [vmem:[%s5646_s1 + $0x88] sm:$0xff] }
 0x4ee   :  { %4153 = vrot.lane.b32.xlu2 %v4152_v45, %s4321_s23  ;;  %1782 = vmatpush.bf16.msrb.mxu3 %v3806_v44 }
 0x4ef   :  { %4158 = vrot.lane.b32.xlu0 %v4157_v46, %s4322_s27 }
 0x4f3   :  { %v1521_v49 = vld [vmem:[#allocation4 + $0x22] sm:$0xff] }
 0x4f4   :  { %v1515_v50 = vld [vmem:[#allocation4 + $0x21] sm:$0xff]  ;;  %v1516_v51 = vld [vmem:[#allocation4 + $0x29] sm:$0x3]  ;;  %v4167_v52 = vpack.i.bf16 %v1522_v47, %v1521_v49 }
 0x4f5   :  { %v4162_v53 = vpack.i.bf16 %v1516_v51, %v1515_v50  ;;  %v1509_v21 = vld [vmem:[#allocation4 + $0x20] sm:$0xff]  ;;  %v1510_v22 = vld [vmem:[#allocation4 + $0x28] sm:$0x3] }
 0x4f6   :  { %4168 = vrot.lane.b32.xlu2 %v4167_v52, %s4322_s27 }
 0x4f7   :  { %4163 = vrot.lane.b32.xlu1 %v4162_v53, %s4321_s23 }
 0x516   :  { %v4149_v48 = vpop.permute.xlu1 %4148 }
 0x517   :  { %v4144_v55 = vpop.permute.xlu0 %4143  ;;  %v4151_v56 = vunpack.i.h.bf16 %v4149_v48  ;;  %v4150_v57 = vunpack.i.l.bf16 %v4149_v48 }
 0x518   :  { %v4146_v58 = vunpack.i.h.bf16 %v4144_v55  ;;  %v4145_v59 = vunpack.i.l.bf16 %v4144_v55 }
 0x51a   :  { %v1571_v62 = vsel %vm49_vm0, %v1505_v60, %v4145_v59  ;;  %v1572_v63 = vsel %vm49_vm0, %v1506_v61, %v4146_v58 }
 0x51b   :  { %v1577_v0 = vsel %vm322_vm1, %v1571_v62, %v4150_v57  ;;  %v1578_v1 = vsel %vm322_vm1, %v1572_v63, %v4151_v56  ;;  %v3805_v62 = vld [vmem:[%s5646_s1 + $0x80] sm:$0xff] }
 0x51c   :  { %v1583_v2 = vpack.c.bf16 %v1578_v1, %v1577_v0  ;;  %1783 = vmatpush.bf16.msrb.mxu3 %v3805_v62 }
 0x51e   :  { %3530 = vmatmul.msk.bf16.vlgmr.msrb.gmra.mxu2 %vm373_vm2, %v1583_v2 }
 0x548   :  { %v4154_v3 = vpop.permute.xlu2 %4153 }
 0x549   :  { %v4156_v4 = vunpack.i.h.bf16 %v4154_v3  ;;  %v4155_v5 = vunpack.i.l.bf16 %v4154_v3  ;;  %v3804_v3 = vld [vmem:[%s5646_s1 + $0x78] sm:$0xff] }
 0x54a   :  { %1784 = vmatpush.bf16.msrb.mxu3 %v3804_v3 }
 0x54b   :  { %v1574_v12 = vsel %vm49_vm0, %v1508_v7, %v4156_v4  ;;  %v1573_v13 = vsel %vm49_vm0, %v1507_v8, %v4155_v5 }
 0x550   :  { %v4169_v20 = vpop.permute.xlu2 %4168 }
 0x551   :  { %v4171_v25 = vunpack.i.h.bf16 %v4169_v20  ;;  %v4170_v26 = vunpack.i.l.bf16 %v4169_v20  ;;  %v3808_v20 = vld [vmem:[%s5649_s4] sm:$0xff] }
 0x552   :  { %1878 = vmatpush.bf16.msrb.mxu1 %v3808_v20  ;;  %1932 = vmatpush.bf16.msra.mxu3 %v3808_v20 }
 0x561   :  { %v4159_v6 = vpop.permute.xlu0 %4158 }
 0x562   :  { %v4161_v9 = vunpack.i.h.bf16 %v4159_v6  ;;  %v4160_v11 = vunpack.i.l.bf16 %v4159_v6 }
 0x564   :  { %v1579_v14 = vsel %vm322_vm1, %v1573_v13, %v4160_v11  ;;  %v1580_v15 = vsel %vm322_vm1, %v1574_v12, %v4161_v9 }
 0x565   :  { %v1584_v16 = vpack.c.bf16 %v1580_v15, %v1579_v14 }
 0x567   :  { %3531 = vmatmul.msk.bf16.gmra.mxu2 %vm373_vm2, %v1584_v16 }
 0x569   :  { %v4164_v17 = vpop.permute.xlu1 %4163 }
 0x56a   :  { %v4166_v18 = vunpack.i.h.bf16 %v4164_v17  ;;  %v4165_v19 = vunpack.i.l.bf16 %v4164_v17 }
 0x56c   :  { %v1576_v23 = vsel %vm49_vm0, %v1510_v22, %v4166_v18  ;;  %v1575_v24 = vsel %vm49_vm0, %v1509_v21, %v4165_v19 }
 0x56d   :  { %v1581_v27 = vsel %vm322_vm1, %v1575_v24, %v4170_v26  ;;  %v1582_v28 = vsel %vm322_vm1, %v1576_v23, %v4171_v25 }
 0x56e   :  { %v1585_v29 = vpack.c.bf16 %v1582_v28, %v1581_v27 }
 0x577   :  { %3532 = vmatmul.msk.bf16.gmra.mxu2 %vm373_vm2, %v1585_v29 }
 0x5a1   :  { %v1625_v32 = vpop.f32.mrf.mxu2 }
 0x5a2   :  { %v1626_v33 = vadd.f32 %v4206_v31, %v1625_v32 }
 0x5a4   :  { %v1640_v34 = vmax.f32 %v1626_v33, 0.0 }
 0x5a6   :  { %1646 = vst.msk [vmem:[#allocation4 + $0x1] sm:$0xff] %vm49_vm0, %v1640_v34 }
 0x5a7   :  { %1653 = vst.msk [vmem:[#allocation4 + $0x1] sm:$0x1] %vm500_vm3, %v4323_v10 }
 0x5a9   :  { %v1627_v35 = vpop.f32.mrf.mxu2 }
 0x5aa   :  { %v1628_v30 = vadd.f32 %v4206_v31, %v1627_v35 }
 0x5ac   :  { %v1641_v36 = vmax.f32 %v1628_v30, 0.0 }
 0x5ae   :  { %1647 = vst.msk [vmem:[#allocation4 + $0x9] sm:$0xff] %vm49_vm0, %v1641_v36  ;;  %v1672_v37 = vld [vmem:[#allocation4 + $0x1] sm:$0xff] }
 0x5af   :  { %v1666_v12 = vld [vmem:[#allocation4] sm:$0xff] }
 0x5b5   :  { %v1673_v38 = vld [vmem:[#allocation4 + $0x9] sm:$0xff] }
 0x5b6   :  { %v4172_v39 = vpack.i.bf16 %v1673_v38, %v1672_v37  ;;  %v1678_v47 = vld [vmem:[#allocation4 + $0x2] sm:$0xff] }
 0x5b7   :  { %v1667_v11 = vld [vmem:[#allocation4 + $0x8] sm:$0xff] }
 0x5b8   :  { %4173 = vrot.lane.b32.xlu0 %v4172_v39, %s4321_s23 }
 0x5ea   :  { %v1630_v40 = vpop.f32.mrf.mxu2 }
 0x5eb   :  { %v1631_v41 = vadd.f32 %v4206_v31, %v1630_v40 }
 0x5ed   :  { %v1642_v42 = vmax.f32 %v1631_v41, 0.0 }
 0x5ef   :  { %1648 = vst.msk [vmem:[#allocation4 + $0x11] sm:$0xff] %vm49_vm0, %v1642_v42 }
 0x5f0   :  { %1654 = vst.msk [vmem:[#allocation4 + $0x15] sm:$0x1] %vm500_vm3, %v4323_v10 }
 0x5f1   :  { %1655 = vst.msk [vmem:[#allocation4 + $0x16] sm:$0x1] %vm500_vm3, %v4323_v10 }
 0x5f2   :  { %v1632_v43 = vpop.f32.mrf.mxu2 }
 0x5f3   :  { %v1633_v45 = vadd.f32 %v4206_v31, %v1632_v43 }
 0x5f5   :  { %v1643_v46 = vmax.f32 %v1633_v45, 0.0 }
 0x5f6   :  { %v1679_v49 = vld [vmem:[#allocation4 + $0xa] sm:$0xff] }
 0x5f7   :  { %1649 = vst.msk [vmem:[#allocation4 + $0x19] sm:$0xff] %vm49_vm0, %v1643_v46  ;;  %v4177_v50 = vpack.i.bf16 %v1679_v49, %v1678_v47  ;;  %v3807_v47 = vld [vmem:[%s5648_s3] sm:$0xff] }
 0x5f8   :  { %v1674_v54 = vld [vmem:[#allocation4 + $0x11] sm:$0xff]  ;;  %1852 = vmatpush.bf16.msra.mxu2 %v3807_v47  ;;  %v4207_v49 = vld [vmem:[%s5647_s2 + $0x5] ss:$0 sm:$0xff] }
 0x5f9   :  { %4178 = vrot.lane.b32.xlu1 %v4177_v50, %s4322_s27  ;;  %v1668_v26 = vld [vmem:[#allocation4 + $0x10] sm:$0xff] }
 0x5fa   :  { %v1635_v51 = vpop.f32.mrf.mxu2 }
 0x5fb   :  { %v1636_v52 = vadd.f32 %v4206_v31, %v1635_v51 }
 0x5fc   :  { %1912 = vmatpush.bf16.msrb.mxu2 %v3807_v47 }
 0x5fd   :  { %v1644_v53 = vmax.f32 %v1636_v52, 0.0 }
 0x5fe   :  { %v1675_v48 = vld [vmem:[#allocation4 + $0x19] sm:$0xff] }
 0x5ff   :  { %1650 = vst.msk [vmem:[#allocation4 + $0x21] sm:$0xff] %vm49_vm0, %v1644_v53  ;;  %v4182_v55 = vpack.i.bf16 %v1675_v48, %v1674_v54  ;;  %v1680_v59 = vld [vmem:[#allocation4 + $0x12] sm:$0xff] }
 0x600   :  { %v1669_v25 = vld [vmem:[#allocation4 + $0x18] sm:$0xff] }
 0x601   :  { %4183 = vrot.lane.b32.xlu2 %v4182_v55, %s4321_s23 }
 0x602   :  { %v1637_v56 = vpop.f32.mrf.mxu2 }
 0x603   :  { %v1638_v57 = vadd.f32 %v4206_v31, %v1637_v56 }
 0x605   :  { %v1645_v58 = vmax.f32 %v1638_v57, 0.0 }
 0x606   :  { %v1681_v60 = vld [vmem:[#allocation4 + $0x1a] sm:$0xff] }
 0x607   :  { %1652 = vst.msk [vmem:[#allocation4 + $0x29] sm:$0x3] %vm1651_vm8, %v1645_v58  ;;  %v4187_v61 = vpack.i.bf16 %v1681_v60, %v1680_v59  ;;  %v1676_v0 = vld [vmem:[#allocation4 + $0x21] sm:$0xff] }
 0x608   :  { %1656 = vst.msk [vmem:[#allocation4 + $0x2a] sm:$0x1] %vm500_vm3, %v4323_v10  ;;  %v1670_v38 = vld [vmem:[#allocation4 + $0x20] sm:$0xff] }
 0x609   :  { %4188 = vrot.lane.b32.xlu0 %v4187_v61, %s4322_s27 }
 0x60e   :  { %v1682_v63 = vld [vmem:[#allocation4 + $0x22] sm:$0xff] }
 0x60f   :  { %v1683_v1 = vld [vmem:[#allocation4 + $0x2a] sm:$0x3]  ;;  %v1671_v39 = vld [vmem:[#allocation4 + $0x28] sm:$0x3] }
 0x610   :  { %v1677_v2 = vld [vmem:[#allocation4 + $0x29] sm:$0x3]  ;;  %v4197_v4 = vpack.i.bf16 %v1683_v1, %v1682_v63 }
 0x611   :  { %v4192_v5 = vpack.i.bf16 %v1677_v2, %v1676_v0 }
 0x612   :  { %4198 = vrot.lane.b32.xlu2 %v4197_v4, %s4322_s27 }
 0x613   :  { %4193 = vrot.lane.b32.xlu1 %v4192_v5, %s4321_s23 }
 0x62a   :  { %v4174_v6 = vpop.permute.xlu0 %4173 }
 0x62b   :  { %v4176_v7 = vunpack.i.h.bf16 %v4174_v6  ;;  %v4175_v8 = vunpack.i.l.bf16 %v4174_v6 }
 0x62d   :  { %v1733_v15 = vsel %vm49_vm0, %v1667_v11, %v4176_v7  ;;  %v1732_v16 = vsel %vm49_vm0, %v1666_v12, %v4175_v8 }
 0x65b   :  { %v4184_v21 = vpop.permute.xlu2 %4183 }
 0x65c   :  { %v4186_v22 = vunpack.i.h.bf16 %v4184_v21  ;;  %v4185_v23 = vunpack.i.l.bf16 %v4184_v21 }
 0x65e   :  { %v1735_v29 = vsel %vm49_vm0, %v1669_v25, %v4186_v22  ;;  %v1734_v31 = vsel %vm49_vm0, %v1668_v26, %v4185_v23 }
 0x66b   :  { %v4179_v9 = vpop.permute.xlu1 %4178 }
 0x66c   :  { %v4181_v13 = vunpack.i.h.bf16 %v4179_v9  ;;  %v4180_v14 = vunpack.i.l.bf16 %v4179_v9  ;;  %v4199_v37 = vpop.permute.xlu2 %4198 }
 0x66d   :  { %v4201_v42 = vunpack.i.h.bf16 %v4199_v37  ;;  %v4200_v43 = vunpack.i.l.bf16 %v4199_v37 }
 0x66e   :  { %v1738_v17 = vsel %vm322_vm1, %v1732_v16, %v4180_v14  ;;  %v1739_v18 = vsel %vm322_vm1, %v1733_v15, %v4181_v13 }
 0x66f   :  { %v1744_v19 = vpack.c.bf16 %v1739_v18, %v1738_v17  ;;  %v4208_v18 = vld [vmem:[%s5651_s6] ss:$0 sm:$0xff] }
 0x671   :  { %3552 = vmatmul.msk.bf16.vlgmr.msrb.gmra.mxu3 %vm373_vm2, %v1744_v19 }
 0x67b   :  { %v4189_v24 = vpop.permute.xlu0 %4188 }
 0x67c   :  { %v4191_v27 = vunpack.i.h.bf16 %v4189_v24  ;;  %v4190_v28 = vunpack.i.l.bf16 %v4189_v24 }
 0x67e   :  { %v1740_v32 = vsel %vm322_vm1, %v1734_v31, %v4190_v28  ;;  %v1741_v33 = vsel %vm322_vm1, %v1735_v29, %v4191_v27  ;;  %v4210_v27 = vld [vmem:[%s5650_s5] ss:$0 sm:$0xff] }
 0x67f   :  { %v1745_v34 = vpack.c.bf16 %v1741_v33, %v1740_v32  ;;  %v4211_v28 = vld [vmem:[%s5651_s6] ss:$0 sm:$0xff] }
 0x681   :  { %3553 = vmatmul.msk.bf16.gmra.mxu3 %vm373_vm2, %v1745_v34 }
 0x685   :  { %v4194_v35 = vpop.permute.xlu1 %4193 }
 0x686   :  { %v4196_v30 = vunpack.i.h.bf16 %v4194_v35  ;;  %v4195_v36 = vunpack.i.l.bf16 %v4194_v35 }
 0x688   :  { %v1737_v40 = vsel %vm49_vm0, %v1671_v39, %v4196_v30  ;;  %v1736_v41 = vsel %vm49_vm0, %v1670_v38, %v4195_v36 }
 0x689   :  { %v1742_v44 = vsel %vm322_vm1, %v1736_v41, %v4200_v43  ;;  %v1743_v45 = vsel %vm322_vm1, %v1737_v40, %v4201_v42 }
 0x68a   :  { %v1746_v46 = vpack.c.bf16 %v1743_v45, %v1742_v44 }
 0x691   :  { %3554 = vmatmul.msk.bf16.gmra.mxu3 %vm373_vm2, %v1746_v46 }
 0x6f4   :  { %v1786_v50 = vpop.f32.mrf.mxu3 }
 0x6f5   :  { %v1787_v51 = vadd.f32 %v4207_v49, %v1786_v50 }
 0x6f7   :  { %v1801_v52 = vmax.f32 %v1787_v51, 0.0 }
 0x6f9   :  { %1807 = vst.msk [vmem:[#allocation4 + $0x1] sm:$0xff] %vm49_vm0, %v1801_v52 }
 0x6fa   :  { %1813 = vst.msk [vmem:[#allocation4 + $0x1] sm:$0x1] %vm500_vm3, %v4323_v10 }
 0x6fc   :  { %v1788_v53 = vpop.f32.mrf.mxu3 }
 0x6fd   :  { %v1789_v54 = vadd.f32 %v4207_v49, %v1788_v53 }
 0x6ff   :  { %v1802_v48 = vmax.f32 %v1789_v54, 0.0 }
 0x701   :  { %1808 = vst.msk [vmem:[#allocation4 + $0x9] sm:$0xff] %vm49_vm0, %v1802_v48 }
 0x704   :  { %v1791_v55 = vpop.f32.mrf.mxu3 }
 0x705   :  { %v1792_v56 = vadd.f32 %v4207_v49, %v1791_v55 }
 0x707   :  { %v1803_v57 = vmax.f32 %v1792_v56, 0.0 }
 0x708   :  { %v1822_v60 = vld [vmem:[#allocation4 + $0x1] ss:$2 sm:$0xff]  ;;  %v1826_v61 = vld [vmem:[#allocation4 + $0x2] ss:$2 sm:$0xff] }
 0x709   :  { %1809 = vst.msk [vmem:[#allocation4 + $0x11] sm:$0xff] %vm49_vm0, %v1803_v57  ;;  %v1829_v1 = vmax.f32 %v1822_v60, %v1826_v61  ;;  %v5194_v61 = vld [vmem:[%s5652_s7 + $0x38] sm:$0xff] }
 0x70a   :  { %1814 = vst.msk [vmem:[#allocation4 + $0x15] sm:$0x1] %vm500_vm3, %v4323_v10  ;;  %2084 = vmatpush.msra.mxu1 %v5194_v61  ;;  %2218 = vmatpush.msrb.mxu3 %v5194_v61 }
 0x70b   :  { %1815 = vst.msk [vmem:[#allocation4 + $0x16] sm:$0x1] %vm500_vm3, %v4323_v10 }
 0x70c   :  { %v1793_v58 = vpop.f32.mrf.mxu3 }
 0x70d   :  { %v1794_v59 = vadd.f32 %v4207_v49, %v1793_v58 }
 0x70f   :  { %v1804_v62 = vmax.f32 %v1794_v59, 0.0 }
 0x710   :  { %v1824_v63 = vld [vmem:[#allocation4 + $0x11] ss:$2 sm:$0x3]  ;;  %v1828_v0 = vld [vmem:[#allocation4 + $0x12] ss:$2 sm:$0x3] }
 0x711   :  { %1810 = vst.msk [vmem:[#allocation4 + $0x19] sm:$0xff] %vm49_vm0, %v1804_v62  ;;  %v1830_v2 = vmax.f32 %v1824_v63, %v1828_v0  ;;  %v5199_v62 = vld [vmem:[%s5652_s7 + $0x30] sm:$0xff]  ;;  %v3812_v63 = vld [vmem:[%s5653_s8 + $0x138] sm:$0xff]  ;;  %v5209_v0 = vld [vmem:[%s5652_s7 + $0x28] sm:$0xff] }
 0x712   :  { %2051 = vmatpush.bf16.msrb.mxu0 %v3812_v63  ;;  %2085 = vmatpush.msra.mxu1 %v5199_v62 }
 0x713   :  { %v1831_v3 = vpack.c.bf16 %v1830_v2, %v1829_v1  ;;  %v3811_v1 = vld [vmem:[%s5653_s8 + $0x130] sm:$0xff]  ;;  %2219 = vmatpush.msrb.mxu3 %v5199_v62  ;;  %v5219_v2 = vld [vmem:[%s5652_s7 + $0x20] sm:$0xff] }
 0x714   :  { %v1796_v4 = vpop.f32.mrf.mxu3  ;;  %2086 = vmatpush.msra.mxu1 %v5209_v0 }
 0x715   :  { %v1797_v5 = vadd.f32 %v4207_v49, %v1796_v4  ;;  %3559 = vmatmul.msk.bf16.vlgmr.msra.gmra.mxu2 %vm49_vm0, %v1831_v3  ;;  %3564 = vmatmul.msk.bf16.vlgmr.msrb.gmra.mxu1 %vm49_vm0, %v1831_v3  ;;  %v5226_v3 = vld [vmem:[%s5652_s7 + $0x18] sm:$0xff]  ;;  %v3810_v4 = vld [vmem:[%s5653_s8 + $0x8] sm:$0xff] }
 0x716   :  { %2220 = vmatpush.msrb.mxu3 %v5209_v0  ;;  %2052 = vmatpush.bf16.msrb.mxu0 %v3811_v1 }
 0x717   :  { %v1805_v6 = vmax.f32 %v1797_v5, 0.0  ;;  %2087 = vmatpush.msra.mxu1 %v5219_v2  ;;  %v5236_v5 = vld [vmem:[%s5652_s7 + $0x10] sm:$0xff] }
 0x718   :  { %2221 = vmatpush.msrb.mxu3 %v5219_v2 }
 0x719   :  { %1811 = vst.msk [vmem:[#allocation4 + $0x21] sm:$0xff] %vm49_vm0, %v1805_v6  ;;  %2088 = vmatpush.msra.mxu1 %v5226_v3  ;;  %v5243_v6 = vld [vmem:[%s5652_s7 + $0x8] sm:$0xff] }
 0x71a   :  { %2222 = vmatpush.msrb.mxu3 %v5226_v3  ;;  %2053 = vmatpush.bf16.msrb.mxu0 %v3810_v4 }
 0x71b   :  { %2089 = vmatpush.msra.mxu1 %v5236_v5 }
 0x71c   :  { %v1798_v7 = vpop.f32.mrf.mxu3  ;;  %2223 = vmatpush.msrb.mxu3 %v5236_v5 }
 0x71d   :  { %v1799_v8 = vadd.f32 %v4207_v49, %v1798_v7  ;;  %v5250_v7 = vld [vmem:[%s5652_s7] sm:$0xff]  ;;  %2090 = vmatpush.msra.mxu1 %v5243_v6 }
 0x71e   :  { %2224 = vmatpush.msrb.mxu3 %v5243_v6 }
 0x71f   :  { %v1806_v9 = vmax.f32 %v1799_v8, 0.0  ;;  %2091 = vmatpush.msra.mxu1 %v5250_v7  ;;  %v1949_v8 = vlaneseq }
 0x720   :  { %v1888_v11 = vld [vmem:[#allocation4 + $0x16] ss:$2 sm:$0xff]  ;;  %v1892_v12 = vld [vmem:[#allocation4 + $0x17] ss:$2 sm:$0xff]  ;;  %2225 = vmatpush.msrb.mxu3 %v5250_v7 }
 0x721   :  { %1812 = vst.msk [vmem:[#allocation4 + $0x29] sm:$0x3] %vm1651_vm8, %v1806_v9  ;;  %v1890_v13 = vld [vmem:[#allocation4 + $0x26] ss:$2 sm:$0x3]  ;;  %v1895_v15 = vmax.f32 %v1888_v11, %v1892_v12  ;;  %2352 = vmatpush.msrb.mxu1 %v5194_v61  ;;  %v5264_v9 = vshrl.u32 %v1949_v8, 7 }
 0x722   :  { %1816 = vst.msk [vmem:[#allocation4 + $0x2a] sm:$0x1] %vm500_vm3, %v4323_v10  ;;  %v4209_v10 = vld [vmem:[%s5650_s5] ss:$0 sm:$0xff]  ;;  %s4324_s5 = smov 64  }
 0x723   :  { %2353 = vmatpush.msrb.mxu1 %v5199_v62  ;;  %vm1951_vm14 = vcmp.lt.s32.totalorder %v5264_v9, 2  ;;  %v3854_v9 = vld [vmem:[%s5655_s10 + $0x28] sm:$0xff] }
 0x725   :  { %2354 = vmatpush.msrb.mxu1 %v5209_v0 }
 0x727   :  { %2355 = vmatpush.msrb.mxu1 %v5219_v2 }
 0x728   :  { %v1894_v14 = vld [vmem:[#allocation4 + $0x27] ss:$2 sm:$0x3] }
 0x729   :  { %v1896_v16 = vmax.f32 %v1890_v13, %v1894_v14  ;;  %2356 = vmatpush.msrb.mxu1 %v5226_v3 }
 0x72b   :  { %v1897_v17 = vpack.c.bf16 %v1896_v16, %v1895_v15  ;;  %2357 = vmatpush.msrb.mxu1 %v5236_v5  ;;  %v3809_v15 = vld [vmem:[%s5653_s8] sm:$0xff] }
 0x72c   :  { %2054 = vmatpush.bf16.msrb.mxu0 %v3809_v15 }
 0x72d   :  { %3565 = vmatmul.msk.bf16.vlgmr.msrb.gmra.mxu2 %vm49_vm0, %v1897_v17  ;;  %3566 = vmatmul.msk.bf16.vlgmr.msra.gmra.mxu3 %vm49_vm0, %v1897_v17 }
 0x72e   :  { %2486 = vmatpush.msra.mxu3 %v5194_v61  ;;  %2358 = vmatpush.msrb.mxu1 %v5243_v6 }
 0x730   :  { %2487 = vmatpush.msra.mxu3 %v5199_v62  ;;  %2359 = vmatpush.msrb.mxu1 %v5250_v7 }
 0x732   :  { %2488 = vmatpush.msra.mxu3 %v5209_v0 }
 0x734   :  { %2489 = vmatpush.msra.mxu3 %v5219_v2 }
 0x736   :  { %2490 = vmatpush.msra.mxu3 %v5226_v3 }
 0x738   :  { %2491 = vmatpush.msra.mxu3 %v5236_v5 }
 0x73a   :  { %2492 = vmatpush.msra.mxu3 %v5243_v6 }
 0x73c   :  { %2493 = vmatpush.msra.mxu3 %v5250_v7 }
 0x792   :  { %v1880_v19 = vpop.f32.mrf.mxu1 }
 0x793   :  { %v1881_v20 = vadd.f32 %v4208_v18, %v1880_v19 }
 0x795   :  { %1885 = vst [vmem:[#allocation6] sm:$0xff] %v1881_v20 }
 0x798   :  { %v1854_v21 = vpop.f32.mrf.mxu2 }
 0x799   :  { %v1855_v22 = vadd.f32 %v4209_v10, %v1854_v21 }
 0x79a   :  { %v1882_v23 = vpop.f32.mrf.mxu1 }
 0x79b   :  { %1859 = vst [vmem:[#allocation5] sm:$0xff] %v1855_v22  ;;  %v1883_v24 = vadd.f32 %v4208_v18, %v1882_v23 }
 0x79d   :  { %1886 = vst [vmem:[#allocation6 + $0x8] sm:$0x3] %v1883_v24 }
 0x7a0   :  { %v1856_v25 = vpop.f32.mrf.mxu2 }
 0x7a1   :  { %v1857_v26 = vadd.f32 %v4209_v10, %v1856_v25 }
 0x7a3   :  { %1860 = vst [vmem:[#allocation5 + $0x8] sm:$0x3] %v1857_v26 }
 0x7b0   :  { %v1914_v29 = vpop.f32.mrf.mxu2  ;;  %v1934_v31 = vpop.f32.mrf.mxu3 }
 0x7b1   :  { %v1915_v32 = vadd.f32 %v4210_v27, %v1914_v29  ;;  %v1935_v33 = vadd.f32 %v4211_v28, %v1934_v31 }
 0x7b3   :  { %1919 = vst [vmem:[#allocation5 + $0xa] sm:$0xff] %v1915_v32 }
 0x7b4   :  { %1939 = vst [vmem:[#allocation6 + $0xa] sm:$0xff] %v1935_v33 }
 0x7b8   :  { %v1916_v34 = vpop.f32.mrf.mxu2  ;;  %v1936_v35 = vpop.f32.mrf.mxu3 }
 0x7b9   :  { %v1917_v30 = vadd.f32 %v4210_v27, %v1916_v34  ;;  %v1937_v36 = vadd.f32 %v4211_v28, %v1936_v35 }
 0x7ba   :  { %v1952_v39 = vld [vmem:[#allocation5] ss:$10 sm:$0x3]  ;;  %v2066_v21 = vld [vmem:[#allocation5 + $0x1] ss:$10 sm:$0x3] }
 0x7bb   :  { %1920 = vst [vmem:[#allocation5 + $0x12] sm:$0x3] %v1917_v30  ;;  %v2200_v1 = vld [vmem:[#allocation5 + $0x2] ss:$10 sm:$0x3] }
 0x7bc   :  { %1940 = vst [vmem:[#allocation6 + $0x12] sm:$0x3] %v1937_v36 }
 0x7c3   :  { %v1954_v37 = vld [vmem:[#allocation6 + $0x9] ss:$10 sm:$0x3]  ;;  %v2068_v20 = vld [vmem:[#allocation6 + $0x8] ss:$10 sm:$0x3] }
 0x7c4   :  { %v1956_v38 = vrot.slane %v1954_v37, 6  ;;  %v2070_v10 = vrot.slane %v2068_v20, 6 }
 0x7c6   :  { %v1959_v40 = vsel %vm1958_vm9, %v1952_v39, %v1956_v38  ;;  %v2072_v22 = vsel %vm1958_vm9, %v2066_v21, %v2070_v10 }
 0x7c7   :  { %4215 = vtanh.f32 %v1959_v40  ;;  %v3567_v42 = vmul.f32 -1.442695, %v1959_v40 }
 0x7c9   :  { %4217 = vpow2.f32 %v3567_v42 }
 0x7cd   :  { %v4216_v41 = vpop.eup %4215 }
 0x7ce   :  { %1982 = vrot.lane.b32.xlu0 %v4216_v41, %s4324_s5 }
 0x7cf   :  { %v4218_v43 = vpop.eup %4217 }
 0x7d0   :  { %v1963_v44 = vadd.f32 1.0, %v4218_v43 }
 0x7d2   :  { %4219 = vrcp.f32 %v1963_v44  ;;  %v1975_v51 = vand.u32 2147483648, %v1963_v44  ;;  %vm1969_vm11 = vweird.f32 %v1963_v44  ;;  %v1973_v52 = vand.u32 2147483647, %v1963_v44 }
 0x7d4   :  { %v1976_v54 = vor.u32 1.1754944e-38, %v1975_v51  ;;  %vm1974_vm13 = vcmp.eq.f32.partialorder %v1973_v52, 8.507059e+37  ;;  %v3816_v52 = vld [vmem:[%s5653_s8 + $0x118] sm:$0xff] }
 0x7d5   :  { %2185 = vmatpush.bf16.msra.mxu2 %v3816_v52  ;;  %v2334_v52 = vld [vmem:[#allocation5 + $0x3] ss:$10 sm:$0x3] }
 0x7d8   :  { %v4220_v45 = vpop.eup %4219 }
 0x7d9   :  { %v1965_v46 = vmul.f32 %v4220_v45, %v1963_v44  ;;  %vm1970_vm10 = vweird.f32 %v4220_v45 }
 0x7da   :  { %vm1971_vm12 = vmor %vm1969_vm11, %vm1970_vm10 }
 0x7db   :  { %v1966_v47 = vsub.f32 1.0, %v1965_v46 }
 0x7dd   :  { %v1967_v49 = vmul.f32 %v4220_v45, %v1966_v47 }
 0x7df   :  { %v1968_v50 = vadd.f32 %v4220_v45, %v1967_v49 }
 0x7e1   :  { %v1972_v53 = vsel %vm1971_vm12, %v4220_v45, %v1968_v50 }
 0x7e2   :  { %v1977_v55 = vsel %vm1974_vm13, %v1976_v54, %v1972_v53  ;;  %v3815_v53 = vld [vmem:[%s5653_s8 + $0x110] sm:$0xff]  ;;  %v3814_v54 = vld [vmem:[%s5653_s8 + $0x28] sm:$0xff] }
 0x7e3   :  { %v1980_v57 = vmul.f32 0.0, %v1977_v55  ;;  %2186 = vmatpush.bf16.msra.mxu2 %v3815_v53 }
 0x7e7   :  { %2187 = vmatpush.bf16.msra.mxu2 %v3814_v54 }
 0x840   :  { %v1983_v48 = vpop.permute.xlu0 %1982 }
 0x841   :  { %v1985_v56 = vmul.f32 %v1983_v48, %v1977_v55  ;;  %v3813_v48 = vld [vmem:[%s5653_s8 + $0x20] sm:$0xff] }
 0x842   :  { %2188 = vmatpush.bf16.msra.mxu2 %v3813_v48 }
 0x843   :  { %1987 = vrot.lane.b32.xlu1 %v1985_v56, %s4322_s27 }
 0x8b5   :  { %v1988_v58 = vpop.permute.xlu1 %1987 }
 0x8b6   :  { %v5187_v59 = vadd.f32 %v1988_v58, %v1980_v57 }
 0x8b8   :  { %4221 = vtanh.f32 %v5187_v59 }
 0x8be   :  { %v4222_v60 = vpop.eup %4221 }
 0x8bf   :  { %1993 = vrot.lane.b32.xlu2 %v4222_v60, %s4324_s5 }
 0x919   :  { %v1994_v11 = vpop.permute.xlu2 %1993 }
 0x91a   :  { %v1996_v12 = vmul.f32 %v1994_v11, %v1977_v55 }
 0x91c   :  { %v2000_v13 = vsel %vm1951_vm14, 0.0, %v1996_v12  ;;  %v1999_v14 = vsel %vm1951_vm14, %v1996_v12, 0.0 }
 0x91d   :  { %2006 = vrot.lane.b32.xlu1 %v2000_v13, %s4324_s5  ;;  %2002 = vrot.lane.b32.xlu0 %v1999_v14, %s4322_s27 }
 0x98f   :  { %v2007_v16 = vpop.permute.xlu1 %2006  ;;  %v2003_v17 = vpop.permute.xlu0 %2002 }
 0x990   :  { %v2009_v18 = vsel %vm322_vm1, %v2003_v17, %v2007_v16 }
 0x991   :  { %v2042_v19 = vpack.c.bf16 %v2009_v18, %v2009_v18  ;;  %3585 = vmatmul.msk.f32.vlgmr.msra.gmra.mxu1 %vm2043_vm15, %v2009_v18 }
 0x992   :  { %2620 = vmatpush.msra.mxu1 %v5194_v61 }
 0x993   :  { %3584 = vmatmul.msk.bf16.vlgmr.msrb.gmra.mxu0 %vm2043_vm15, %v2042_v19 }
 0x994   :  { %2621 = vmatpush.msra.mxu1 %v5199_v62 }
 0x996   :  { %2622 = vmatpush.msra.mxu1 %v5209_v0 }
 0x998   :  { %2623 = vmatpush.msra.mxu1 %v5219_v2 }
 0x99a   :  { %2624 = vmatpush.msra.mxu1 %v5226_v3 }
 0x99c   :  { %2625 = vmatpush.msra.mxu1 %v5236_v5 }
 0x99e   :  { %2626 = vmatpush.msra.mxu1 %v5243_v6 }
 0x9a0   :  { %2627 = vmatpush.msra.mxu1 %v5250_v7 }
 0xa0e   :  { %v2093_v23 = vpop.f32.mrf.mxu1 }
 0xa0f   :  { %v2096_v24 = vadd.f32 %v2093_v23, %v2072_v22 }
 0xa10   :  { %v5296_v25 = vpop.f32.mrf.mxu0 }
 0xa11   :  { %4223 = vtanh.f32 %v2096_v24  ;;  %v3586_v28 = vmul.f32 -1.442695, %v2096_v24  ;;  %v2062_v63 = vrot.slane %v5296_v25, 2 }
 0xa13   :  { %4225 = vpow2.f32 %v3586_v28  ;;  %v2064_v11 = vadd.f32 %v2062_v63, %v5296_v25 }
 0xa17   :  { %v4224_v26 = vpop.eup %4223 }
 0xa18   :  { %2119 = vrot.lane.b32.xlu2 %v4224_v26, %s4324_s5  ;;  %v2058_v27 = vpop.f32.mrf.mxu0 }
 0xa19   :  { %v4226_v29 = vpop.eup %4225 }
 0xa1a   :  { %v2100_v31 = vadd.f32 1.0, %v4226_v29 }
 0xa1c   :  { %4227 = vrcp.f32 %v2100_v31  ;;  %v2112_v36 = vand.u32 2147483648, %v2100_v31  ;;  %vm2106_vm2 = vweird.f32 %v2100_v31  ;;  %v2110_v37 = vand.u32 2147483647, %v2100_v31 }
 0xa1e   :  { %v2113_v39 = vor.u32 1.1754944e-38, %v2112_v36  ;;  %vm2111_vm4 = vcmp.eq.f32.partialorder %v2110_v37, 8.507059e+37 }
 0xa22   :  { %v4228_v32 = vpop.eup %4227 }
 0xa23   :  { %v2102_v33 = vmul.f32 %v4228_v32, %v2100_v31  ;;  %vm2107_vm0 = vweird.f32 %v4228_v32 }
 0xa24   :  { %vm2108_vm3 = vmor %vm2106_vm2, %vm2107_vm0 }
 0xa25   :  { %v2103_v34 = vsub.f32 1.0, %v2102_v33 }
 0xa27   :  { %v2104_v35 = vmul.f32 %v4228_v32, %v2103_v34 }
 0xa29   :  { %v2105_v30 = vadd.f32 %v4228_v32, %v2104_v35 }
 0xa2b   :  { %v2109_v38 = vsel %vm2108_vm3, %v4228_v32, %v2105_v30 }
 0xa2c   :  { %v2114_v41 = vsel %vm2111_vm4, %v2113_v39, %v2109_v38 }
 0xa2d   :  { %v2117_v43 = vmul.f32 %v2114_v41, %v5187_v59  ;;  %v2202_v59 = vld [vmem:[#allocation6 + $0x7] ss:$10 sm:$0x3] }
 0xa2e   :  { %v2204_v60 = vrot.slane %v2202_v59, 6 }
 0xa30   :  { %v2206_v4 = vsel %vm1958_vm9, %v2200_v1, %v2204_v60 }
 0xa72   :  { %v2120_v40 = vpop.permute.xlu2 %2119 }
 0xa73   :  { %v2122_v42 = vmul.f32 %v2120_v40, %v2114_v41 }
 0xa75   :  { %2124 = vrot.lane.b32.xlu0 %v2122_v42, %s4322_s27  ;;  %v3819_v42 = vld [vmem:[%s5653_s8 + $0xf0] sm:$0xff] }
 0xae7   :  { %v2125_v44 = vpop.permute.xlu0 %2124 }
 0xae8   :  { %v5301_v45 = vadd.f32 %v2125_v44, %v2117_v43  ;;  %v3818_v43 = vld [vmem:[%s5653_s8 + $0x48] sm:$0xff]  ;;  %v3817_v44 = vld [vmem:[%s5653_s8 + $0x40] sm:$0xff] }
 0xaea   :  { %4229 = vtanh.f32 %v5301_v45 }
 0xaf0   :  { %v4230_v46 = vpop.eup %4229 }
 0xaf1   :  { %2130 = vrot.lane.b32.xlu1 %v4230_v46, %s4324_s5 }
 0xb63   :  { %v2131_v47 = vpop.permute.xlu1 %2130 }
 0xb64   :  { %v2133_v49 = vmul.f32 %v2131_v47, %v2114_v41  ;;  %v3820_v41 = vld [vmem:[%s5653_s8 + $0xf8] sm:$0xff] }
 0xb65   :  { %2319 = vmatpush.bf16.msra.mxu0 %v3820_v41 }
 0xb66   :  { %v2135_v50 = vsel %vm1951_vm14, 0.0, %v2133_v49  ;;  %v2134_v51 = vsel %vm1951_vm14, %v2133_v49, 0.0 }
 0xb67   :  { %2141 = vrot.lane.b32.xlu0 %v2135_v50, %s4324_s5  ;;  %2137 = vrot.lane.b32.xlu2 %v2134_v51, %s4322_s27  ;;  %v2336_v50 = vld [vmem:[#allocation6 + $0x6] ss:$10 sm:$0x3] }
 0xb68   :  { %v2338_v51 = vrot.slane %v2336_v50, 6 }
 0xb69   :  { %2320 = vmatpush.bf16.msra.mxu0 %v3819_v42 }
 0xb6a   :  { %v2340_v53 = vsel %vm1958_vm9, %v2334_v52, %v2338_v51 }
 0xb6d   :  { %2321 = vmatpush.bf16.msra.mxu0 %v3818_v43 }
 0xb71   :  { %2322 = vmatpush.bf16.msra.mxu0 %v3817_v44 }
 0xbc1   :  { %v2138_v55 = vpop.permute.xlu2 %2137 }
 0xbd9   :  { %v2142_v56 = vpop.permute.xlu0 %2141 }
 0xbda   :  { %v2144_v57 = vsel %vm322_vm1, %v2138_v55, %v2142_v56 }
 0xbdb   :  { %v2177_v58 = vpack.c.bf16 %v2144_v57, %v2144_v57  ;;  %3604 = vmatmul.msk.f32.vlgmr.msrb.gmra.mxu3 %vm2043_vm15, %v2144_v57 }
 0xbdc   :  { %2754 = vmatpush.msrb.mxu3 %v5194_v61 }
 0xbdd   :  { %3603 = vmatmul.msk.bf16.vlgmr.msra.gmra.mxu2 %vm2043_vm15, %v2177_v58 }
 0xbde   :  { %2755 = vmatpush.msrb.mxu3 %v5199_v62 }
 0xbe0   :  { %2756 = vmatpush.msrb.mxu3 %v5209_v0 }
 0xbe2   :  { %2757 = vmatpush.msrb.mxu3 %v5219_v2 }
 0xbe4   :  { %2758 = vmatpush.msrb.mxu3 %v5226_v3 }
 0xbe6   :  { %2759 = vmatpush.msrb.mxu3 %v5236_v5 }
 0xbe8   :  { %2760 = vmatpush.msrb.mxu3 %v5243_v6 }
 0xbea   :  { %2761 = vmatpush.msrb.mxu3 %v5250_v7 }
 0xc5e   :  { %v2227_v8 = vpop.f32.mrf.mxu3 }
 0xc5f   :  { %v2230_v12 = vadd.f32 %v2227_v8, %v2206_v4 }
 0xc60   :  { %v2190_v13 = vpop.f32.mrf.mxu2 }
 0xc61   :  { %4231 = vtanh.f32 %v2230_v12  ;;  %v2194_v14 = vadd.f32 %v2190_v13, %v2064_v11  ;;  %v2196_v15 = vrot.slane %v2190_v13, 2  ;;  %v3605_v19 = vmul.f32 -1.442695, %v2230_v12 }
 0xc63   :  { %v5337_v16 = vadd.f32 %v2196_v15, %v2194_v14  ;;  %4233 = vpow2.f32 %v3605_v19 }
 0xc67   :  { %v4232_v17 = vpop.eup %4231 }
 0xc68   :  { %2253 = vrot.lane.b32.xlu1 %v4232_v17, %s4324_s5  ;;  %v2192_v18 = vpop.f32.mrf.mxu2 }
 0xc69   :  { %v4234_v20 = vpop.eup %4233 }
 0xc6a   :  { %v2234_v10 = vadd.f32 1.0, %v4234_v20 }
 0xc6c   :  { %4235 = vrcp.f32 %v2234_v10  ;;  %v2246_v26 = vand.u32 2147483648, %v2234_v10  ;;  %vm2240_vm6 = vweird.f32 %v2234_v10  ;;  %v2244_v27 = vand.u32 2147483647, %v2234_v10 }
 0xc6e   :  { %v2247_v29 = vor.u32 1.1754944e-38, %v2246_v26  ;;  %vm2245_vm8 = vcmp.eq.f32.partialorder %v2244_v27, 8.507059e+37  ;;  %v3823_v26 = vld [vmem:[%s5653_s8 + $0xd0] sm:$0xff]  ;;  %v3822_v27 = vld [vmem:[%s5653_s8 + $0x68] sm:$0xff] }
 0xc72   :  { %v4236_v21 = vpop.eup %4235 }
 0xc73   :  { %v2236_v22 = vmul.f32 %v4236_v21, %v2234_v10  ;;  %vm2241_vm5 = vweird.f32 %v4236_v21 }
 0xc74   :  { %vm2242_vm7 = vmor %vm2240_vm6, %vm2241_vm5 }
 0xc75   :  { %v2237_v23 = vsub.f32 1.0, %v2236_v22 }
 0xc77   :  { %v2238_v24 = vmul.f32 %v4236_v21, %v2237_v23 }
 0xc79   :  { %v2239_v25 = vadd.f32 %v4236_v21, %v2238_v24 }
 0xc7b   :  { %v2243_v28 = vsel %vm2242_vm7, %v4236_v21, %v2239_v25  ;;  %v3824_v25 = vld [vmem:[%s5653_s8 + $0xd8] sm:$0xff] }
 0xc7c   :  { %v2248_v32 = vsel %vm2245_vm8, %v2247_v29, %v2243_v28  ;;  %2453 = vmatpush.bf16.msrb.mxu2 %v3824_v25  ;;  %v2604_v25 = vld [vmem:[#allocation6 + $0x4] ss:$10 sm:$0x3] }
 0xc7d   :  { %v2251_v34 = vmul.f32 %v2248_v32, %v5301_v45 }
 0xc80   :  { %2454 = vmatpush.bf16.msrb.mxu2 %v3823_v26  ;;  %v2606_v26 = vrot.slane %v2604_v25, 6 }
 0xc84   :  { %2455 = vmatpush.bf16.msrb.mxu2 %v3822_v27  ;;  %v2602_v27 = vld [vmem:[#allocation5 + $0x5] ss:$10 sm:$0x3] }
 0xcda   :  { %v2254_v31 = vpop.permute.xlu1 %2253 }
 0xcdb   :  { %v2256_v33 = vmul.f32 %v2254_v31, %v2248_v32 }
 0xcdd   :  { %2258 = vrot.lane.b32.xlu2 %v2256_v33, %s4322_s27  ;;  %v3821_v33 = vld [vmem:[%s5653_s8 + $0x60] sm:$0xff] }
 0xcde   :  { %2456 = vmatpush.bf16.msrb.mxu2 %v3821_v33 }
 0xd37   :  { %v2259_v35 = vpop.permute.xlu2 %2258 }
 0xd38   :  { %v5342_v30 = vadd.f32 %v2259_v35, %v2251_v34 }
 0xd3a   :  { %4237 = vtanh.f32 %v5342_v30 }
 0xd40   :  { %v4238_v36 = vpop.eup %4237 }
 0xd41   :  { %2264 = vrot.lane.b32.xlu0 %v4238_v36, %s4324_s5 }
 0xdb3   :  { %v2265_v37 = vpop.permute.xlu0 %2264 }
 0xdb4   :  { %v2267_v38 = vmul.f32 %v2265_v37, %v2248_v32  ;;  %v2470_v37 = vld [vmem:[#allocation6 + $0x5] ss:$10 sm:$0x3] }
 0xdb6   :  { %v2269_v39 = vsel %vm1951_vm14, 0.0, %v2267_v38  ;;  %v2268_v40 = vsel %vm1951_vm14, %v2267_v38, 0.0  ;;  %v2472_v38 = vrot.slane %v2470_v37, 6 }
 0xdb7   :  { %2275 = vrot.lane.b32.xlu2 %v2269_v39, %s4324_s5  ;;  %2271 = vrot.lane.b32.xlu1 %v2268_v40, %s4322_s27  ;;  %v2468_v39 = vld [vmem:[#allocation5 + $0x4] ss:$10 sm:$0x3] }
 0xdb8   :  { %v2474_v40 = vsel %vm1958_vm9, %v2468_v39, %v2472_v38 }
 0xe11   :  { %v2276_v45 = vpop.permute.xlu2 %2275 }
 0xe29   :  { %v2272_v46 = vpop.permute.xlu1 %2271 }
 0xe2a   :  { %v2278_v47 = vsel %vm322_vm1, %v2272_v46, %v2276_v45 }
 0xe2b   :  { %v2311_v49 = vpack.c.bf16 %v2278_v47, %v2278_v47  ;;  %3623 = vmatmul.msk.f32.vlgmr.msrb.gmra.mxu1 %vm2043_vm15, %v2278_v47 }
 0xe2c   :  { %2888 = vmatpush.msrb.mxu1 %v5194_v61 }
 0xe2d   :  { %3622 = vmatmul.msk.bf16.vlgmr.msra.gmra.mxu0 %vm2043_vm15, %v2311_v49 }
 0xe2e   :  { %2889 = vmatpush.msrb.mxu1 %v5199_v62 }
 0xe30   :  { %2890 = vmatpush.msrb.mxu1 %v5209_v0 }
 0xe32   :  { %2891 = vmatpush.msrb.mxu1 %v5219_v2 }
 0xe34   :  { %2892 = vmatpush.msrb.mxu1 %v5226_v3 }
 0xe36   :  { %2893 = vmatpush.msrb.mxu1 %v5236_v5 }
 0xe38   :  { %2894 = vmatpush.msrb.mxu1 %v5243_v6 }
 0xe3a   :  { %2895 = vmatpush.msrb.mxu1 %v5250_v7 }
 0xea8   :  { %v2361_v54 = vpop.f32.mrf.mxu1 }
 0xea9   :  { %v2364_v48 = vadd.f32 %v2361_v54, %v2340_v53 }
 0xeaa   :  { %v2324_v55 = vpop.f32.mrf.mxu0 }
 0xeab   :  { %4239 = vtanh.f32 %v2364_v48  ;;  %v2328_v56 = vadd.f32 %v2324_v55, %v5337_v16  ;;  %v2330_v57 = vrot.slane %v2324_v55, 2  ;;  %v3624_v63 = vmul.f32 -1.442695, %v2364_v48 }
 0xead   :  { %v5377_v58 = vadd.f32 %v2330_v57, %v2328_v56  ;;  %4241 = vpow2.f32 %v3624_v63 }
 0xeb1   :  { %v4240_v59 = vpop.eup %4239 }
 0xeb2   :  { %2387 = vrot.lane.b32.xlu0 %v4240_v59, %s4324_s5  ;;  %v2326_v60 = vpop.f32.mrf.mxu0 }
 0xeb3   :  { %v4242_v1 = vpop.eup %4241 }
 0xeb4   :  { %v2368_v4 = vadd.f32 1.0, %v4242_v1 }
 0xeb6   :  { %4243 = vrcp.f32 %v2368_v4  ;;  %v2380_v15 = vand.u32 2147483648, %v2368_v4  ;;  %vm2374_vm11 = vweird.f32 %v2368_v4  ;;  %v2378_v16 = vand.u32 2147483647, %v2368_v4 }
 0xeb8   :  { %v2381_v18 = vor.u32 1.1754944e-38, %v2380_v15  ;;  %vm2379_vm13 = vcmp.eq.f32.partialorder %v2378_v16, 8.507059e+37 }
 0xebc   :  { %v4244_v8 = vpop.eup %4243 }
 0xebd   :  { %v2370_v11 = vmul.f32 %v4244_v8, %v2368_v4  ;;  %vm2375_vm10 = vweird.f32 %v4244_v8 }
 0xebe   :  { %vm2376_vm12 = vmor %vm2374_vm11, %vm2375_vm10 }
 0xebf   :  { %v2371_v12 = vsub.f32 1.0, %v2370_v11 }
 0xec1   :  { %v2372_v13 = vmul.f32 %v4244_v8, %v2371_v12 }
 0xec3   :  { %v2373_v14 = vadd.f32 %v4244_v8, %v2372_v13 }
 0xec5   :  { %v2377_v17 = vsel %vm2376_vm12, %v4244_v8, %v2373_v14 }
 0xec6   :  { %v2382_v20 = vsel %vm2379_vm13, %v2381_v18, %v2377_v17  ;;  %v3828_v18 = vld [vmem:[%s5653_s8 + $0xb8] sm:$0xff] }
 0xec7   :  { %v2385_v21 = vmul.f32 %v2382_v20, %v5342_v30  ;;  %2587 = vmatpush.bf16.msrb.mxu0 %v3828_v18 }
 0xf24   :  { %v2388_v19 = vpop.permute.xlu0 %2387 }
 0xf25   :  { %v2390_v10 = vmul.f32 %v2388_v19, %v2382_v20  ;;  %v3827_v19 = vld [vmem:[%s5653_s8 + $0xb0] sm:$0xff] }
 0xf26   :  { %2588 = vmatpush.bf16.msrb.mxu0 %v3827_v19 }
 0xf27   :  { %2392 = vrot.lane.b32.xlu1 %v2390_v10, %s4322_s27  ;;  %v3825_v10 = vld [vmem:[%s5653_s8 + $0x80] sm:$0xff] }
 0xf99   :  { %v2393_v22 = vpop.permute.xlu1 %2392 }
 0xf9a   :  { %v5382_v23 = vadd.f32 %v2393_v22, %v2385_v21 }
 0xf9c   :  { %4245 = vtanh.f32 %v5382_v23 }
 0xfa2   :  { %v4246_v24 = vpop.eup %4245 }
 0xfa3   :  { %2398 = vrot.lane.b32.xlu2 %v4246_v24, %s4324_s5 }
 0xffd   :  { %v2399_v28 = vpop.permute.xlu2 %2398 }
 0xffe   :  { %v2401_v29 = vmul.f32 %v2399_v28, %v2382_v20  ;;  %v3826_v20 = vld [vmem:[%s5653_s8 + $0x88] sm:$0xff] }
 0xfff   :  { %2589 = vmatpush.bf16.msrb.mxu0 %v3826_v20 }
0x1000   :  { %v2403_v31 = vsel %vm1951_vm14, 0.0, %v2401_v29  ;;  %v2402_v32 = vsel %vm1951_vm14, %v2401_v29, 0.0 }
0x1001   :  { %2409 = vrot.lane.b32.xlu1 %v2403_v31, %s4324_s5  ;;  %2405 = vrot.lane.b32.xlu0 %v2402_v32, %s4322_s27 }
0x1003   :  { %2590 = vmatpush.bf16.msrb.mxu0 %v3825_v10 }
0x1073   :  { %v2410_v34 = vpop.permute.xlu1 %2409  ;;  %v2406_v35 = vpop.permute.xlu0 %2405 }
0x1074   :  { %v2412_v30 = vsel %vm322_vm1, %v2406_v35, %v2410_v34 }
0x1075   :  { %v2445_v36 = vpack.c.bf16 %v2412_v30, %v2412_v30  ;;  %3642 = vmatmul.msk.f32.vlgmr.msra.gmra.mxu3 %vm2043_vm15, %v2412_v30 }
0x1076   :  { %3022 = vmatpush.msra.mxu3 %v5194_v61 }
0x1077   :  { %3641 = vmatmul.msk.bf16.vlgmr.msrb.gmra.mxu2 %vm2043_vm15, %v2445_v36 }
0x1078   :  { %3023 = vmatpush.msra.mxu3 %v5199_v62 }
0x107a   :  { %3024 = vmatpush.msra.mxu3 %v5209_v0 }
0x107c   :  { %3025 = vmatpush.msra.mxu3 %v5219_v2 }
0x107e   :  { %3026 = vmatpush.msra.mxu3 %v5226_v3 }
0x1080   :  { %3027 = vmatpush.msra.mxu3 %v5236_v5 }
0x1082   :  { %3028 = vmatpush.msra.mxu3 %v5243_v6 }
0x1084   :  { %3029 = vmatpush.msra.mxu3 %v5250_v7 }
0x10f8   :  { %v2495_v41 = vpop.f32.mrf.mxu3 }
0x10f9   :  { %v2498_v42 = vadd.f32 %v2495_v41, %v2474_v40 }
0x10fa   :  { %v2458_v43 = vpop.f32.mrf.mxu2 }
0x10fb   :  { %4247 = vtanh.f32 %v2498_v42  ;;  %v2462_v44 = vadd.f32 %v2458_v43, %v5377_v58  ;;  %v2464_v45 = vrot.slane %v2458_v43, 2  ;;  %v3643_v50 = vmul.f32 -1.442695, %v2498_v42 }
0x10fd   :  { %v5417_v46 = vadd.f32 %v2464_v45, %v2462_v44  ;;  %4249 = vpow2.f32 %v3643_v50 }
0x1101   :  { %v4248_v47 = vpop.eup %4247 }
0x1102   :  { %2521 = vrot.lane.b32.xlu2 %v4248_v47, %s4324_s5  ;;  %v2460_v49 = vpop.f32.mrf.mxu2 }
0x1103   :  { %v4250_v51 = vpop.eup %4249 }
0x1104   :  { %v2502_v52 = vadd.f32 1.0, %v4250_v51 }
0x1106   :  { %4251 = vrcp.f32 %v2502_v52  ;;  %v2514_v57 = vand.u32 2147483648, %v2502_v52  ;;  %vm2508_vm2 = vweird.f32 %v2502_v52  ;;  %v2512_v58 = vand.u32 2147483647, %v2502_v52 }
0x1108   :  { %v2515_v60 = vor.u32 1.1754944e-38, %v2514_v57  ;;  %vm2513_vm4 = vcmp.eq.f32.partialorder %v2512_v58, 8.507059e+37 }
0x110c   :  { %v4252_v53 = vpop.eup %4251 }
0x110d   :  { %v2504_v54 = vmul.f32 %v4252_v53, %v2502_v52  ;;  %vm2509_vm0 = vweird.f32 %v4252_v53 }
0x110e   :  { %vm2510_vm3 = vmor %vm2508_vm2, %vm2509_vm0 }
0x110f   :  { %v2505_v48 = vsub.f32 1.0, %v2504_v54  ;;  %v3831_v54 = vld [vmem:[%s5653_s8 + $0x90] sm:$0xff] }
0x1111   :  { %v2506_v55 = vmul.f32 %v4252_v53, %v2505_v48  ;;  %v3830_v48 = vld [vmem:[%s5653_s8 + $0xa8] sm:$0xff] }
0x1113   :  { %v2507_v56 = vadd.f32 %v4252_v53, %v2506_v55  ;;  %v3829_v55 = vld [vmem:[%s5653_s8 + $0xa0] sm:$0xff] }
0x1115   :  { %v2511_v59 = vsel %vm2510_vm3, %v4252_v53, %v2507_v56  ;;  %v3832_v53 = vld [vmem:[%s5653_s8 + $0x98] sm:$0xff] }
0x1116   :  { %v2516_v1 = vsel %vm2513_vm4, %v2515_v60, %v2511_v59  ;;  %2721 = vmatpush.bf16.msra.mxu2 %v3832_v53  ;;  %v2738_v60 = vld [vmem:[#allocation6 + $0x3] ss:$10 sm:$0x3] }
0x1117   :  { %v2519_v8 = vmul.f32 %v2516_v1, %v5382_v23 }
0x111a   :  { %2722 = vmatpush.bf16.msra.mxu2 %v3831_v54 }
0x111e   :  { %2723 = vmatpush.bf16.msra.mxu2 %v3830_v48 }
0x1122   :  { %2724 = vmatpush.bf16.msra.mxu2 %v3829_v55 }
0x115c   :  { %v2522_v63 = vpop.permute.xlu2 %2521 }
0x115d   :  { %v2524_v4 = vmul.f32 %v2522_v63, %v2516_v1  ;;  %v2740_v63 = vrot.slane %v2738_v60, 6 }
0x115f   :  { %2526 = vrot.lane.b32.xlu0 %v2524_v4, %s4322_s27 }
0x11d1   :  { %v2527_v11 = vpop.permute.xlu0 %2526 }
0x11d2   :  { %v5422_v12 = vadd.f32 %v2527_v11, %v2519_v8 }
0x11d4   :  { %4253 = vtanh.f32 %v5422_v12 }
0x11da   :  { %v4254_v13 = vpop.eup %4253 }
0x11db   :  { %2532 = vrot.lane.b32.xlu1 %v4254_v13, %s4324_s5 }
0x124d   :  { %v2533_v14 = vpop.permute.xlu1 %2532 }
0x124e   :  { %v2535_v15 = vmul.f32 %v2533_v14, %v2516_v1  ;;  %v2736_v1 = vld [vmem:[#allocation5 + $0x6] ss:$10 sm:$0x3] }
0x124f   :  { %v2742_v4 = vsel %vm1958_vm9, %v2736_v1, %v2740_v63 }
0x1250   :  { %v2537_v16 = vsel %vm1951_vm14, 0.0, %v2535_v15  ;;  %v2536_v17 = vsel %vm1951_vm14, %v2535_v15, 0.0 }
0x1251   :  { %2543 = vrot.lane.b32.xlu0 %v2537_v16, %s4324_s5  ;;  %2539 = vrot.lane.b32.xlu2 %v2536_v17, %s4322_s27 }
0x12ab   :  { %v2540_v21 = vpop.permute.xlu2 %2539 }
0x12c3   :  { %v2544_v22 = vpop.permute.xlu0 %2543 }
0x12c4   :  { %v2546_v23 = vsel %vm322_vm1, %v2540_v21, %v2544_v22 }
0x12c5   :  { %v2579_v24 = vpack.c.bf16 %v2546_v23, %v2546_v23  ;;  %3661 = vmatmul.msk.f32.vlgmr.msra.gmra.mxu1 %vm2043_vm15, %v2546_v23 }
0x12c6   :  { %3155 = vmatpush.msra.mxu1 %v5194_v61  ;;  %v2608_v61 = vsel %vm1958_vm9, %v2602_v27, %v2606_v26 }
0x12c7   :  { %3660 = vmatmul.msk.bf16.vlgmr.msrb.gmra.mxu0 %vm2043_vm15, %v2579_v24 }
0x12c8   :  { %3156 = vmatpush.msra.mxu1 %v5199_v62 }
0x12ca   :  { %3157 = vmatpush.msra.mxu1 %v5209_v0 }
0x12cc   :  { %3158 = vmatpush.msra.mxu1 %v5219_v2 }
0x12ce   :  { %3159 = vmatpush.msra.mxu1 %v5226_v3 }
0x12d0   :  { %3160 = vmatpush.msra.mxu1 %v5236_v5 }
0x12d2   :  { %3161 = vmatpush.msra.mxu1 %v5243_v6 }
0x12d4   :  { %3162 = vmatpush.msra.mxu1 %v5250_v7 }
0x1342   :  { %v2629_v28 = vpop.f32.mrf.mxu1 }
0x1343   :  { %v2632_v29 = vadd.f32 %v2629_v28, %v2608_v61 }
0x1344   :  { %v2592_v62 = vpop.f32.mrf.mxu0 }
0x1345   :  { %4255 = vtanh.f32 %v2632_v29  ;;  %v2596_v0 = vadd.f32 %v2592_v62, %v5417_v46  ;;  %v2598_v2 = vrot.slane %v2592_v62, 2  ;;  %v3662_v6 = vmul.f32 -1.442695, %v2632_v29 }
0x1347   :  { %v2600_v31 = vadd.f32 %v2598_v2, %v2596_v0  ;;  %4257 = vpow2.f32 %v3662_v6  ;;  %v3835_v6 = vld [vmem:[%s5653_s8 + $0x70] sm:$0xff] }
0x134b   :  { %v4256_v3 = vpop.eup %4255 }
0x134c   :  { %2655 = vrot.lane.b32.xlu1 %v4256_v3, %s4324_s5  ;;  %v2594_v5 = vpop.f32.mrf.mxu0 }
0x134d   :  { %v4258_v7 = vpop.eup %4257  ;;  %v3836_v5 = vld [vmem:[%s5653_s8 + $0x78] sm:$0xff] }
0x134e   :  { %v2636_v32 = vadd.f32 1.0, %v4258_v7  ;;  %2855 = vmatpush.bf16.msra.mxu0 %v3836_v5  ;;  %v3834_v7 = vld [vmem:[%s5653_s8 + $0xc8] sm:$0xff] }
0x1350   :  { %4259 = vrcp.f32 %v2636_v32  ;;  %v2648_v37 = vand.u32 2147483648, %v2636_v32  ;;  %vm2642_vm6 = vweird.f32 %v2636_v32  ;;  %v2646_v38 = vand.u32 2147483647, %v2636_v32 }
0x1352   :  { %v2649_v40 = vor.u32 1.1754944e-38, %v2648_v37  ;;  %vm2647_vm8 = vcmp.eq.f32.partialorder %v2646_v38, 8.507059e+37  ;;  %2856 = vmatpush.bf16.msra.mxu0 %v3835_v6 }
0x1356   :  { %v4260_v33 = vpop.eup %4259  ;;  %2857 = vmatpush.bf16.msra.mxu0 %v3834_v7 }
0x1357   :  { %v2638_v34 = vmul.f32 %v4260_v33, %v2636_v32  ;;  %vm2643_vm5 = vweird.f32 %v4260_v33 }
0x1358   :  { %vm2644_vm7 = vmor %vm2642_vm6, %vm2643_vm5 }
0x1359   :  { %v2639_v35 = vsub.f32 1.0, %v2638_v34 }
0x135b   :  { %v2640_v30 = vmul.f32 %v4260_v33, %v2639_v35 }
0x135d   :  { %v2641_v36 = vadd.f32 %v4260_v33, %v2640_v30  ;;  %v3833_v30 = vld [vmem:[%s5653_s8 + $0xc0] sm:$0xff] }
0x135e   :  { %2858 = vmatpush.bf16.msra.mxu0 %v3833_v30 }
0x135f   :  { %v2645_v39 = vsel %vm2644_vm7, %v4260_v33, %v2641_v36 }
0x1360   :  { %v2650_v42 = vsel %vm2647_vm8, %v2649_v40, %v2645_v39  ;;  %v2872_v40 = vld [vmem:[#allocation6 + $0x2] ss:$10 sm:$0x3] }
0x1361   :  { %v2653_v44 = vmul.f32 %v2650_v42, %v5422_v12 }
0x13be   :  { %v2656_v41 = vpop.permute.xlu1 %2655 }
0x13bf   :  { %v2658_v43 = vmul.f32 %v2656_v41, %v2650_v42  ;;  %v2874_v41 = vrot.slane %v2872_v40, 6 }
0x13c1   :  { %2660 = vrot.lane.b32.xlu2 %v2658_v43, %s4322_s27 }
0x141b   :  { %v2661_v45 = vpop.permute.xlu2 %2660 }
0x141c   :  { %v2663_v46 = vadd.f32 %v2661_v45, %v2653_v44 }
0x141e   :  { %4261 = vtanh.f32 %v2663_v46 }
0x1424   :  { %v4262_v47 = vpop.eup %4261 }
0x1425   :  { %2666 = vrot.lane.b32.xlu0 %v4262_v47, %s4324_s5 }
0x1497   :  { %v2667_v49 = vpop.permute.xlu0 %2666 }
0x1498   :  { %v2669_v50 = vmul.f32 %v2667_v49, %v2650_v42  ;;  %v2870_v42 = vld [vmem:[#allocation5 + $0x7] ss:$10 sm:$0x3] }
0x1499   :  { %v2876_v43 = vsel %vm1958_vm9, %v2870_v42, %v2874_v41 }
0x149a   :  { %v2671_v51 = vsel %vm1951_vm14, 0.0, %v2669_v50  ;;  %v2670_v52 = vsel %vm1951_vm14, %v2669_v50, 0.0 }
0x149b   :  { %2677 = vrot.lane.b32.xlu2 %v2671_v51, %s4324_s5  ;;  %2673 = vrot.lane.b32.xlu1 %v2670_v52, %s4322_s27 }
0x14f5   :  { %v2678_v56 = vpop.permute.xlu2 %2677 }
0x150d   :  { %v2674_v57 = vpop.permute.xlu1 %2673 }
0x150e   :  { %v2680_v58 = vsel %vm322_vm1, %v2674_v57, %v2678_v56 }
0x150f   :  { %v2713_v59 = vpack.c.bf16 %v2680_v58, %v2680_v58  ;;  %3680 = vmatmul.msk.f32.vlgmr.msrb.gmra.mxu3 %vm2043_vm15, %v2680_v58 }
0x1511   :  { %3679 = vmatmul.msk.bf16.vlgmr.msra.gmra.mxu2 %vm2043_vm15, %v2713_v59 }
0x1592   :  { %v2763_v8 = vpop.f32.mrf.mxu3 }
0x1593   :  { %v2766_v11 = vadd.f32 %v2763_v8, %v2742_v4 }
0x1594   :  { %v2726_v12 = vpop.f32.mrf.mxu2 }
0x1595   :  { %4263 = vtanh.f32 %v2766_v11  ;;  %v2730_v13 = vadd.f32 %v2726_v12, %v2600_v31  ;;  %v2732_v14 = vrot.slane %v2726_v12, 2  ;;  %v3681_v18 = vmul.f32 -1.442695, %v2766_v11 }
0x1597   :  { %v2734_v15 = vadd.f32 %v2732_v14, %v2730_v13  ;;  %4265 = vpow2.f32 %v3681_v18 }
0x159b   :  { %v4264_v16 = vpop.eup %4263 }
0x159c   :  { %2789 = vrot.lane.b32.xlu0 %v4264_v16, %s4324_s5  ;;  %v2728_v17 = vpop.f32.mrf.mxu2 }
0x159d   :  { %v4266_v19 = vpop.eup %4265 }
0x159e   :  { %v2770_v20 = vadd.f32 1.0, %v4266_v19 }
0x15a0   :  { %4267 = vrcp.f32 %v2770_v20  ;;  %v2782_v25 = vand.u32 2147483648, %v2770_v20  ;;  %vm2776_vm11 = vweird.f32 %v2770_v20  ;;  %v2780_v26 = vand.u32 2147483647, %v2770_v20 }
0x15a2   :  { %v2783_v61 = vor.u32 1.1754944e-38, %v2782_v25  ;;  %vm2781_vm13 = vcmp.eq.f32.partialorder %v2780_v26, 8.507059e+37 }
0x15a6   :  { %v4268_v10 = vpop.eup %4267 }
0x15a7   :  { %v2772_v21 = vmul.f32 %v4268_v10, %v2770_v20  ;;  %vm2777_vm10 = vweird.f32 %v4268_v10 }
0x15a8   :  { %vm2778_vm12 = vmor %vm2776_vm11, %vm2777_vm10 }
0x15a9   :  { %v2773_v22 = vsub.f32 1.0, %v2772_v21  ;;  %v3839_v21 = vld [vmem:[%s5653_s8 + $0x50] sm:$0xff] }
0x15ab   :  { %v2774_v23 = vmul.f32 %v4268_v10, %v2773_v22  ;;  %v3838_v22 = vld [vmem:[%s5653_s8 + $0xe8] sm:$0xff] }
0x15ad   :  { %v2775_v24 = vadd.f32 %v4268_v10, %v2774_v23  ;;  %v3837_v23 = vld [vmem:[%s5653_s8 + $0xe0] sm:$0xff] }
0x15af   :  { %v2779_v27 = vsel %vm2778_vm12, %v4268_v10, %v2775_v24  ;;  %v3840_v10 = vld [vmem:[%s5653_s8 + $0x58] sm:$0xff] }
0x15b0   :  { %v2784_v29 = vsel %vm2781_vm13, %v2783_v61, %v2779_v27  ;;  %2989 = vmatpush.bf16.msrb.mxu2 %v3840_v10  ;;  %v3006_v61 = vld [vmem:[#allocation6 + $0x1] ss:$10 sm:$0x3] }
0x15b1   :  { %v2787_v0 = vmul.f32 %v2784_v29, %v2663_v46 }
0x15b4   :  { %2990 = vmatpush.bf16.msrb.mxu2 %v3839_v21 }
0x15b8   :  { %2991 = vmatpush.bf16.msrb.mxu2 %v3838_v22 }
0x15bc   :  { %2992 = vmatpush.bf16.msrb.mxu2 %v3837_v23 }
0x160e   :  { %v2790_v28 = vpop.permute.xlu0 %2789 }
0x160f   :  { %v2792_v62 = vmul.f32 %v2790_v28, %v2784_v29  ;;  %v3004_v28 = vld [vmem:[#allocation5 + $0x8] ss:$10 sm:$0x3] }
0x1611   :  { %2794 = vrot.lane.b32.xlu1 %v2792_v62, %s4322_s27 }
0x1683   :  { %v2795_v2 = vpop.permute.xlu1 %2794 }
0x1684   :  { %v2797_v31 = vadd.f32 %v2795_v2, %v2787_v0 }
0x1686   :  { %4269 = vtanh.f32 %v2797_v31 }
0x168c   :  { %v4270_v3 = vpop.eup %4269 }
0x168d   :  { %2800 = vrot.lane.b32.xlu2 %v4270_v3, %s4324_s5 }
0x16e7   :  { %v2801_v32 = vpop.permute.xlu2 %2800 }
0x16e8   :  { %v2803_v33 = vmul.f32 %v2801_v32, %v2784_v29  ;;  %v3008_v29 = vrot.slane %v3006_v61, 6 }
0x16ea   :  { %v2805_v34 = vsel %vm1951_vm14, 0.0, %v2803_v33  ;;  %v2804_v35 = vsel %vm1951_vm14, %v2803_v33, 0.0  ;;  %v3010_v62 = vsel %vm1958_vm9, %v3004_v28, %v3008_v29 }
0x16eb   :  { %2811 = vrot.lane.b32.xlu1 %v2805_v34, %s4324_s5  ;;  %2807 = vrot.lane.b32.xlu0 %v2804_v35, %s4322_s27 }
0x175d   :  { %v2812_v36 = vpop.permute.xlu1 %2811  ;;  %v2808_v37 = vpop.permute.xlu0 %2807 }
0x175e   :  { %v2814_v38 = vsel %vm322_vm1, %v2808_v37, %v2812_v36 }
0x175f   :  { %v2847_v39 = vpack.c.bf16 %v2814_v38, %v2814_v38  ;;  %3699 = vmatmul.msk.f32.vlgmr.msrb.gmra.mxu1 %vm2043_vm15, %v2814_v38 }
0x1761   :  { %3698 = vmatmul.msk.bf16.vlgmr.msra.gmra.mxu0 %vm2043_vm15, %v2847_v39 }
0x17dc   :  { %v2897_v44 = vpop.f32.mrf.mxu1 }
0x17dd   :  { %v2900_v45 = vadd.f32 %v2897_v44, %v2876_v43 }
0x17de   :  { %v2860_v46 = vpop.f32.mrf.mxu0 }
0x17df   :  { %4271 = vtanh.f32 %v2900_v45  ;;  %v2864_v47 = vadd.f32 %v2860_v46, %v2734_v15  ;;  %v2866_v49 = vrot.slane %v2860_v46, 2  ;;  %v3700_v53 = vmul.f32 -1.442695, %v2900_v45 }
0x17e1   :  { %v2868_v50 = vadd.f32 %v2866_v49, %v2864_v47  ;;  %4273 = vpow2.f32 %v3700_v53 }
0x17e5   :  { %v4272_v51 = vpop.eup %4271 }
0x17e6   :  { %2923 = vrot.lane.b32.xlu2 %v4272_v51, %s4324_s5  ;;  %v2862_v52 = vpop.f32.mrf.mxu0 }
0x17e7   :  { %v4274_v54 = vpop.eup %4273 }
0x17e8   :  { %v2904_v48 = vadd.f32 1.0, %v4274_v54 }
0x17ea   :  { %4275 = vrcp.f32 %v2904_v48  ;;  %v2916_v60 = vand.u32 2147483648, %v2904_v48  ;;  %vm2910_vm2 = vweird.f32 %v2904_v48  ;;  %v2914_v63 = vand.u32 2147483647, %v2904_v48 }
0x17ec   :  { %v2917_v4 = vor.u32 1.1754944e-38, %v2916_v60  ;;  %vm2915_vm4 = vcmp.eq.f32.partialorder %v2914_v63, 8.507059e+37 }
0x17f0   :  { %v4276_v55 = vpop.eup %4275 }
0x17f1   :  { %v2906_v56 = vmul.f32 %v4276_v55, %v2904_v48  ;;  %vm2911_vm0 = vweird.f32 %v4276_v55 }
0x17f2   :  { %vm2912_vm3 = vmor %vm2910_vm2, %vm2911_vm0 }
0x17f3   :  { %v2907_v57 = vsub.f32 1.0, %v2906_v56  ;;  %v3843_v56 = vld [vmem:[%s5653_s8 + $0x30] sm:$0xff] }
0x17f5   :  { %v2908_v58 = vmul.f32 %v4276_v55, %v2907_v57  ;;  %v3842_v57 = vld [vmem:[%s5653_s8 + $0x108] sm:$0xff] }
0x17f7   :  { %v2909_v59 = vadd.f32 %v4276_v55, %v2908_v58  ;;  %v3841_v58 = vld [vmem:[%s5653_s8 + $0x100] sm:$0xff] }
0x17f9   :  { %v2913_v1 = vsel %vm2912_vm3, %v4276_v55, %v2909_v59  ;;  %v3844_v55 = vld [vmem:[%s5653_s8 + $0x38] sm:$0xff] }
0x17fa   :  { %v2918_v11 = vsel %vm2915_vm4, %v2917_v4, %v2913_v1  ;;  %3123 = vmatpush.bf16.msrb.mxu0 %v3844_v55  ;;  %v3139_v4 = vld [vmem:[#allocation6] ss:$10 sm:$0x3] }
0x17fb   :  { %v2921_v13 = vmul.f32 %v2918_v11, %v2797_v31  ;;  %v3361_v55 = vld [vmem:[%s5657_s12 + $0x10] sm:$0xff] }
0x17fe   :  { %3124 = vmatpush.bf16.msrb.mxu0 %v3843_v56 }
0x1802   :  { %3125 = vmatpush.bf16.msrb.mxu0 %v3842_v57 }
0x1806   :  { %3126 = vmatpush.bf16.msrb.mxu0 %v3841_v58 }
0x1840   :  { %v2924_v8 = vpop.permute.xlu2 %2923 }
0x1841   :  { %v2926_v12 = vmul.f32 %v2924_v8, %v2918_v11  ;;  %v3138_v8 = vld [vmem:[#allocation5 + $0x9] ss:$10 sm:$0x3] }
0x1843   :  { %2928 = vrot.lane.b32.xlu0 %v2926_v12, %s4322_s27 }
0x18b5   :  { %v2929_v14 = vpop.permute.xlu0 %2928 }
0x18b6   :  { %v2931_v15 = vadd.f32 %v2929_v14, %v2921_v13 }
0x18b8   :  { %4277 = vtanh.f32 %v2931_v15 }
0x18be   :  { %v4278_v16 = vpop.eup %4277 }
0x18bf   :  { %2934 = vrot.lane.b32.xlu1 %v4278_v16, %s4324_s5 }
0x1931   :  { %v2935_v17 = vpop.permute.xlu1 %2934 }
0x1932   :  { %v2937_v18 = vmul.f32 %v2935_v17, %v2918_v11  ;;  %v3141_v11 = vrot.slane %v3139_v4, 6 }
0x1934   :  { %v2939_v19 = vsel %vm1951_vm14, 0.0, %v2937_v18  ;;  %v2938_v20 = vsel %vm1951_vm14, %v2937_v18, 0.0  ;;  %v3143_v12 = vsel %vm1958_vm9, %v3138_v8, %v3141_v11  ;;  %v3360_v11 = vld [vmem:[%s5657_s12 + $0x8] sm:$0xff] }
0x1935   :  { %2945 = vrot.lane.b32.xlu0 %v2939_v19, %s4324_s5  ;;  %2941 = vrot.lane.b32.xlu2 %v2938_v20, %s4322_s27 }
0x198f   :  { %v2942_v24 = vpop.permute.xlu2 %2941 }
0x19a7   :  { %v2946_v25 = vpop.permute.xlu0 %2945 }
0x19a8   :  { %v2948_v26 = vsel %vm322_vm1, %v2942_v24, %v2946_v25 }
0x19a9   :  { %v2981_v27 = vpack.c.bf16 %v2948_v26, %v2948_v26  ;;  %3718 = vmatmul.msk.f32.vlgmr.msra.gmra.mxu3 %vm2043_vm15, %v2948_v26 }
0x19ab   :  { %3717 = vmatmul.msk.bf16.vlgmr.msrb.gmra.mxu2 %vm2043_vm15, %v2981_v27 }
0x1a2c   :  { %v3031_v0 = vpop.f32.mrf.mxu3 }
0x1a2d   :  { %v3034_v2 = vadd.f32 %v3031_v0, %v3010_v62 }
0x1a2e   :  { %v2994_v31 = vpop.f32.mrf.mxu2 }
0x1a2f   :  { %4279 = vtanh.f32 %v3034_v2  ;;  %v2998_v3 = vadd.f32 %v2994_v31, %v2868_v50  ;;  %v3000_v5 = vrot.slane %v2994_v31, 2  ;;  %v3719_v33 = vmul.f32 -1.442695, %v3034_v2 }
0x1a31   :  { %v3002_v6 = vadd.f32 %v3000_v5, %v2998_v3  ;;  %4281 = vpow2.f32 %v3719_v33  ;;  %v3847_v33 = vld [vmem:[%s5653_s8 + $0x10] sm:$0xff] }
0x1a35   :  { %v4280_v7 = vpop.eup %4279 }
0x1a36   :  { %3057 = vrot.lane.b32.xlu1 %v4280_v7, %s4324_s5  ;;  %v2996_v32 = vpop.f32.mrf.mxu2 }
0x1a37   :  { %v4282_v34 = vpop.eup %4281  ;;  %v3848_v32 = vld [vmem:[%s5653_s8 + $0x18] sm:$0xff] }
0x1a38   :  { %v3038_v35 = vadd.f32 1.0, %v4282_v34  ;;  %3256 = vmatpush.bf16.msra.mxu2 %v3848_v32  ;;  %v3846_v34 = vld [vmem:[%s5653_s8 + $0x128] sm:$0xff] }
0x1a3a   :  { %4283 = vrcp.f32 %v3038_v35  ;;  %v3050_v40 = vand.u32 2147483648, %v3038_v35  ;;  %vm3044_vm6 = vweird.f32 %v3038_v35  ;;  %v3048_v41 = vand.u32 2147483647, %v3038_v35 }
0x1a3c   :  { %v3051_v43 = vor.u32 1.1754944e-38, %v3050_v40  ;;  %vm3049_vm8 = vcmp.eq.f32.partialorder %v3048_v41, 8.507059e+37  ;;  %3257 = vmatpush.bf16.msra.mxu2 %v3847_v33  ;;  %v3855_v40 = vld [vmem:[%s5655_s10 + $0x30] sm:$0xff]  ;;  %v3853_v41 = vld [vmem:[%s5655_s10 + $0x20] sm:$0xff] }
0x1a40   :  { %v4284_v30 = vpop.eup %4283  ;;  %3258 = vmatpush.bf16.msra.mxu2 %v3846_v34 }
0x1a41   :  { %v3040_v36 = vmul.f32 %v4284_v30, %v3038_v35  ;;  %vm3045_vm5 = vweird.f32 %v4284_v30 }
0x1a42   :  { %vm3046_vm7 = vmor %vm3044_vm6, %vm3045_vm5 }
0x1a43   :  { %v3041_v37 = vsub.f32 1.0, %v3040_v36 }
0x1a45   :  { %v3042_v38 = vmul.f32 %v4284_v30, %v3041_v37 }
0x1a47   :  { %v3043_v39 = vadd.f32 %v4284_v30, %v3042_v38  ;;  %v3845_v38 = vld [vmem:[%s5653_s8 + $0x120] sm:$0xff] }
0x1a48   :  { %3259 = vmatpush.bf16.msra.mxu2 %v3845_v38 }
0x1a49   :  { %v3047_v42 = vsel %vm3046_vm7, %v4284_v30, %v3043_v39  ;;  %v3856_v39 = vld [vmem:[%s5655_s10 + $0x38] sm:$0xff] }
0x1a4a   :  { %v3052_v45 = vsel %vm3049_vm8, %v3051_v43, %v3047_v42  ;;  %3345 = vmatpush.bf16.msrb.mxu3 %v3856_v39  ;;  %v3852_v42 = vld [vmem:[%s5655_s10 + $0x18] sm:$0xff] }
0x1a4b   :  { %v3055_v47 = vmul.f32 %v3052_v45, %v2931_v15 }
0x1a4e   :  { %3346 = vmatpush.bf16.msrb.mxu3 %v3855_v40 }
0x1a52   :  { %3347 = vmatpush.bf16.msrb.mxu3 %v3854_v9 }
0x1a56   :  { %3348 = vmatpush.bf16.msrb.mxu3 %v3853_v41 }
0x1a5a   :  { %3349 = vmatpush.bf16.msrb.mxu3 %v3852_v42 }
0x1aa8   :  { %v3058_v44 = vpop.permute.xlu1 %3057 }
0x1aa9   :  { %v3060_v46 = vmul.f32 %v3058_v44, %v3052_v45 }
0x1aab   :  { %3062 = vrot.lane.b32.xlu2 %v3060_v46, %s4322_s27 }
0x1b05   :  { %v3063_v49 = vpop.permute.xlu2 %3062 }
0x1b06   :  { %v3065_v50 = vadd.f32 %v3063_v49, %v3055_v47  ;;  %v3851_v47 = vld [vmem:[%s5655_s10 + $0x10] sm:$0xff]  ;;  %v3850_v49 = vld [vmem:[%s5655_s10 + $0x8] sm:$0xff] }
0x1b07   :  { %3350 = vmatpush.bf16.msrb.mxu3 %v3851_v47 }
0x1b08   :  { %4285 = vtanh.f32 %v3065_v50 }
0x1b0b   :  { %3351 = vmatpush.bf16.msrb.mxu3 %v3850_v49 }
0x1b0e   :  { %v4286_v51 = vpop.eup %4285 }
0x1b0f   :  { %3068 = vrot.lane.b32.xlu0 %v4286_v51, %s4324_s5  ;;  %v3365_v51 = vld [vmem:[%s5657_s12 + $0x30] sm:$0xff] }
0x1b81   :  { %v3069_v52 = vpop.permute.xlu0 %3068 }
0x1b82   :  { %v3071_v53 = vmul.f32 %v3069_v52, %v3052_v45  ;;  %v3364_v52 = vld [vmem:[%s5657_s12 + $0x28] sm:$0xff] }
0x1b84   :  { %v3073_v54 = vsel %vm1951_vm14, 0.0, %v3071_v53  ;;  %v3072_v48 = vsel %vm1951_vm14, %v3071_v53, 0.0  ;;  %v3849_v53 = vld [vmem:[%s5655_s10] sm:$0xff] }
0x1b85   :  { %3079 = vrot.lane.b32.xlu2 %v3073_v54, %s4324_s5  ;;  %3075 = vrot.lane.b32.xlu1 %v3072_v48, %s4322_s27  ;;  %v3363_v54 = vld [vmem:[%s5657_s12 + $0x20] sm:$0xff]  ;;  %v3362_v48 = vld [vmem:[%s5657_s12 + $0x18] sm:$0xff] }
0x1b86   :  { %3352 = vmatpush.bf16.msrb.mxu3 %v3849_v53 }
0x1bdf   :  { %v3080_v59 = vpop.permute.xlu2 %3079 }
0x1bf7   :  { %v3076_v60 = vpop.permute.xlu1 %3075 }
0x1bf8   :  { %v3082_v63 = vsel %vm322_vm1, %v3076_v60, %v3080_v59  ;;  %v4212_v59 = vld [vmem:[%s5654_s9] ss:$0 sm:$0xff] }
0x1bf9   :  { %v3115_v1 = vpack.c.bf16 %v3082_v63, %v3082_v63  ;;  %3737 = vmatmul.msk.f32.vlgmr.msra.gmra.mxu1 %vm2043_vm15, %v3082_v63 }
0x1bfb   :  { %3736 = vmatmul.msk.bf16.vlgmr.msrb.gmra.mxu0 %vm2043_vm15, %v3115_v1 }
0x1c76   :  { %v3164_v13 = vpop.f32.mrf.mxu1 }
0x1c77   :  { %v3167_v14 = vadd.f32 %v3164_v13, %v3143_v12  ;;  %v3359_v12 = vld [vmem:[%s5657_s12] sm:$0xff] }
0x1c78   :  { %v3128_v15 = vpop.f32.mrf.mxu0  ;;  %v4213_v13 = vld [vmem:[%s5656_s11] ss:$0 sm:$0xff] }
0x1c79   :  { %4287 = vtanh.f32 %v3167_v14  ;;  %v3132_v16 = vadd.f32 %v3128_v15, %v3002_v6  ;;  %v3134_v17 = vrot.slane %v3128_v15, 2  ;;  %v3738_v10 = vmul.f32 -1.442695, %v3167_v14 }
0x1c7b   :  { %v5558_v18 = vadd.f32 %v3134_v17, %v3132_v16  ;;  %4289 = vpow2.f32 %v3738_v10 }
0x1c7f   :  { %v4288_v19 = vpop.eup %4287 }
0x1c80   :  { %3190 = vrot.lane.b32.xlu0 %v4288_v19, %s4324_s5  ;;  %v3130_v20 = vpop.f32.mrf.mxu0 }
0x1c81   :  { %v4290_v21 = vpop.eup %4289 }
0x1c82   :  { %v3171_v22 = vadd.f32 1.0, %v4290_v21 }
0x1c84   :  { %4291 = vrcp.f32 %v3171_v22  ;;  %v3183_v61 = vand.u32 2147483648, %v3171_v22  ;;  %vm3177_vm10 = vweird.f32 %v3171_v22  ;;  %v3181_v28 = vand.u32 2147483647, %v3171_v22 }
0x1c86   :  { %v3184_v62 = vor.u32 1.1754944e-38, %v3183_v61  ;;  %vm3182_vm12 = vcmp.eq.f32.partialorder %v3181_v28, 8.507059e+37 }
0x1c8a   :  { %v4292_v23 = vpop.eup %4291 }
0x1c8b   :  { %v3173_v24 = vmul.f32 %v4292_v23, %v3171_v22  ;;  %vm3178_vm9 = vweird.f32 %v4292_v23 }
0x1c8c   :  { %vm3179_vm11 = vmor %vm3177_vm10, %vm3178_vm9 }
0x1c8d   :  { %v3174_v25 = vsub.f32 1.0, %v3173_v24 }
0x1c8f   :  { %v3175_v26 = vmul.f32 %v4292_v23, %v3174_v25 }
0x1c91   :  { %v3176_v27 = vadd.f32 %v4292_v23, %v3175_v26 }
0x1c93   :  { %v3180_v29 = vsel %vm3179_vm11, %v4292_v23, %v3176_v27 }
0x1c94   :  { %v3185_v2 = vsel %vm3182_vm12, %v3184_v62, %v3180_v29 }
0x1c95   :  { %v3188_v3 = vmul.f32 %v3185_v2, %v3065_v50  ;;  %v3366_v50 = vld [vmem:[%s5657_s12 + $0x38] sm:$0xff] }
0x1c96   :  { %3382 = vmatpush.msra.mxu0 %v3366_v50 }
0x1c98   :  { %3383 = vmatpush.msra.mxu0 %v3365_v51 }
0x1c9a   :  { %3384 = vmatpush.msra.mxu0 %v3364_v52 }
0x1c9c   :  { %3385 = vmatpush.msra.mxu0 %v3363_v54 }
0x1c9e   :  { %3386 = vmatpush.msra.mxu0 %v3362_v48 }
0x1ca0   :  { %3387 = vmatpush.msra.mxu0 %v3361_v55 }
0x1ca2   :  { %3388 = vmatpush.msra.mxu0 %v3360_v11 }
0x1ca4   :  { %3389 = vmatpush.msra.mxu0 %v3359_v12 }
0x1cf2   :  { %v3191_v0 = vpop.permute.xlu0 %3190 }
0x1cf3   :  { %v3193_v31 = vmul.f32 %v3191_v0, %v3185_v2 }
0x1cf5   :  { %3195 = vrot.lane.b32.xlu1 %v3193_v31, %s4322_s27 }
0x1d67   :  { %v3196_v5 = vpop.permute.xlu1 %3195 }
0x1d68   :  { %v3198_v6 = vadd.f32 %v3196_v5, %v3188_v3 }
0x1d6a   :  { %4293 = vtanh.f32 %v3198_v6 }
0x1d70   :  { %v4294_v7 = vpop.eup %4293 }
0x1d71   :  { %3201 = vrot.lane.b32.xlu2 %v4294_v7, %s4324_s5 }
0x1dcb   :  { %v3202_v35 = vpop.permute.xlu2 %3201 }
0x1dcc   :  { %v3204_v30 = vmul.f32 %v3202_v35, %v3185_v2 }
0x1dce   :  { %v3206_v36 = vsel %vm1951_vm14, 0.0, %v3204_v30  ;;  %v3205_v37 = vsel %vm1951_vm14, %v3204_v30, 0.0 }
0x1dcf   :  { %3212 = vrot.lane.b32.xlu1 %v3206_v36, %s4324_s5  ;;  %3208 = vrot.lane.b32.xlu0 %v3205_v37, %s4322_s27 }
0x1e41   :  { %v3213_v43 = vpop.permute.xlu1 %3212  ;;  %v3209_v44 = vpop.permute.xlu0 %3208 }
0x1e42   :  { %v3215_v45 = vsel %vm322_vm1, %v3209_v44, %v3213_v43  ;;  %vm3394_vm1 = vcmask 9216  }
0x1e43   :  { %v3248_v46 = vpack.c.bf16 %v3215_v45, %v3215_v45 }
0x1e45   :  { %3755 = vmatmul.msk.bf16.vlgmr.msra.gmra.mxu2 %vm2043_vm15, %v3248_v46 }
0x1ec8   :  { %v3261_v56 = vpop.f32.mrf.mxu2 }
0x1ec9   :  { %v3265_v57 = vadd.f32 %v3261_v56, %v5558_v18  ;;  %v3267_v58 = vrot.slane %v3261_v56, 2  ;;  %v4214_v18 = vld [vmem:[%s5658_s13] ss:$0 sm:$0xff] }
0x1ecb   :  { %v3269_v60 = vadd.f32 %v3267_v58, %v3265_v57 }
0x1ecd   :  { %v3274_v63 = vadd.f32 %v4212_v59, %v3269_v60 }
0x1ecf   :  { %v3275_v1 = vmax.f32 %v3274_v63, 0.0 }
0x1ed0   :  { %v3263_v4 = vpop.f32.mrf.mxu2 }
0x1ed1   :  { %v3276_v8 = vpack.c.bf16 %v3275_v1, %v3275_v1 }
0x1ed3   :  { %3353 = vmatmul.bf16.vlgmr.msrb.gmra.mxu3 %v3276_v8 }
0x1f56   :  { %v3354_v14 = vpop.f32.mrf.mxu3 }
0x1f57   :  { %v3355_v15 = vadd.f32 %v4213_v13, %v3354_v14 }
0x1f59   :  { %v3358_v16 = vmax.f32 %v3355_v15, 0.0 }
0x1f5b   :  { %3788 = vmatmul.msk.f32.vlgmr.msra.gmra.mxu0 %vm2043_vm15, %v3358_v16 }
0x1f5e   :  { %v3356_v17 = vpop.f32.mrf.mxu3 }
0x1fd8   :  { %v3391_v19 = vpop.f32.mrf.mxu0 }
0x1fd9   :  { %v3392_v20 = vadd.f32 %v4214_v18, %v3391_v19 }
0x1fdb   :  { %3395 = vst.msk [vmem:[#allocation7] sm:$0x3] %vm3394_vm1, %v3392_v20 }
0x1fdc   :  { %3406 = dma.vmem_to_hbm [thread:$0]  %s3402_s20, 32, %s3404_s0, [#allocation8]  }
0x1fdd   :  { %4319 = dma.done.wait [#allocation8], 32  }
0x1fde   :  { %4320 = vsyncadd [#allocation8], 4294967264 }
0x1fdf   :  { %3411 = vsyncpa [#allocation8], 1 }

</bundles_post_ra>
